<compile_context>
chip_gen: v6e
topology: v6e:2x2x1
jax: 0.10.0
libtpu: 0.0.40
codegen_flags: <defaults>
</compile_context>

<pallas_src>
import jax
import jax.numpy as jnp
import numpy as np
from jax.experimental import pallas as pl
from jax.experimental.pallas import tpu as pltpu

# Keep the in-kernel MXU matmuls and the XLA reference numerically comparable.
jax.config.update("jax_default_matmul_precision", "highest")

CONV_STRIDES = {"conv1": 2, "conv2": 2, "conv3": 1}


# ----------------------------------------------------------------------------
# Fused Pallas kernel: entire Value.forward in one launch.
# ----------------------------------------------------------------------------
def _value_fwd_kernel(
    x_ref, goal_ref, act_ref,
    r1_ref, m1_ref, b1_ref,
    r2_ref, m2_ref, b2_ref,
    r3_ref, m3_ref, b3_ref,
    prow_ref, pcol_ref,
    we_ref, be_ref,
    wa1_ref, wa2_ref, wa3_ref, ba_ref,
    wb_ref, bb_ref, wc_ref, bc_ref,
    out_ref,
):
    def dot32(a, b):
        return jnp.dot(a, b, preferred_element_type=jnp.float32)

    def conv(z, r_ref, m_ref, b_ref):
        # z: (B*H, W*C) ; r_ref: (k, B*HO, B*H) ; m_ref: (k, W*C, WO*Cout)
        k = r_ref.shape[0]
        acc = dot32(dot32(r_ref[0], z), m_ref[0])
        for kh in range(1, k):  # static trip-count, unrolled at trace time
            acc = acc + dot32(dot32(r_ref[kh], z), m_ref[kh])
        return jnp.maximum(acc + b_ref[...], 0.0)   # (B*HO, WO*Cout)

    # conv1 -> conv2 -> conv3 (all ReLU), activations stay in (b*h, w*c) form.
    y = conv(x_ref[...], r1_ref, m1_ref, b1_ref)
    y = conv(y, r2_ref, m2_ref, b2_ref)
    y = conv(y, r3_ref, m3_ref, b3_ref)

    # AdaptiveAvgPool2d((1,1)) + flatten  ->  (B, C3)  (1/(H*W) folded in prow)
    x1 = dot32(dot32(prow_ref[...], y), pcol_ref[...])

    # goal-state embedding + ReLU  -> (B, 16)
    x2 = jnp.maximum(dot32(goal_ref[...], we_ref[...]) + be_ref[...], 0.0)

    # twin heads; feature concat folded into split first-layer weights.
    h = (dot32(x1, wa1_ref[...]) + dot32(x2, wa2_ref[...])
         + dot32(act_ref[...], wa3_ref[...]) + ba_ref[...])
    h = jnp.maximum(h, 0.0)                                    # (B, 128)
    h = jnp.maximum(dot32(h, wb_ref[...]) + bb_ref[...], 0.0)  # (B, 128)
    out_ref[...] = (dot32(h, wc_ref[...]) + bc_ref[...]).astype(out_ref.dtype)


def value_forward(prep, current_state, goal_state, next_action):
    """Fused forward pass. Returns (q1, q2), each (B, 1)."""
    B, H, W, C = current_state.shape
    x2d = current_state.reshape(B * H, W * C)   # free row-major reshape

    args = (
        x2d, goal_state, next_action,
        prep["r1"], prep["m1"], prep["b1"],
        prep["r2"], prep["m2"], prep["b2"],
        prep["r3"], prep["m3"], prep["b3"],
        prep["prow"], prep["pcol"],
        prep["we"], prep["be"],
        prep["wa1"], prep["wa2"], prep["wa3"], prep["ba"],
        prep["wb"], prep["bb"], prep["wc"], prep["bc"],
    )
    out = pl.pallas_call(
        _value_fwd_kernel,
        out_shape=jax.ShapeDtypeStruct((B, 2), jnp.float32),
        in_specs=[pl.BlockSpec(memory_space=pltpu.MemorySpace.VMEM)
                  for _ in args],
        out_specs=pl.BlockSpec(memory_space=pltpu.MemorySpace.VMEM),
        compiler_params=pltpu.CompilerParams(vmem_limit_bytes=16 * 1024 * 1024),
        cost_estimate=pl.CostEstimate(
            flops=2_000_000, transcendentals=0, bytes_accessed=300_000),
    )(*args)
    q1 = out[:, 0:1]
    q2 = out[:, 1:2]
    return q1, q2


# ----------------------------------------------------------------------------
# One-time host-side parameter preparation (pure numpy; NOT in the hot path).
# ----------------------------------------------------------------------------
def prepare_params(params, B, H, W):
    prep = {}
    h, w = H, W
    c_last = None
    for idx, (name, stride) in enumerate(
            (("conv1", CONV_STRIDES["conv1"]),
             ("conv2", CONV_STRIDES["conv2"]),
             ("conv3", CONV_STRIDES["conv3"])), start=1):
        wgt = np.asarray(params[name + "_w"], np.float32)   # (k,k,Cin,Cout) HWIO
        bia = np.asarray(params[name + "_b"], np.float32)
        k, _, C, Cout = wgt.shape
        HO = (h - k) // stride + 1
        WO = (w - k) // stride + 1

        # Row selection (already transposed): picks input rows h = ho*s + kh.
        r_t = np.zeros((k, B * HO, B * h), np.float32)
        # Column map: im2col along W fused with the conv weights for offset kh.
        m = np.zeros((k, w * C, WO * Cout), np.float32)
        for kh in range(k):
            for b in range(B):
                for ho in range(HO):
                    r_t[kh, b * HO + ho, b * h + ho * stride + kh] = 1.0
            for wo in range(WO):
                for kw in range(k):
                    wcol = wo * stride + kw
                    m[kh, wcol * C:(wcol + 1) * C,
                      wo * Cout:(wo + 1) * Cout] = wgt[kh, kw]
        prep[f"r{idx}"] = jnp.asarray(r_t)
        prep[f"m{idx}"] = jnp.asarray(m)
        prep[f"b{idx}"] = jnp.asarray(np.tile(bia, WO).reshape(1, WO * Cout))
        h, w, c_last = HO, WO, Cout

    # Global average pool as two tiny matmuls (scale folded into row matrix).
    HO3, WO3, C3 = h, w, c_last
    prow = np.zeros((B, B * HO3), np.float32)
    for b in range(B):
        prow[b, b * HO3:(b + 1) * HO3] = 1.0 / float(HO3 * WO3)
    pcol = np.zeros((WO3 * C3, C3), np.float32)
    for wo in range(WO3):
        pcol[wo * C3:(wo + 1) * C3, :] = np.eye(C3, dtype=np.float32)
    prep["prow"] = jnp.asarray(prow)
    prep["pcol"] = jnp.asarray(pcol)

    # Embedding layer.
    prep["we"] = jnp.asarray(params["embed_w"], jnp.float32)
    prep["be"] = jnp.asarray(params["embed_b"], jnp.float32).reshape(1, -1)

    # Twin heads fused to 128-lane matmuls.
    w10 = np.asarray(params["w10"], np.float32)
    w20 = np.asarray(params["w20"], np.float32)
    wa = np.concatenate([w10, w20], axis=1)            # (52, 128)
    n_embed = np.asarray(params["embed_b"]).shape[0]   # 16
    prep["wa1"] = jnp.asarray(wa[:C3])                 # rows for pooled conv feats
    prep["wa2"] = jnp.asarray(wa[C3:C3 + n_embed])     # rows for goal embedding
    prep["wa3"] = jnp.asarray(wa[C3 + n_embed:])       # rows for next_action
    prep["ba"] = jnp.asarray(np.concatenate(
        [np.asarray(params["b10"]), np.asarray(params["b20"])]
    ).reshape(1, -1).astype(np.float32))

    w11 = np.asarray(params["w11"], np.float32)
    w21 = np.asarray(params["w21"], np.float32)
    n1 = w11.shape[0]
    wb = np.zeros((2 * n1, 2 * n1), np.float32)
    wb[:n1, :n1] = w11
    wb[n1:, n1:] = w21
    prep["wb"] = jnp.asarray(wb)
    prep["bb"] = jnp.asarray(np.concatenate(
        [np.asarray(params["b11"]), np.asarray(params["b21"])]
    ).reshape(1, -1).astype(np.float32))

    wc = np.zeros((2 * n1, 2), np.float32)
    wc[:n1, 0] = np.asarray(params["w1"], np.float32)[:, 0]
    wc[n1:, 1] = np.asarray(params["w2"], np.float32)[:, 0]
    prep["wc"] = jnp.asarray(wc)
    prep["bc"] = jnp.asarray(np.array(
        [[float(np.asarray(params["b1"])[0]), float(np.asarray(params["b2"])[0])]],
        np.float32))
    return prep


# ----------------------------------------------------------------------------
# Pure-JAX reference (uses the raw, untransformed parameters).
# ----------------------------------------------------------------------------
def ref_forward(params, current_state, goal_state, next_action):
    x = current_state
    for name in ("conv1", "conv2", "conv3"):
        w = params[name + "_w"]
        b = params[name + "_b"]
        s = CONV_STRIDES[name]
        x = jax.lax.conv_general_dilated(
            x, w, (s, s), "VALID",
            dimension_numbers=("NHWC", "HWIO", "NHWC")) + b
        x = jnp.maximum(x, 0.0)
    x1 = jnp.mean(x, axis=(1, 2))
    x2 = jnp.maximum(goal_state @ params["embed_w"] + params["embed_b"], 0.0)
    feat = jnp.concatenate([x1, x2, next_action], axis=1)

    def mlp(z, wa, ba, wb, bb, wc, bc):
        h = jnp.maximum(z @ wa + ba, 0.0)
        h = jnp.maximum(h @ wb + bb, 0.0)
        return h @ wc + bc

    q1 = mlp(feat, params["w10"], params["b10"], params["w11"], params["b11"],
             params["w1"], params["b1"])
    q2 = mlp(feat, params["w20"], params["b20"], params["w21"], params["b21"],
             params["w2"], params["b2"])
    return q1, q2


# ----------------------------------------------------------------------------
# Deterministic synthetic parameters (no checkpoint loading).
# ----------------------------------------------------------------------------
def init_params(key):
    # network_config['value']:
    #   conv1 = (4, 8, 4, 2), conv2 = (8, 16, 3, 2), conv3 = (16, 32, 2, 1)
    #   embed_layer = 16, nb_pstate = 6, nb_actions = 4
    #   feature dim = 32 + 16 + 4 = 52
    #   relu_fc10/20 = (52, 64), relu_fc11/21 = (64, 64), fc1/fc2 = (64, 1)
    shapes = {
        "conv1_w": (4, 4, 4, 8),   "conv1_b": (8,),
        "conv2_w": (3, 3, 8, 16),  "conv2_b": (16,),
        "conv3_w": (2, 2, 16, 32), "conv3_b": (32,),
        "embed_w": (6, 16),        "embed_b": (16,),
        "w10": (52, 64), "b10": (64,),
        "w11": (64, 64), "b11": (64,),
        "w1":  (64, 1),  "b1":  (1,),
        "w20": (52, 64), "b20": (64,),
        "w21": (64, 64), "b21": (64,),
        "w2":  (64, 1),  "b2":  (1,),
    }
    params = {}
    keys = jax.random.split(key, len(shapes))
    for (name, shp), k in zip(sorted(shapes.items()), keys):
        params[name] = jax.random.uniform(
            k, shp, dtype=jnp.float32, minval=-0.1, maxval=0.1)
    return params


if __name__ == "__main__":
    key = jax.random.PRNGKey(0)
    k_par, k_cs, k_gs, k_act = jax.random.split(key, 4)

    params = init_params(k_par)

    B, H, W, C_IN = 2, 16, 16, 4   # PyTorch NCHW (2, 4, 16, 16) -> NHWC here
    NB_PSTATE, NB_ACTIONS = 6, 4

    current_state = jax.random.normal(k_cs, (B, H, W, C_IN), dtype=jnp.float32)
    goal_state = jax.random.normal(k_gs, (B, NB_PSTATE), dtype=jnp.float32)
    next_action = jax.random.normal(k_act, (B, NB_ACTIONS), dtype=jnp.float32)

    prep = prepare_params(params, B, H, W)   # one-time host-side weight prep

    fwd = jax.jit(value_forward)
    q1, q2 = fwd(prep, current_state, goal_state, next_action)
    jax.block_until_ready((q1, q2))

    q1_ref, q2_ref = ref_forward(params, current_state, goal_state, next_action)
    np.testing.assert_allclose(np.asarray(q1), np.asarray(q1_ref), rtol=2e-4, atol=2e-4)
    np.testing.assert_allclose(np.asarray(q2), np.asarray(q2_ref), rtol=2e-4, atol=2e-4)

    print("KERNEL_OK")
</pallas_src>

<mosaic_0001>
module attributes {stable_mosaic.version = 11 : i64} {
  func.func @_value_fwd_kernel(%arg0: memref<32x64xf32, #tpu.memory_space<vmem>>, %arg1: memref<2x6xf32, #tpu.memory_space<vmem>>, %arg2: memref<2x4xf32, #tpu.memory_space<vmem>>, %arg3: memref<4x14x32xf32, #tpu.memory_space<vmem>>, %arg4: memref<4x64x56xf32, #tpu.memory_space<vmem>>, %arg5: memref<1x56xf32, #tpu.memory_space<vmem>>, %arg6: memref<3x6x14xf32, #tpu.memory_space<vmem>>, %arg7: memref<3x56x48xf32, #tpu.memory_space<vmem>>, %arg8: memref<1x48xf32, #tpu.memory_space<vmem>>, %arg9: memref<2x4x6xf32, #tpu.memory_space<vmem>>, %arg10: memref<2x48x64xf32, #tpu.memory_space<vmem>>, %arg11: memref<1x64xf32, #tpu.memory_space<vmem>>, %arg12: memref<2x4xf32, #tpu.memory_space<vmem>>, %arg13: memref<64x32xf32, #tpu.memory_space<vmem>>, %arg14: memref<6x16xf32, #tpu.memory_space<vmem>>, %arg15: memref<1x16xf32, #tpu.memory_space<vmem>>, %arg16: memref<32x128xf32, #tpu.memory_space<vmem>>, %arg17: memref<16x128xf32, #tpu.memory_space<vmem>>, %arg18: memref<4x128xf32, #tpu.memory_space<vmem>>, %arg19: memref<1x128xf32, #tpu.memory_space<vmem>>, %arg20: memref<128x128xf32, #tpu.memory_space<vmem>>, %arg21: memref<1x128xf32, #tpu.memory_space<vmem>>, %arg22: memref<128x2xf32, #tpu.memory_space<vmem>>, %arg23: memref<1x2xf32, #tpu.memory_space<vmem>>, %arg24: memref<2x2xf32, #tpu.memory_space<vmem>>) attributes {dimension_semantics = [], scalar_prefetch = 0 : i64, scratch_operands = 0 : i64, tpu.core_type = #tpu.core_type<tc>} {
    %c0 = arith.constant 0 : index
    %c0_0 = arith.constant 0 : index
    %0 = vector.load %arg0[%c0, %c0_0] : memref<32x64xf32, #tpu.memory_space<vmem>>, vector<32x64xf32>
    %c0_1 = arith.constant 0 : index
    %c0_2 = arith.constant 0 : index
    %c0_3 = arith.constant 0 : index
    %1 = vector.load %arg3[%c0_1, %c0_2, %c0_3] : memref<4x14x32xf32, #tpu.memory_space<vmem>>, vector<1x14x32xf32>
    %2 = vector.shape_cast %1 : vector<1x14x32xf32> to vector<14x32xf32>
    %cst = arith.constant dense<0.000000e+00> : vector<14x64xf32>
    %3 = tpu.matmul %2, %0, %cst {dimension_numbers = #tpu.dot_dimension_numbers<[1], [0], [0], [1], [0, 0, 1, 1], [], []>, precision = #tpu.contract_precision<fp32>} : vector<14x32xf32>, vector<32x64xf32>, vector<14x64xf32> -> vector<14x64xf32>
    %c0_4 = arith.constant 0 : index
    %c0_5 = arith.constant 0 : index
    %c0_6 = arith.constant 0 : index
    %4 = vector.load %arg4[%c0_4, %c0_5, %c0_6] : memref<4x64x56xf32, #tpu.memory_space<vmem>>, vector<1x64x56xf32>
    %5 = vector.shape_cast %4 : vector<1x64x56xf32> to vector<64x56xf32>
    %cst_7 = arith.constant dense<0.000000e+00> : vector<14x56xf32>
    %6 = tpu.matmul %3, %5, %cst_7 {dimension_numbers = #tpu.dot_dimension_numbers<[1], [0], [0], [1], [0, 0, 1, 1], [], []>, precision = #tpu.contract_precision<fp32>} : vector<14x64xf32>, vector<64x56xf32>, vector<14x56xf32> -> vector<14x56xf32>
    %c1 = arith.constant 1 : index
    %c0_8 = arith.constant 0 : index
    %c0_9 = arith.constant 0 : index
    %7 = vector.load %arg3[%c1, %c0_8, %c0_9] : memref<4x14x32xf32, #tpu.memory_space<vmem>>, vector<1x14x32xf32>
    %8 = vector.shape_cast %7 : vector<1x14x32xf32> to vector<14x32xf32>
    %cst_10 = arith.constant dense<0.000000e+00> : vector<14x64xf32>
    %9 = tpu.matmul %8, %0, %cst_10 {dimension_numbers = #tpu.dot_dimension_numbers<[1], [0], [0], [1], [0, 0, 1, 1], [], []>, precision = #tpu.contract_precision<fp32>} : vector<14x32xf32>, vector<32x64xf32>, vector<14x64xf32> -> vector<14x64xf32>
    %c1_11 = arith.constant 1 : index
    %c0_12 = arith.constant 0 : index
    %c0_13 = arith.constant 0 : index
    %10 = vector.load %arg4[%c1_11, %c0_12, %c0_13] : memref<4x64x56xf32, #tpu.memory_space<vmem>>, vector<1x64x56xf32>
    %11 = vector.shape_cast %10 : vector<1x64x56xf32> to vector<64x56xf32>
    %cst_14 = arith.constant dense<0.000000e+00> : vector<14x56xf32>
    %12 = tpu.matmul %9, %11, %cst_14 {dimension_numbers = #tpu.dot_dimension_numbers<[1], [0], [0], [1], [0, 0, 1, 1], [], []>, precision = #tpu.contract_precision<fp32>} : vector<14x64xf32>, vector<64x56xf32>, vector<14x56xf32> -> vector<14x56xf32>
    %13 = arith.addf %6, %12 : vector<14x56xf32>
    %c2 = arith.constant 2 : index
    %c0_15 = arith.constant 0 : index
    %c0_16 = arith.constant 0 : index
    %14 = vector.load %arg3[%c2, %c0_15, %c0_16] : memref<4x14x32xf32, #tpu.memory_space<vmem>>, vector<1x14x32xf32>
    %15 = vector.shape_cast %14 : vector<1x14x32xf32> to vector<14x32xf32>
    %cst_17 = arith.constant dense<0.000000e+00> : vector<14x64xf32>
    %16 = tpu.matmul %15, %0, %cst_17 {dimension_numbers = #tpu.dot_dimension_numbers<[1], [0], [0], [1], [0, 0, 1, 1], [], []>, precision = #tpu.contract_precision<fp32>} : vector<14x32xf32>, vector<32x64xf32>, vector<14x64xf32> -> vector<14x64xf32>
    %c2_18 = arith.constant 2 : index
    %c0_19 = arith.constant 0 : index
    %c0_20 = arith.constant 0 : index
    %17 = vector.load %arg4[%c2_18, %c0_19, %c0_20] : memref<4x64x56xf32, #tpu.memory_space<vmem>>, vector<1x64x56xf32>
    %18 = vector.shape_cast %17 : vector<1x64x56xf32> to vector<64x56xf32>
    %cst_21 = arith.constant dense<0.000000e+00> : vector<14x56xf32>
    %19 = tpu.matmul %16, %18, %cst_21 {dimension_numbers = #tpu.dot_dimension_numbers<[1], [0], [0], [1], [0, 0, 1, 1], [], []>, precision = #tpu.contract_precision<fp32>} : vector<14x64xf32>, vector<64x56xf32>, vector<14x56xf32> -> vector<14x56xf32>
    %20 = arith.addf %13, %19 : vector<14x56xf32>
    %c3 = arith.constant 3 : index
    %c0_22 = arith.constant 0 : index
    %c0_23 = arith.constant 0 : index
    %21 = vector.load %arg3[%c3, %c0_22, %c0_23] : memref<4x14x32xf32, #tpu.memory_space<vmem>>, vector<1x14x32xf32>
    %22 = vector.shape_cast %21 : vector<1x14x32xf32> to vector<14x32xf32>
    %cst_24 = arith.constant dense<0.000000e+00> : vector<14x64xf32>
    %23 = tpu.matmul %22, %0, %cst_24 {dimension_numbers = #tpu.dot_dimension_numbers<[1], [0], [0], [1], [0, 0, 1, 1], [], []>, precision = #tpu.contract_precision<fp32>} : vector<14x32xf32>, vector<32x64xf32>, vector<14x64xf32> -> vector<14x64xf32>
    %c3_25 = arith.constant 3 : index
    %c0_26 = arith.constant 0 : index
    %c0_27 = arith.constant 0 : index
    %24 = vector.load %arg4[%c3_25, %c0_26, %c0_27] : memref<4x64x56xf32, #tpu.memory_space<vmem>>, vector<1x64x56xf32>
    %25 = vector.shape_cast %24 : vector<1x64x56xf32> to vector<64x56xf32>
    %cst_28 = arith.constant dense<0.000000e+00> : vector<14x56xf32>
    %26 = tpu.matmul %23, %25, %cst_28 {dimension_numbers = #tpu.dot_dimension_numbers<[1], [0], [0], [1], [0, 0, 1, 1], [], []>, precision = #tpu.contract_precision<fp32>} : vector<14x64xf32>, vector<64x56xf32>, vector<14x56xf32> -> vector<14x56xf32>
    %27 = arith.addf %20, %26 : vector<14x56xf32>
    %c0_29 = arith.constant 0 : index
    %c0_30 = arith.constant 0 : index
    %28 = vector.load %arg5[%c0_29, %c0_30] : memref<1x56xf32, #tpu.memory_space<vmem>>, vector<1x56xf32>
    %29 = vector.broadcast %28 : vector<1x56xf32> to vector<14x56xf32>
    %30 = arith.addf %27, %29 : vector<14x56xf32>
    %cst_31 = arith.constant 0.000000e+00 : f32
    %31 = vector.broadcast %cst_31 : f32 to vector<14x56xf32>
    %32 = arith.maximumf %30, %31 : vector<14x56xf32>
    %c0_32 = arith.constant 0 : index
    %c0_33 = arith.constant 0 : index
    %c0_34 = arith.constant 0 : index
    %33 = vector.load %arg6[%c0_32, %c0_33, %c0_34] : memref<3x6x14xf32, #tpu.memory_space<vmem>>, vector<1x6x14xf32>
    %34 = vector.shape_cast %33 : vector<1x6x14xf32> to vector<6x14xf32>
    %cst_35 = arith.constant dense<0.000000e+00> : vector<6x56xf32>
    %35 = tpu.matmul %34, %32, %cst_35 {dimension_numbers = #tpu.dot_dimension_numbers<[1], [0], [0], [1], [0, 0, 1, 1], [], []>, precision = #tpu.contract_precision<fp32>} : vector<6x14xf32>, vector<14x56xf32>, vector<6x56xf32> -> vector<6x56xf32>
    %c0_36 = arith.constant 0 : index
    %c0_37 = arith.constant 0 : index
    %c0_38 = arith.constant 0 : index
    %36 = vector.load %arg7[%c0_36, %c0_37, %c0_38] : memref<3x56x48xf32, #tpu.memory_space<vmem>>, vector<1x56x48xf32>
    %37 = vector.shape_cast %36 : vector<1x56x48xf32> to vector<56x48xf32>
    %cst_39 = arith.constant dense<0.000000e+00> : vector<6x48xf32>
    %38 = tpu.matmul %35, %37, %cst_39 {dimension_numbers = #tpu.dot_dimension_numbers<[1], [0], [0], [1], [0, 0, 1, 1], [], []>, precision = #tpu.contract_precision<fp32>} : vector<6x56xf32>, vector<56x48xf32>, vector<6x48xf32> -> vector<6x48xf32>
    %c1_40 = arith.constant 1 : index
    %c0_41 = arith.constant 0 : index
    %c0_42 = arith.constant 0 : index
    %39 = vector.load %arg6[%c1_40, %c0_41, %c0_42] : memref<3x6x14xf32, #tpu.memory_space<vmem>>, vector<1x6x14xf32>
    %40 = vector.shape_cast %39 : vector<1x6x14xf32> to vector<6x14xf32>
    %cst_43 = arith.constant dense<0.000000e+00> : vector<6x56xf32>
    %41 = tpu.matmul %40, %32, %cst_43 {dimension_numbers = #tpu.dot_dimension_numbers<[1], [0], [0], [1], [0, 0, 1, 1], [], []>, precision = #tpu.contract_precision<fp32>} : vector<6x14xf32>, vector<14x56xf32>, vector<6x56xf32> -> vector<6x56xf32>
    %c1_44 = arith.constant 1 : index
    %c0_45 = arith.constant 0 : index
    %c0_46 = arith.constant 0 : index
    %42 = vector.load %arg7[%c1_44, %c0_45, %c0_46] : memref<3x56x48xf32, #tpu.memory_space<vmem>>, vector<1x56x48xf32>
    %43 = vector.shape_cast %42 : vector<1x56x48xf32> to vector<56x48xf32>
    %cst_47 = arith.constant dense<0.000000e+00> : vector<6x48xf32>
    %44 = tpu.matmul %41, %43, %cst_47 {dimension_numbers = #tpu.dot_dimension_numbers<[1], [0], [0], [1], [0, 0, 1, 1], [], []>, precision = #tpu.contract_precision<fp32>} : vector<6x56xf32>, vector<56x48xf32>, vector<6x48xf32> -> vector<6x48xf32>
    %45 = arith.addf %38, %44 : vector<6x48xf32>
    %c2_48 = arith.constant 2 : index
    %c0_49 = arith.constant 0 : index
    %c0_50 = arith.constant 0 : index
    %46 = vector.load %arg6[%c2_48, %c0_49, %c0_50] : memref<3x6x14xf32, #tpu.memory_space<vmem>>, vector<1x6x14xf32>
    %47 = vector.shape_cast %46 : vector<1x6x14xf32> to vector<6x14xf32>
    %cst_51 = arith.constant dense<0.000000e+00> : vector<6x56xf32>
    %48 = tpu.matmul %47, %32, %cst_51 {dimension_numbers = #tpu.dot_dimension_numbers<[1], [0], [0], [1], [0, 0, 1, 1], [], []>, precision = #tpu.contract_precision<fp32>} : vector<6x14xf32>, vector<14x56xf32>, vector<6x56xf32> -> vector<6x56xf32>
    %c2_52 = arith.constant 2 : index
    %c0_53 = arith.constant 0 : index
    %c0_54 = arith.constant 0 : index
    %49 = vector.load %arg7[%c2_52, %c0_53, %c0_54] : memref<3x56x48xf32, #tpu.memory_space<vmem>>, vector<1x56x48xf32>
    %50 = vector.shape_cast %49 : vector<1x56x48xf32> to vector<56x48xf32>
    %cst_55 = arith.constant dense<0.000000e+00> : vector<6x48xf32>
    %51 = tpu.matmul %48, %50, %cst_55 {dimension_numbers = #tpu.dot_dimension_numbers<[1], [0], [0], [1], [0, 0, 1, 1], [], []>, precision = #tpu.contract_precision<fp32>} : vector<6x56xf32>, vector<56x48xf32>, vector<6x48xf32> -> vector<6x48xf32>
    %52 = arith.addf %45, %51 : vector<6x48xf32>
    %c0_56 = arith.constant 0 : index
    %c0_57 = arith.constant 0 : index
    %53 = vector.load %arg8[%c0_56, %c0_57] : memref<1x48xf32, #tpu.memory_space<vmem>>, vector<1x48xf32>
    %54 = vector.broadcast %53 : vector<1x48xf32> to vector<6x48xf32>
    %55 = arith.addf %52, %54 : vector<6x48xf32>
    %cst_58 = arith.constant 0.000000e+00 : f32
    %56 = vector.broadcast %cst_58 : f32 to vector<6x48xf32>
    %57 = arith.maximumf %55, %56 : vector<6x48xf32>
    %c0_59 = arith.constant 0 : index
    %c0_60 = arith.constant 0 : index
    %c0_61 = arith.constant 0 : index
    %58 = vector.load %arg9[%c0_59, %c0_60, %c0_61] : memref<2x4x6xf32, #tpu.memory_space<vmem>>, vector<1x4x6xf32>
    %59 = vector.shape_cast %58 : vector<1x4x6xf32> to vector<4x6xf32>
    %cst_62 = arith.constant dense<0.000000e+00> : vector<4x48xf32>
    %60 = tpu.matmul %59, %57, %cst_62 {dimension_numbers = #tpu.dot_dimension_numbers<[1], [0], [0], [1], [0, 0, 1, 1], [], []>, precision = #tpu.contract_precision<fp32>} : vector<4x6xf32>, vector<6x48xf32>, vector<4x48xf32> -> vector<4x48xf32>
    %c0_63 = arith.constant 0 : index
    %c0_64 = arith.constant 0 : index
    %c0_65 = arith.constant 0 : index
    %61 = vector.load %arg10[%c0_63, %c0_64, %c0_65] : memref<2x48x64xf32, #tpu.memory_space<vmem>>, vector<1x48x64xf32>
    %62 = vector.shape_cast %61 : vector<1x48x64xf32> to vector<48x64xf32>
    %cst_66 = arith.constant dense<0.000000e+00> : vector<4x64xf32>
    %63 = tpu.matmul %60, %62, %cst_66 {dimension_numbers = #tpu.dot_dimension_numbers<[1], [0], [0], [1], [0, 0, 1, 1], [], []>, precision = #tpu.contract_precision<fp32>} : vector<4x48xf32>, vector<48x64xf32>, vector<4x64xf32> -> vector<4x64xf32>
    %c1_67 = arith.constant 1 : index
    %c0_68 = arith.constant 0 : index
    %c0_69 = arith.constant 0 : index
    %64 = vector.load %arg9[%c1_67, %c0_68, %c0_69] : memref<2x4x6xf32, #tpu.memory_space<vmem>>, vector<1x4x6xf32>
    %65 = vector.shape_cast %64 : vector<1x4x6xf32> to vector<4x6xf32>
    %cst_70 = arith.constant dense<0.000000e+00> : vector<4x48xf32>
    %66 = tpu.matmul %65, %57, %cst_70 {dimension_numbers = #tpu.dot_dimension_numbers<[1], [0], [0], [1], [0, 0, 1, 1], [], []>, precision = #tpu.contract_precision<fp32>} : vector<4x6xf32>, vector<6x48xf32>, vector<4x48xf32> -> vector<4x48xf32>
    %c1_71 = arith.constant 1 : index
    %c0_72 = arith.constant 0 : index
    %c0_73 = arith.constant 0 : index
    %67 = vector.load %arg10[%c1_71, %c0_72, %c0_73] : memref<2x48x64xf32, #tpu.memory_space<vmem>>, vector<1x48x64xf32>
    %68 = vector.shape_cast %67 : vector<1x48x64xf32> to vector<48x64xf32>
    %cst_74 = arith.constant dense<0.000000e+00> : vector<4x64xf32>
    %69 = tpu.matmul %66, %68, %cst_74 {dimension_numbers = #tpu.dot_dimension_numbers<[1], [0], [0], [1], [0, 0, 1, 1], [], []>, precision = #tpu.contract_precision<fp32>} : vector<4x48xf32>, vector<48x64xf32>, vector<4x64xf32> -> vector<4x64xf32>
    %70 = arith.addf %63, %69 : vector<4x64xf32>
    %c0_75 = arith.constant 0 : index
    %c0_76 = arith.constant 0 : index
    %71 = vector.load %arg11[%c0_75, %c0_76] : memref<1x64xf32, #tpu.memory_space<vmem>>, vector<1x64xf32>
    %72 = vector.broadcast %71 : vector<1x64xf32> to vector<4x64xf32>
    %73 = arith.addf %70, %72 : vector<4x64xf32>
    %cst_77 = arith.constant 0.000000e+00 : f32
    %74 = vector.broadcast %cst_77 : f32 to vector<4x64xf32>
    %75 = arith.maximumf %73, %74 : vector<4x64xf32>
    %c0_78 = arith.constant 0 : index
    %c0_79 = arith.constant 0 : index
    %76 = vector.load %arg12[%c0_78, %c0_79] : memref<2x4xf32, #tpu.memory_space<vmem>>, vector<2x4xf32>
    %cst_80 = arith.constant dense<0.000000e+00> : vector<2x64xf32>
    %77 = tpu.matmul %76, %75, %cst_80 {dimension_numbers = #tpu.dot_dimension_numbers<[1], [0], [0], [1], [0, 0, 1, 1], [], []>, precision = #tpu.contract_precision<fp32>} : vector<2x4xf32>, vector<4x64xf32>, vector<2x64xf32> -> vector<2x64xf32>
    %c0_81 = arith.constant 0 : index
    %c0_82 = arith.constant 0 : index
    %78 = vector.load %arg13[%c0_81, %c0_82] : memref<64x32xf32, #tpu.memory_space<vmem>>, vector<64x32xf32>
    %cst_83 = arith.constant dense<0.000000e+00> : vector<2x32xf32>
    %79 = tpu.matmul %77, %78, %cst_83 {dimension_numbers = #tpu.dot_dimension_numbers<[1], [0], [0], [1], [0, 0, 1, 1], [], []>, precision = #tpu.contract_precision<fp32>} : vector<2x64xf32>, vector<64x32xf32>, vector<2x32xf32> -> vector<2x32xf32>
    %c0_84 = arith.constant 0 : index
    %c0_85 = arith.constant 0 : index
    %80 = vector.load %arg1[%c0_84, %c0_85] : memref<2x6xf32, #tpu.memory_space<vmem>>, vector<2x6xf32>
    %c0_86 = arith.constant 0 : index
    %c0_87 = arith.constant 0 : index
    %81 = vector.load %arg14[%c0_86, %c0_87] : memref<6x16xf32, #tpu.memory_space<vmem>>, vector<6x16xf32>
    %cst_88 = arith.constant dense<0.000000e+00> : vector<2x16xf32>
    %82 = tpu.matmul %80, %81, %cst_88 {dimension_numbers = #tpu.dot_dimension_numbers<[1], [0], [0], [1], [0, 0, 1, 1], [], []>, precision = #tpu.contract_precision<fp32>} : vector<2x6xf32>, vector<6x16xf32>, vector<2x16xf32> -> vector<2x16xf32>
    %c0_89 = arith.constant 0 : index
    %c0_90 = arith.constant 0 : index
    %83 = vector.load %arg15[%c0_89, %c0_90] : memref<1x16xf32, #tpu.memory_space<vmem>>, vector<1x16xf32>
    %84 = vector.broadcast %83 : vector<1x16xf32> to vector<2x16xf32>
    %85 = arith.addf %82, %84 : vector<2x16xf32>
    %cst_91 = arith.constant 0.000000e+00 : f32
    %86 = vector.broadcast %cst_91 : f32 to vector<2x16xf32>
    %87 = arith.maximumf %85, %86 : vector<2x16xf32>
    %c0_92 = arith.constant 0 : index
    %c0_93 = arith.constant 0 : index
    %88 = vector.load %arg16[%c0_92, %c0_93] : memref<32x128xf32, #tpu.memory_space<vmem>>, vector<32x128xf32>
    %cst_94 = arith.constant dense<0.000000e+00> : vector<2x128xf32>
    %89 = tpu.matmul %79, %88, %cst_94 {dimension_numbers = #tpu.dot_dimension_numbers<[1], [0], [0], [1], [0, 0, 1, 1], [], []>, precision = #tpu.contract_precision<fp32>} : vector<2x32xf32>, vector<32x128xf32>, vector<2x128xf32> -> vector<2x128xf32>
    %c0_95 = arith.constant 0 : index
    %c0_96 = arith.constant 0 : index
    %90 = vector.load %arg17[%c0_95, %c0_96] : memref<16x128xf32, #tpu.memory_space<vmem>>, vector<16x128xf32>
    %cst_97 = arith.constant dense<0.000000e+00> : vector<2x128xf32>
    %91 = tpu.matmul %87, %90, %cst_97 {dimension_numbers = #tpu.dot_dimension_numbers<[1], [0], [0], [1], [0, 0, 1, 1], [], []>, precision = #tpu.contract_precision<fp32>} : vector<2x16xf32>, vector<16x128xf32>, vector<2x128xf32> -> vector<2x128xf32>
    %92 = arith.addf %89, %91 : vector<2x128xf32>
    %c0_98 = arith.constant 0 : index
    %c0_99 = arith.constant 0 : index
    %93 = vector.load %arg2[%c0_98, %c0_99] : memref<2x4xf32, #tpu.memory_space<vmem>>, vector<2x4xf32>
    %c0_100 = arith.constant 0 : index
    %c0_101 = arith.constant 0 : index
    %94 = vector.load %arg18[%c0_100, %c0_101] : memref<4x128xf32, #tpu.memory_space<vmem>>, vector<4x128xf32>
    %cst_102 = arith.constant dense<0.000000e+00> : vector<2x128xf32>
    %95 = tpu.matmul %93, %94, %cst_102 {dimension_numbers = #tpu.dot_dimension_numbers<[1], [0], [0], [1], [0, 0, 1, 1], [], []>, precision = #tpu.contract_precision<fp32>} : vector<2x4xf32>, vector<4x128xf32>, vector<2x128xf32> -> vector<2x128xf32>
    %96 = arith.addf %92, %95 : vector<2x128xf32>
    %c0_103 = arith.constant 0 : index
    %c0_104 = arith.constant 0 : index
    %97 = vector.load %arg19[%c0_103, %c0_104] : memref<1x128xf32, #tpu.memory_space<vmem>>, vector<1x128xf32>
    %98 = vector.broadcast %97 : vector<1x128xf32> to vector<2x128xf32>
    %99 = arith.addf %96, %98 : vector<2x128xf32>
    %cst_105 = arith.constant 0.000000e+00 : f32
    %100 = vector.broadcast %cst_105 : f32 to vector<2x128xf32>
    %101 = arith.maximumf %99, %100 : vector<2x128xf32>
    %c0_106 = arith.constant 0 : index
    %c0_107 = arith.constant 0 : index
    %102 = vector.load %arg20[%c0_106, %c0_107] : memref<128x128xf32, #tpu.memory_space<vmem>>, vector<128x128xf32>
    %cst_108 = arith.constant dense<0.000000e+00> : vector<2x128xf32>
    %103 = tpu.matmul %101, %102, %cst_108 {dimension_numbers = #tpu.dot_dimension_numbers<[1], [0], [0], [1], [0, 0, 1, 1], [], []>, precision = #tpu.contract_precision<fp32>} : vector<2x128xf32>, vector<128x128xf32>, vector<2x128xf32> -> vector<2x128xf32>
    %c0_109 = arith.constant 0 : index
    %c0_110 = arith.constant 0 : index
    %104 = vector.load %arg21[%c0_109, %c0_110] : memref<1x128xf32, #tpu.memory_space<vmem>>, vector<1x128xf32>
    %105 = vector.broadcast %104 : vector<1x128xf32> to vector<2x128xf32>
    %106 = arith.addf %103, %105 : vector<2x128xf32>
    %cst_111 = arith.constant 0.000000e+00 : f32
    %107 = vector.broadcast %cst_111 : f32 to vector<2x128xf32>
    %108 = arith.maximumf %106, %107 : vector<2x128xf32>
    %c0_112 = arith.constant 0 : index
    %c0_113 = arith.constant 0 : index
    %109 = vector.load %arg22[%c0_112, %c0_113] : memref<128x2xf32, #tpu.memory_space<vmem>>, vector<128x2xf32>
    %cst_114 = arith.constant dense<0.000000e+00> : vector<2x2xf32>
    %110 = tpu.matmul %108, %109, %cst_114 {dimension_numbers = #tpu.dot_dimension_numbers<[1], [0], [0], [1], [0, 0, 1, 1], [], []>, precision = #tpu.contract_precision<fp32>} : vector<2x128xf32>, vector<128x2xf32>, vector<2x2xf32> -> vector<2x2xf32>
    %c0_115 = arith.constant 0 : index
    %c0_116 = arith.constant 0 : index
    %111 = vector.load %arg23[%c0_115, %c0_116] : memref<1x2xf32, #tpu.memory_space<vmem>>, vector<1x2xf32>
    %112 = vector.broadcast %111 : vector<1x2xf32> to vector<2x2xf32>
    %113 = arith.addf %110, %112 : vector<2x2xf32>
    %c0_117 = arith.constant 0 : index
    %c0_118 = arith.constant 0 : index
    %114 = vector.load %arg24[%c0_117, %c0_118] : memref<2x2xf32, #tpu.memory_space<vmem>>, vector<2x2xf32>
    tpu.vector_store %arg24[%c0_117, %c0_118], %113 {strides = array<i32>} : memref<2x2xf32, #tpu.memory_space<vmem>>, vector<2x2xf32>,
    return
  }
}

</mosaic_0001>

<bundles_post_ra>
// kernel: value_forward.1
= control target key start
LH: loop header
LB: loop body
LE: loop exit
PB: predicated region body
PF: predicated region fallthrough
CT: control target
= control target key end

     0   :  { %vm83_vm0 = vcmask 261120   ;;  %vm1172_vm1 = vcmask 523264   ;;  %vm17031_vm2 = vmmov 0   ;;  %vm4625_vm3 = vcmask 113664   ;;  %s20843_s0 = inlined_call_operand.vmem [shape: f32[32,64], index: 0, kind: input, shape index: {}]   ;;  %s20844_s3 = inlined_call_operand.vmem [shape: f32[4,14,32], index: 3, kind: input, shape index: {}]   ;;  %s20845_s4 = inlined_call_operand.vmem [shape: f32[4,64,56], index: 4, kind: input, shape index: {}]   ;;  %s20846_s6 = inlined_call_operand.vmem [shape: f32[3,6,14], index: 6, kind: input, shape index: {}]   ;;  %s20847_s5 = inlined_call_operand.vmem [shape: f32[1,56], index: 5, kind: input, shape index: {}]   ;;  %s20848_s7 = inlined_call_operand.vmem [shape: f32[3,56,48], index: 7, kind: input, shape index: {}]   ;;  %s20849_s9 = inlined_call_operand.vmem [shape: f32[2,4,6], index: 9, kind: input, shape index: {}]   ;;  %s20850_s8 = inlined_call_operand.vmem [shape: f32[1,48], index: 8, kind: input, shape index: {}]   ;;  %s20851_s10 = inlined_call_operand.vmem [shape: f32[2,48,64], index: 10, kind: input, shape index: {}]   ;;  %s20852_s12 = inlined_call_operand.vmem [shape: f32[2,4], index: 12, kind: input, shape index: {}]   ;;  %s20853_s11 = inlined_call_operand.vmem [shape: f32[1,64], index: 11, kind: input, shape index: {}]   ;;  %s20854_s13 = inlined_call_operand.vmem [shape: f32[64,32], index: 13, kind: input, shape index: {}]   ;;  %s20855_s14 = inlined_call_operand.vmem [shape: f32[6,16], index: 14, kind: input, shape index: {}]   ;;  %s20856_s1 = inlined_call_operand.vmem [shape: f32[2,6], index: 1, kind: input, shape index: {}]   ;;  %s20857_s17 = inlined_call_operand.vmem [shape: f32[16,128], index: 17, kind: input, shape index: {}]   ;;  %s20858_s15 = inlined_call_operand.vmem [shape: f32[1,16], index: 15, kind: input, shape index: {}]   ;;  %s20859_s16 = inlined_call_operand.vmem [shape: f32[32,128], index: 16, kind: input, shape index: {}]   ;;  %s20860_s18 = inlined_call_operand.vmem [shape: f32[4,128], index: 18, kind: input, shape index: {}]   ;;  %s20861_s2 = inlined_call_operand.vmem [shape: f32[2,4], index: 2, kind: input, shape index: {}]   ;;  %s20862_s20 = inlined_call_operand.vmem [shape: f32[128,128], index: 20, kind: input, shape index: {}]   ;;  %s20863_s19 = inlined_call_operand.vmem [shape: f32[1,128], index: 19, kind: input, shape index: {}]   ;;  %s20864_s22 = inlined_call_operand.vmem [shape: f32[128,2], index: 22, kind: input, shape index: {}]   ;;  %s20865_s21 = inlined_call_operand.vmem [shape: f32[1,128], index: 21, kind: input, shape index: {}]   ;;  %s20866_s23 = inlined_call_operand.vmem [shape: f32[1,2], index: 23, kind: input, shape index: {}]   ;;  %s20867_s24 = inlined_call_operand.vmem [shape: f32[2,2], index: 24, kind: output, shape index: {}]  }
   0x1   :  { %20905 = sst [smem:[#allocation15_spill]] %s20843_s0  ;;  %vm4629_vm4 = vcmask 1045504   ;;  %vm5571_vm5 = vcmask 457728   ;;  %vm7636_vm6 = vcmask 48128   ;;  %vm8553_vm7 = vcmask 392192  }
   0x2   :  { %20906 = sst [smem:[#allocation16_spill]] %s20844_s3  ;;  %vm9592_vm8 = vcmask 31744   ;;  %vm9596_vm9 = vcmask 1043456   ;;  %vm11062_vm10 = vcmask 130048   ;;  %vm13806_vm11 = vcmask 9216  }
   0x3   :  { %20907 = sst [smem:[#allocation17_spill]] %s20845_s4 }
   0x4   :  { %20908 = sst [smem:[#allocation18_spill]] %s20846_s6 }
   0x5   :  { %20909 = sst [smem:[#allocation19_spill]] %s20847_s5 }
   0x6   :  { %20910 = sst [smem:[#allocation20_spill]] %s20848_s7 }
   0x7   :  { %20911 = sst [smem:[#allocation21_spill]] %s20849_s9 }
   0x8   :  { %20912 = sst [smem:[#allocation22_spill]] %s20850_s8 }
   0x9   :  { %20913 = sst [smem:[#allocation23_spill]] %s20851_s10 }
   0xa   :  { %s20914_s27 = sld [smem:[#allocation15_spill]] }
   0xb   :  { %s20915_s25 = sld [smem:[#allocation16_spill]] }
   0xc   :  { %s20922_s4 = sld [smem:[#allocation17_spill]] }
   0xd   :  { %s20951_s6 = sld [smem:[#allocation18_spill]] }
   0xe   :  { %s20956_s3 = sld [smem:[#allocation19_spill]] }
   0xf   :  { %s20957_s9 = sld [smem:[#allocation20_spill]] }
  0x10   :  { %v80_v0 = vld [vmem:[%s20914_s27 + $0x18] sm:$0xff]  ;;  %v79_v1 = vld [vmem:[%s20914_s27 + $0x10] sm:$0xff]  ;;  %v78_v2 = vld [vmem:[%s20914_s27 + $0x8] sm:$0xff]  ;;  %s20959_s5 = sld [smem:[#allocation22_spill]] }
  0x11   :  { %v17166_v3 = vand.u32 4294901760, %v80_v0  ;;  %v17168_v4 = vand.u32 4294901760, %v79_v1  ;;  %v17170_v5 = vand.u32 4294901760, %v78_v2  ;;  %v77_v6 = vld [vmem:[%s20914_s27] sm:$0xff]  ;;  %v82_v10 = vld [vmem:[%s20915_s25 + $0x8] sm:$0x3f] }
  0x12   :  { %v81_v7 = vld [vmem:[%s20915_s25] sm:$0xff]  ;;  %v17178_v8 = vand.u32 4294901760, %v77_v6  ;;  %v88_v14 = vsel %vm83_vm0, %v82_v10, 0  ;;  %v13812_v38 = vld [vmem:[%s20915_s25 + $0x10] sm:$0xff]  ;;  %v13813_v39 = vld [vmem:[%s20915_s25 + $0x18] sm:$0x3f] }
  0x13   :  { %v85_v9 = vsel %vm83_vm0, %v81_v7, 0  ;;  %14904 = vmatprep.subr.mxu0 %v17166_v3  ;;  %v17186_v11 = vsub.f32 %v80_v0, %v17166_v3  ;;  %v17191_v13 = vsub.f32 %v79_v1, %v17168_v4  ;;  %v17195_v15 = vand.u32 4294901760, %v88_v14  ;;  %v13821_v52 = vld [vmem:[%s20922_s4 + $0x78] sm:$0xff]  ;;  %v13820_v54 = vld [vmem:[%s20922_s4 + $0x70] sm:$0xff]  ;;  %v13819_v57 = vld [vmem:[%s20922_s4 + $0x68] sm:$0xff]  ;;  %s20960_s26 = sld [smem:[#allocation23_spill]] }
  0x14   :  { %v17188_v12 = vand.u32 4294901760, %v85_v9  ;;  %14905 = vmatpush3.msra.mxu0 %v17166_v3  ;;  %v17198_v16 = vsub.f32 %v78_v2, %v17170_v5  ;;  %v17201_v17 = vsub.f32 %v77_v6, %v17178_v8  ;;  %v630_v40 = vsel %vm83_vm0, %v13812_v38, 0  ;;  %v13818_v61 = vld [vmem:[%s20922_s4 + $0x60] sm:$0xff]  ;;  %v13817_v2 = vld [vmem:[%s20922_s4 + $0x58] sm:$0xff] }
  0x15   :  { %14906 = vmatprep.subr.mxu0 %v17168_v4  ;;  %v17205_v18 = vand.u32 4294901760, %v17186_v11  ;;  %v17211_v20 = vand.u32 4294901760, %v17191_v13  ;;  %v17216_v21 = vsub.f32 %v88_v14, %v17195_v15  ;;  %v633_v41 = vsel %vm83_vm0, %v13813_v39, 0  ;;  %v13816_v14 = vld [vmem:[%s20922_s4 + $0x50] sm:$0xff] }
  0x16   :  { %20916 = vst [vmem:[#allocation2_spill] sm:$0xff] %v17198_v16  ;;  %20917 = vst [vmem:[#allocation3_spill] sm:$0xff] %v17201_v17  ;;  %v17208_v19 = vsub.f32 %v85_v9, %v17188_v12  ;;  %14923 = vmatprep.mubr.f32.mxu1 %v17188_v12  ;;  %14907 = vmatpush3.msra.mxu0 %v17168_v4  ;;  %v17219_v22 = vand.u32 4294901760, %v17198_v16  ;;  %v17222_v23 = vand.u32 4294901760, %v17201_v17  ;;  %v17277_v42 = vand.u32 4294901760, %v630_v40 }
  0x17   :  { %20918 = vst [vmem:[#allocation4_spill] sm:$0xff] %v17205_v18  ;;  %20919 = vst [vmem:[#allocation5_spill] sm:$0xff] %v17211_v20  ;;  %14908 = vmatprep.subr.mxu0 %v17170_v5  ;;  %v207_v24 = vsub.f32 %v17186_v11, %v17205_v18  ;;  %v214_v26 = vsub.f32 %v17191_v13, %v17211_v20  ;;  %v171_v27 = vand.u32 4294901760, %v17216_v21  ;;  %v17281_v43 = vand.u32 4294901760, %v633_v41 }
  0x18   :  { %20920 = vst [vmem:[#allocation6_spill] sm:$0xff] %v17219_v22  ;;  %20921 = vst [vmem:[#allocation7_spill] sm:$0xff] %v17222_v23  ;;  %v161_v25 = vand.u32 4294901760, %v17208_v19  ;;  %14909 = vmatpush3.msra.mxu0 %v17170_v5  ;;  %v221_v28 = vsub.f32 %v17198_v16, %v17219_v22  ;;  %v228_v32 = vsub.f32 %v17201_v17, %v17222_v23  ;;  %v17376_v53 = vand.u32 4294901760, %v13821_v52 }
  0x19   :  { %14910 = vmatprep.subr.mxu0 %v17178_v8  ;;  %v17235_v29 = vand.u32 4294901760, %v207_v24  ;;  %v17238_v31 = vand.u32 4294901760, %v214_v26  ;;  %v172_v33 = vsub.f32 %v17216_v21, %v171_v27  ;;  %v17290_v44 = vsub.f32 %v630_v40, %v17277_v42  ;;  %v13815_v26 = vld [vmem:[%s20922_s4 + $0x48] sm:$0xff] }
  0x1a   :  { %v162_v30 = vsub.f32 %v17208_v19, %v161_v25  ;;  %14911 = vmatpush3.msra.mxu0 %v17178_v8  ;;  %v17246_v35 = vand.u32 4294901760, %v221_v28  ;;  %v17250_v37 = vand.u32 4294901760, %v228_v32  ;;  %v17295_v45 = vsub.f32 %v633_v41, %v17281_v43 }
  0x1b   :  { %14915 = vmatprep.subr.mxu1 %v17235_v29  ;;  %14926 = vmatprep.subr.mxu0 %v17186_v11  ;;  %v173_v36 = vand.u32 4294901760, %v172_v33  ;;  %v706_v46 = vand.u32 4294901760, %v17290_v44  ;;  %v17382_v55 = vsub.f32 %v13821_v52, %v17376_v53  ;;  %v17384_v56 = vand.u32 4294901760, %v13820_v54 }
  0x1c   :  { %v163_v34 = vand.u32 4294901760, %v162_v30  ;;  %14916 = vmatpush3.msra.mxu1 %v17235_v29  ;;  %v716_v47 = vand.u32 4294901760, %v17295_v45  ;;  %v17397_v60 = vand.u32 4294901760, %v13819_v57  ;;  %v17412_v1 = vand.u32 4294901760, %v13818_v61 }
  0x1d   :  { %14917 = vmatprep.subr.mxu1 %v17238_v31  ;;  %v707_v48 = vsub.f32 %v17290_v44, %v706_v46  ;;  %v17392_v58 = vand.u32 4294901760, %v17382_v55  ;;  %v17395_v59 = vsub.f32 %v13820_v54, %v17384_v56  ;;  %v17439_v24 = vand.u32 4294901760, %v13816_v14 }
  0x1e   :  { %14912 = vmatprep.mubr.f32.mxu0 %v163_v34  ;;  %14918 = vmatpush3.msra.mxu1 %v17238_v31  ;;  %v717_v49 = vsub.f32 %v17295_v45, %v716_v47  ;;  %v17410_v0 = vsub.f32 %v13819_v57, %v17397_v60  ;;  %v17425_v10 = vsub.f32 %v13818_v61, %v17412_v1  ;;  %v17453_v32 = vand.u32 4294901760, %v13815_v26  ;;  %v13814_v34 = vld [vmem:[%s20922_s4 + $0x40] sm:$0xff] }
  0x1f   :  { %14913 = vmatmul.mubr.f32.vlgmr.msra.gmra.mxu0 %v173_v36  ;;  %14919 = vmatprep.subr.mxu1 %v17246_v35  ;;  %v708_v50 = vand.u32 4294901760, %v707_v48  ;;  %v1292_v62 = vsub.f32 %v17382_v55, %v17392_v58  ;;  %v17407_v63 = vand.u32 4294901760, %v17395_v59  ;;  %v17451_v30 = vsub.f32 %v13816_v14, %v17439_v24 }
  0x20   :  { %14927 = vmatpush3.msra.mxu0 %v17186_v11  ;;  %14920 = vmatpush3.msra.mxu1 %v17246_v35  ;;  %v718_v51 = vand.u32 4294901760, %v717_v49  ;;  %v17422_v9 = vand.u32 4294901760, %v17410_v0  ;;  %v17467_v39 = vsub.f32 %v13815_v26, %v17453_v32  ;;  %v17469_v40 = vand.u32 4294901760, %v13814_v34 }
  0x21   :  { %14928 = vmatprep.subr.mxu0 %v17191_v13  ;;  %14921 = vmatprep.subr.mxu1 %v17250_v37  ;;  %v1293_v6 = vand.u32 4294901760, %v1292_v62  ;;  %v1299_v7 = vsub.f32 %v17395_v59, %v17407_v63  ;;  %v17464_v38 = vand.u32 4294901760, %v17451_v30 }
  0x22   :  { %14929 = vmatpush3.msra.mxu0 %v17191_v13  ;;  %14922 = vmatpush3.msra.mxu1 %v17250_v37 }
  0x23   :  { %14930 = vmatprep.subr.mxu0 %v17198_v16  ;;  %14924 = vmatmul.mubr.f32.vlgmr.msra.gmra.mxu1 %v17195_v15 }
  0x24   :  { %14931 = vmatpush3.msra.mxu0 %v17198_v16  ;;  %14937 = vmatprep.subr.mxu1 %v17166_v3 }
  0x25   :  { %14932 = vmatprep.subr.mxu0 %v17201_v17  ;;  %14934 = vmatprep.mubr.f32.mxu0 %v17208_v19  ;;  %v1306_v19 = vsub.f32 %v17410_v0, %v17422_v9 }
  0x26   :  { %14933 = vmatpush3.msra.mxu0 %v17201_v17  ;;  %14938 = vmatpush3.msra.mxu1 %v17166_v3 }
  0x27   :  { %14935 = vmatmul.mubr.f32.vlgmr.msra.gmra.mxu0 %v17216_v21  ;;  %14939 = vmatprep.subr.mxu1 %v17168_v4  ;;  %v17437_v21 = vand.u32 4294901760, %v17425_v10 }
  0x28   :  { %14948 = vmatprep.subr.mxu0 %v17205_v18  ;;  %14940 = vmatpush3.msra.mxu1 %v17168_v4 }
  0x29   :  { %14949 = vmatpush3.msra.mxu0 %v17205_v18  ;;  %14941 = vmatprep.subr.mxu1 %v17170_v5  ;;  %v1313_v28 = vsub.f32 %v17425_v10, %v17437_v21 }
  0x2a   :  { %14950 = vmatprep.subr.mxu0 %v17211_v20  ;;  %14942 = vmatpush3.msra.mxu1 %v17170_v5 }
  0x2b   :  { %14951 = vmatpush3.msra.mxu0 %v17211_v20  ;;  %14943 = vmatprep.subr.mxu1 %v17178_v8  ;;  %v1314_v36 = vand.u32 4294901760, %v1313_v28 }
  0x2c   :  { %14952 = vmatprep.subr.mxu0 %v17219_v22  ;;  %14944 = vmatpush3.msra.mxu1 %v17178_v8 }
  0x2d   :  { %14945 = vmatprep.mubr.f32.mxu1 %v161_v25  ;;  %14953 = vmatpush3.msra.mxu0 %v17219_v22 }
  0x2e   :  { %14946 = vmatmul.mubr.f32.vlgmr.msra.gmra.mxu1 %v171_v27  ;;  %14954 = vmatprep.subr.mxu0 %v17222_v23  ;;  %v1307_v27 = vand.u32 4294901760, %v1306_v19 }
  0x2f   :  { %14959 = vmatprep.subr.mxu1 %v17166_v3  ;;  %14955 = vmatpush3.msra.mxu0 %v17222_v23 }
  0x30   :  { %14956 = vmatprep.mubr.f32.mxu0 %v17188_v12  ;;  %14960 = vmatpush3.msra.mxu1 %v17166_v3 }
  0x31   :  { %14957 = vmatmul.mubr.f32.vlgmr.msra.gmra.mxu0 %v17195_v15  ;;  %14961 = vmatprep.subr.mxu1 %v17168_v4 }
  0x32   :  { %14970 = vmatprep.subr.mxu0 %v17166_v3  ;;  %14962 = vmatpush3.msra.mxu1 %v17168_v4 }
  0x33   :  { %14971 = vmatpush3.msra.mxu0 %v17166_v3  ;;  %14963 = vmatprep.subr.mxu1 %v17170_v5 }
  0x34   :  { %14972 = vmatprep.subr.mxu0 %v17168_v4  ;;  %14964 = vmatpush3.msra.mxu1 %v17170_v5 }
  0x35   :  { %14973 = vmatpush3.msra.mxu0 %v17168_v4  ;;  %14965 = vmatprep.subr.mxu1 %v17178_v8 }
  0x36   :  { %14974 = vmatprep.subr.mxu0 %v17170_v5  ;;  %14966 = vmatpush3.msra.mxu1 %v17178_v8 }
  0x37   :  { %14967 = vmatprep.mubr.f32.mxu1 %v17188_v12  ;;  %14975 = vmatpush3.msra.mxu0 %v17170_v5  ;;  %v17428_v12 = vand.u32 4294901760, %v13817_v2 }
  0x38   :  { %14968 = vmatmul.mubr.f32.vlgmr.msra.gmra.mxu1 %v17195_v15  ;;  %14976 = vmatprep.subr.mxu0 %v17178_v8  ;;  %v1300_v15 = vand.u32 4294901760, %v1299_v7 }
  0x39   :  { %14981 = vmatprep.subr.mxu1 %v17235_v29  ;;  %14977 = vmatpush3.msra.mxu0 %v17178_v8  ;;  %v17442_v25 = vsub.f32 %v13817_v2, %v17428_v12 }
  0x3a   :  { %14982 = vmatpush3.msra.mxu1 %v17235_v29  ;;  %14978 = vmatprep.mubr.f32.mxu0 %v708_v50 }
  0x3b   :  { %14983 = vmatprep.subr.mxu1 %v17238_v31  ;;  %14992 = vmatprep.subr.mxu0 %v17186_v11  ;;  %v17457_v33 = vand.u32 4294901760, %v17442_v25 }
  0x3c   :  { %14979 = vmatmul.mubr.f32.vlgmr.msra.gmra.mxu0 %v718_v51  ;;  %14984 = vmatpush3.msra.mxu1 %v17238_v31 }
  0x3d   :  { %14993 = vmatpush3.msra.mxu0 %v17186_v11  ;;  %14985 = vmatprep.subr.mxu1 %v17246_v35  ;;  %v1320_v41 = vsub.f32 %v17442_v25, %v17457_v33 }
  0x3e   :  { %14994 = vmatprep.subr.mxu0 %v17191_v13  ;;  %14986 = vmatpush3.msra.mxu1 %v17246_v35 }
  0x3f   :  { %14995 = vmatpush3.msra.mxu0 %v17191_v13  ;;  %14987 = vmatprep.subr.mxu1 %v17250_v37 }
  0x40   :  { %14996 = vmatprep.subr.mxu0 %v17198_v16  ;;  %14988 = vmatpush3.msra.mxu1 %v17250_v37 }
  0x41   :  { %14989 = vmatprep.mubr.f32.mxu1 %v17277_v42  ;;  %14997 = vmatpush3.msra.mxu0 %v17198_v16 }
  0x42   :  { %14990 = vmatmul.mubr.f32.vlgmr.msra.gmra.mxu1 %v17281_v43  ;;  %14998 = vmatprep.subr.mxu0 %v17201_v17 }
  0x43   :  { %15003 = vmatprep.subr.mxu1 %v17166_v3  ;;  %14999 = vmatpush3.msra.mxu0 %v17201_v17 }
  0x44   :  { %15000 = vmatprep.mubr.f32.mxu0 %v17290_v44  ;;  %15004 = vmatpush3.msra.mxu1 %v17166_v3  ;;  %v17481_v44 = vsub.f32 %v13814_v34, %v17469_v40 }
  0x45   :  { %15001 = vmatmul.mubr.f32.vlgmr.msra.gmra.mxu0 %v17295_v45  ;;  %15005 = vmatprep.subr.mxu1 %v17168_v4  ;;  %v1321_v45 = vand.u32 4294901760, %v1320_v41 }
  0x46   :  { %15014 = vmatprep.subr.mxu0 %v17205_v18  ;;  %15006 = vmatpush3.msra.mxu1 %v17168_v4  ;;  %v17488_v48 = vand.u32 4294901760, %v17481_v44 }
  0x47   :  { %15015 = vmatpush3.msra.mxu0 %v17205_v18  ;;  %15007 = vmatprep.subr.mxu1 %v17170_v5 }
  0x48   :  { %15016 = vmatprep.subr.mxu0 %v17211_v20  ;;  %15008 = vmatpush3.msra.mxu1 %v17170_v5  ;;  %v1341_v50 = vsub.f32 %v17481_v44, %v17488_v48 }
  0x49   :  { %15017 = vmatpush3.msra.mxu0 %v17211_v20  ;;  %15009 = vmatprep.subr.mxu1 %v17178_v8 }
  0x4a   :  { %15018 = vmatprep.subr.mxu0 %v17219_v22  ;;  %15010 = vmatpush3.msra.mxu1 %v17178_v8  ;;  %v1342_v51 = vand.u32 4294901760, %v1341_v50 }
  0x4b   :  { %15011 = vmatprep.mubr.f32.mxu1 %v706_v46  ;;  %15019 = vmatpush3.msra.mxu0 %v17219_v22 }
  0x4c   :  { %15012 = vmatmul.mubr.f32.vlgmr.msra.gmra.mxu1 %v716_v47  ;;  %15020 = vmatprep.subr.mxu0 %v17222_v23 }
  0x4d   :  { %15025 = vmatprep.subr.mxu1 %v17166_v3  ;;  %15021 = vmatpush3.msra.mxu0 %v17222_v23 }
  0x4e   :  { %15022 = vmatprep.mubr.f32.mxu0 %v17277_v42  ;;  %15026 = vmatpush3.msra.mxu1 %v17166_v3 }
  0x4f   :  { %15023 = vmatmul.mubr.f32.vlgmr.msra.gmra.mxu0 %v17281_v43  ;;  %15027 = vmatprep.subr.mxu1 %v17168_v4 }
  0x50   :  { %15033 = vmatprep.mubr.f32.mxu1 %v17277_v42  ;;  %15028 = vmatpush3.msra.mxu1 %v17168_v4  ;;  %v1327_v42 = vsub.f32 %v17451_v30, %v17464_v38 }
  0x51   :  { %15029 = vmatprep.subr.mxu1 %v17170_v5  ;;  %15036 = vmatprep.subr.mxu0 %v17376_v53 }
  0x52   :  { %15030 = vmatpush3.msra.mxu1 %v17170_v5  ;;  %15037 = vmatpush3.msra.mxu0 %v17376_v53  ;;  %v1328_v46 = vand.u32 4294901760, %v1327_v42 }
  0x53   :  { %15031 = vmatprep.subr.mxu1 %v17178_v8  ;;  %15038 = vmatprep.subr.mxu0 %v17384_v56 }
  0x54   :  { %15032 = vmatpush3.msra.mxu1 %v17178_v8  ;;  %15039 = vmatpush3.msra.mxu0 %v17384_v56 }
  0x55   :  { %15034 = vmatmul.mubr.f32.vlgmr.msra.gmra.mxu1 %v17281_v43  ;;  %15040 = vmatprep.subr.mxu0 %v17397_v60  ;;  %v17478_v43 = vand.u32 4294901760, %v17467_v39 }
  0x56   :  { %15041 = vmatpush3.msra.mxu0 %v17397_v60  ;;  %15055 = vmatprep.subr.mxu1 %v1293_v6 }
  0x57   :  { %15042 = vmatprep.subr.mxu0 %v17412_v1  ;;  %15056 = vmatpush3.msra.mxu1 %v1293_v6  ;;  %v1334_v47 = vsub.f32 %v17467_v39, %v17478_v43 }
  0x58   :  { %15043 = vmatpush3.msra.mxu0 %v17412_v1  ;;  %15057 = vmatprep.subr.mxu1 %v1300_v15 }
  0x59   :  { %15044 = vmatprep.subr.mxu0 %v17428_v12  ;;  %15058 = vmatpush3.msra.mxu1 %v1300_v15  ;;  %v1335_v49 = vand.u32 4294901760, %v1334_v47 }
  0x5a   :  { %15045 = vmatpush3.msra.mxu0 %v17428_v12  ;;  %15059 = vmatprep.subr.mxu1 %v1307_v27 }
  0x5b   :  { %15046 = vmatprep.subr.mxu0 %v17439_v24  ;;  %15060 = vmatpush3.msra.mxu1 %v1307_v27 }
  0x5c   :  { %15047 = vmatpush3.msra.mxu0 %v17439_v24  ;;  %15061 = vmatprep.subr.mxu1 %v1314_v36 }
  0x5d   :  { %15048 = vmatprep.subr.mxu0 %v17453_v32  ;;  %15062 = vmatpush3.msra.mxu1 %v1314_v36 }
  0x5e   :  { %15049 = vmatpush3.msra.mxu0 %v17453_v32  ;;  %15063 = vmatprep.subr.mxu1 %v1321_v45 }
  0x5f   :  { %15050 = vmatprep.subr.mxu0 %v17469_v40  ;;  %15064 = vmatpush3.msra.mxu1 %v1321_v45 }
  0x60   :  { %15051 = vmatpush3.msra.mxu0 %v17469_v40  ;;  %15065 = vmatprep.subr.mxu1 %v1328_v46 }
  0x61   :  { %15074 = vmatprep.subr.mxu0 %v17382_v55  ;;  %15066 = vmatpush3.msra.mxu1 %v1328_v46 }
  0x62   :  { %15067 = vmatprep.subr.mxu1 %v1335_v49 }
  0x63   :  { %15068 = vmatpush3.msra.mxu1 %v1335_v49 }
  0x64   :  { %15069 = vmatprep.subr.mxu1 %v1342_v51 }
  0x65   :  { %15070 = vmatpush3.msra.mxu1 %v1342_v51 }
  0x66   :  { %15093 = vmatprep.subr.mxu1 %v17376_v53 }
  0xdf   :  { %v14914_v52 = vpop.f32.mrf.mxu0 }
  0xe1   :  { %v165_v54 = vpop.f32.mrf.mxu0 }
  0xe3   :  { %v14925_v57 = vpop.f32.mrf.mxu1 }
  0xe4   :  { %v273_v61 = vadd.f32 %v14925_v57, %v14914_v52 }
  0xe5   :  { %v266_v6 = vpop.f32.mrf.mxu1 }
  0xe7   :  { %v14936_v62 = vpop.f32.mrf.mxu0 }
  0xe8   :  { %v360_v2 = vadd.f32 %v14936_v62, %v273_v61 }
  0xe9   :  { %v17495_v14 = vpop.f32.mrf.mxu0 }
  0xee   :  { %v14947_v7 = vpop.f32.mrf.mxu1 }
  0xef   :  { %v445_v15 = vadd.f32 %v14947_v7, %v360_v2 }
  0xf0   :  { %v17497_v27 = vpop.f32.mrf.mxu1 }
  0xf1   :  { %v14958_v19 = vpop.f32.mrf.mxu0 }
  0xf2   :  { %v534_v26 = vadd.f32 %v14958_v19, %v445_v15 }
  0xf3   :  { %v17501_v36 = vpop.f32.mrf.mxu0 }
  0xf8   :  { %v14969_v28 = vpop.f32.mrf.mxu1 }
  0xf9   :  { %v17499_v34 = vadd.f32 %v14969_v28, %v534_v26 }
  0xfa   :  { %v17503_v42 = vpop.f32.mrf.mxu1 }
  0xfc   :  { %v14980_v41 = vpop.f32.mrf.mxu0 }
  0xfe   :  { %v710_v45 = vpop.f32.mrf.mxu0 }
 0x102   :  { %v14991_v46 = vpop.f32.mrf.mxu1 }
 0x103   :  { %v818_v50 = vadd.f32 %v14991_v46, %v14980_v41 }
 0x104   :  { %v811_v47 = vpop.f32.mrf.mxu1 }
 0x105   :  { %v15002_v49 = vpop.f32.mrf.mxu0  ;;  %v812_v52 = vadd.f32 %v811_v47, %v710_v45 }
 0x106   :  { %v905_v61 = vadd.f32 %v15002_v49, %v818_v50 }
 0x107   :  { %v897_v57 = vpop.f32.mrf.mxu0 }
 0x108   :  { %v898_v7 = vadd.f32 %v897_v57, %v812_v52  ;;  %v622_v52 = vld [vmem:[%s20922_s4 + $0x20] sm:$0xff] }
 0x10c   :  { %v15013_v51 = vpop.f32.mrf.mxu1 }
 0x10d   :  { %v990_v15 = vadd.f32 %v15013_v51, %v905_v61 }
 0x10e   :  { %v981_v62 = vpop.f32.mrf.mxu1 }
 0x10f   :  { %v15024_v2 = vpop.f32.mrf.mxu0  ;;  %v982_v19 = vadd.f32 %v981_v62, %v898_v7 }
 0x110   :  { %v1079_v28 = vadd.f32 %v15024_v2, %v990_v15  ;;  %v619_v2 = vld [vmem:[%s20922_s4 + $0x8] sm:$0xff] }
 0x111   :  { %v1072_v26 = vpop.f32.mrf.mxu0 }
 0x112   :  { %v1073_v22 = vadd.f32 %v1072_v26, %v982_v19 }
 0x115   :  { %v15035_v23 = vpop.f32.mrf.mxu1 }
 0x116   :  { %v1160_v20 = vadd.f32 %v15035_v23, %v1079_v28  ;;  %v267_v23 = vadd.f32 %v266_v6, %v165_v54  ;;  %v625_v54 = vld [vmem:[%s20922_s4 + $0x38] sm:$0xff]  ;;  %v624_v6 = vld [vmem:[%s20922_s4 + $0x30] sm:$0xff]  ;;  %v17636_v28 = vand.u32 4294901760, %v619_v2 }
 0x117   :  { %v1153_v18 = vpop.f32.mrf.mxu1 }
 0x118   :  { %v1177_v17 = vsel %vm1172_vm1, %v1160_v20, 0  ;;  %v1154_v16 = vadd.f32 %v1153_v18, %v1073_v22  ;;  %v353_v51 = vadd.f32 %v17495_v14, %v267_v23 }
 0x119   :  { %v17506_v41 = vand.u32 4294901760, %v1177_v17 }
 0x11a   :  { %v1174_v45 = vsel %vm1172_vm1, %v1154_v16, 0 }
 0x11b   :  { %v17510_v46 = vsub.f32 %v1177_v17, %v17506_v41  ;;  %v17512_v47 = vand.u32 4294901760, %v1174_v45 }
 0x11d   :  { %v1264_v49 = vand.u32 4294901760, %v17510_v46  ;;  %v1253_v50 = vsub.f32 %v1174_v45, %v17512_v47  ;;  %15071 = vmatprep.mubr.f32.mxu1 %v17512_v47 }
 0x11e   :  { %15072 = vmatmul.mubr.f32.vlgmr.msra.gmra.mxu1 %v17506_v41 }
 0x11f   :  { %15094 = vmatpush3.msra.mxu1 %v17376_v53  ;;  %v1254_v18 = vand.u32 4294901760, %v1253_v50  ;;  %v1265_v16 = vsub.f32 %v17510_v46, %v1264_v49 }
 0x120   :  { %15095 = vmatprep.subr.mxu1 %v17384_v56 }
 0x121   :  { %15096 = vmatpush3.msra.mxu1 %v17384_v56  ;;  %15109 = vmatprep.mubr.f32.mxu1 %v1254_v18  ;;  %v1255_v17 = vsub.f32 %v1253_v50, %v1254_v18  ;;  %v1266_v22 = vand.u32 4294901760, %v1265_v16 }
 0x122   :  { %15097 = vmatprep.subr.mxu1 %v17397_v60 }
 0x123   :  { %15098 = vmatpush3.msra.mxu1 %v17397_v60  ;;  %v1256_v20 = vand.u32 4294901760, %v1255_v17 }
 0x124   :  { %15099 = vmatprep.subr.mxu1 %v17412_v1 }
 0x125   :  { %15100 = vmatpush3.msra.mxu1 %v17412_v1  ;;  %15052 = vmatprep.mubr.f32.mxu0 %v1256_v20 }
 0x126   :  { %15101 = vmatprep.subr.mxu1 %v17428_v12  ;;  %15053 = vmatmul.mubr.f32.vlgmr.msra.gmra.mxu0 %v1266_v22 }
 0x127   :  { %15075 = vmatpush3.msra.mxu0 %v17382_v55  ;;  %15102 = vmatpush3.msra.mxu1 %v17428_v12  ;;  %v437_v55 = vadd.f32 %v17497_v27, %v353_v51 }
 0x128   :  { %15076 = vmatprep.subr.mxu0 %v17395_v59  ;;  %15090 = vmatprep.mubr.f32.mxu0 %v1253_v50 }
 0x129   :  { %15103 = vmatprep.subr.mxu1 %v17439_v24  ;;  %15077 = vmatpush3.msra.mxu0 %v17395_v59  ;;  %v17545_v59 = vand.u32 4294901760, %v625_v54  ;;  %v528_v14 = vadd.f32 %v17501_v36, %v437_v55  ;;  %v1763_v55 = vsel %vm1172_vm1, %v17499_v34, 0 }
 0x12a   :  { %15104 = vmatpush3.msra.mxu1 %v17439_v24  ;;  %15078 = vmatprep.subr.mxu0 %v17410_v0 }
 0x12b   :  { %15105 = vmatprep.subr.mxu1 %v17453_v32  ;;  %15079 = vmatpush3.msra.mxu0 %v17410_v0  ;;  %v623_v0 = vld [vmem:[%s20922_s4 + $0x28] sm:$0xff]  ;;  %v17564_v27 = vsub.f32 %v625_v54, %v17545_v59  ;;  %v609_v57 = vadd.f32 %v17503_v42, %v528_v14  ;;  %v17584_v42 = vand.u32 4294901760, %v622_v52 }
 0x12c   :  { %15106 = vmatpush3.msra.mxu1 %v17453_v32  ;;  %15080 = vmatprep.subr.mxu0 %v17425_v10 }
 0x12d   :  { %15107 = vmatprep.subr.mxu1 %v17469_v40  ;;  %15081 = vmatpush3.msra.mxu0 %v17425_v10  ;;  %v17559_v10 = vand.u32 4294901760, %v624_v6 }
 0x12e   :  { %15108 = vmatpush3.msra.mxu1 %v17469_v40  ;;  %15082 = vmatprep.subr.mxu0 %v17442_v25 }
 0x12f   :  { %15110 = vmatmul.mubr.f32.vlgmr.msra.gmra.mxu1 %v1264_v49  ;;  %15131 = vmatprep.subr.mxu1 %v17376_v53  ;;  %v17582_v36 = vsub.f32 %v624_v6, %v17559_v10 }
 0x130   :  { %15083 = vmatpush3.msra.mxu0 %v17442_v25  ;;  %15132 = vmatpush3.msra.mxu1 %v17376_v53  ;;  %v17572_v53 = vand.u32 4294901760, %v623_v0  ;;  %v621_v25 = vld [vmem:[%s20922_s4 + $0x18] sm:$0xff] }
 0x131   :  { %15147 = vmatprep.mubr.f32.mxu1 %v17512_v47  ;;  %15084 = vmatprep.subr.mxu0 %v17451_v30  ;;  %v17597_v61 = vand.u32 4294901760, %v621_v25  ;;  %v17607_v62 = vand.u32 4294901760, %v17582_v36 }
 0x132   :  { %15133 = vmatprep.subr.mxu1 %v17384_v56  ;;  %15085 = vmatpush3.msra.mxu0 %v17451_v30  ;;  %v1760_v30 = vsel %vm1172_vm1, %v609_v57, 0 }
 0x133   :  { %15134 = vmatpush3.msra.mxu1 %v17384_v56  ;;  %15086 = vmatprep.subr.mxu0 %v17467_v39  ;;  %v17589_v56 = vand.u32 4294901760, %v17564_v27  ;;  %v17615_v7 = vand.u32 4294901760, %v1760_v30  ;;  %v17629_v26 = vsub.f32 %v621_v25, %v17597_v61 }
 0x134   :  { %15135 = vmatprep.subr.mxu1 %v17397_v60  ;;  %15087 = vmatpush3.msra.mxu0 %v17467_v39  ;;  %v17595_v39 = vsub.f32 %v623_v0, %v17572_v53  ;;  %v17702_v0 = vand.u32 4294901760, %v1763_v55 }
 0x135   :  { %15136 = vmatpush3.msra.mxu1 %v17397_v60  ;;  %15088 = vmatprep.subr.mxu0 %v17481_v44  ;;  %v620_v60 = vld [vmem:[%s20922_s4 + $0x10] sm:$0xff]  ;;  %v17660_v50 = vand.u32 4294901760, %v17629_v26 }
 0x136   :  { %15137 = vmatprep.subr.mxu1 %v17412_v1  ;;  %15089 = vmatpush3.msra.mxu0 %v17481_v44  ;;  %v17610_v44 = vsub.f32 %v622_v52, %v17584_v42  ;;  %v17621_v15 = vand.u32 4294901760, %v620_v60  ;;  %v17626_v19 = vand.u32 4294901760, %v17595_v39 }
 0x137   :  { %15138 = vmatpush3.msra.mxu1 %v17412_v1  ;;  %15091 = vmatmul.mubr.f32.vlgmr.msra.gmra.mxu0 %v17510_v46  ;;  %v1878_v1 = vsub.f32 %v17564_v27, %v17589_v56  ;;  %v17646_v46 = vsub.f32 %v1760_v30, %v17615_v7  ;;  %v1906_v20 = vsub.f32 %v17629_v26, %v17660_v50 }
 0x138   :  { %15112 = vmatprep.subr.mxu0 %v17392_v58  ;;  %15139 = vmatprep.subr.mxu1 %v17428_v12  ;;  %v17643_v45 = vand.u32 4294901760, %v17610_v44  ;;  %v1892_v49 = vsub.f32 %v17595_v39, %v17626_v19 }
 0x139   :  { %15113 = vmatpush3.msra.mxu0 %v17392_v58  ;;  %15128 = vmatprep.mubr.f32.mxu0 %v17512_v47  ;;  %v618_v58 = vld [vmem:[%s20922_s4] sm:$0xff]  ;;  %v17651_v47 = vsub.f32 %v620_v60, %v17621_v15  ;;  %v1840_v16 = vand.u32 4294901760, %v17646_v46  ;;  %v1907_v6 = vand.u32 4294901760, %v1906_v20 }
 0x13a   :  { %15140 = vmatpush3.msra.mxu1 %v17428_v12  ;;  %15114 = vmatprep.subr.mxu0 %v17407_v63  ;;  %v1885_v12 = vsub.f32 %v17582_v36, %v17607_v62  ;;  %v1899_v18 = vsub.f32 %v17610_v44, %v17643_v45 }
 0x13b   :  { %15141 = vmatprep.subr.mxu1 %v17439_v24  ;;  %15115 = vmatpush3.msra.mxu0 %v17407_v63  ;;  %v1879_v63 = vand.u32 4294901760, %v1878_v1  ;;  %v17674_v17 = vand.u32 4294901760, %v17651_v47  ;;  %v20923_v1 = vld [vmem:[#allocation2_spill] sm:$0xff] }
 0x13c   :  { %15142 = vmatpush3.msra.mxu1 %v17439_v24  ;;  %15116 = vmatprep.subr.mxu0 %v17422_v9  ;;  %v17653_v24 = vand.u32 4294901760, %v618_v58  ;;  %v1900_v23 = vand.u32 4294901760, %v1899_v18 }
 0x13d   :  { %15143 = vmatprep.subr.mxu1 %v17453_v32  ;;  %15117 = vmatpush3.msra.mxu0 %v17422_v9  ;;  %v17665_v9 = vsub.f32 %v619_v2, %v17636_v28  ;;  %v1913_v51 = vsub.f32 %v17651_v47, %v17674_v17 }
 0x13e   :  { %15144 = vmatpush3.msra.mxu1 %v17453_v32  ;;  %15118 = vmatprep.subr.mxu0 %v17437_v21  ;;  %v1886_v32 = vand.u32 4294901760, %v1885_v12  ;;  %v13831_v12 = vld [vmem:[%s20922_s4 + $0xb8] sm:$0xff] }
 0x13f   :  { %15145 = vmatprep.subr.mxu1 %v17469_v40  ;;  %15119 = vmatpush3.msra.mxu0 %v17437_v21  ;;  %v17677_v21 = vsub.f32 %v618_v58, %v17653_v24  ;;  %v17685_v22 = vand.u32 4294901760, %v17665_v9  ;;  %v1914_v34 = vand.u32 4294901760, %v1913_v51  ;;  %v20927_v58 = vld [vmem:[#allocation6_spill] sm:$0xff] }
 0x140   :  { %15146 = vmatpush3.msra.mxu1 %v17469_v40  ;;  %15120 = vmatprep.subr.mxu0 %v17457_v33  ;;  %v1893_v40 = vand.u32 4294901760, %v1892_v49 }
 0x141   :  { %15148 = vmatmul.mubr.f32.vlgmr.msra.gmra.mxu1 %v17506_v41  ;;  %15169 = vmatprep.subr.mxu1 %v1879_v63  ;;  %v17693_v54 = vand.u32 4294901760, %v17677_v21 }
 0x142   :  { %15121 = vmatpush3.msra.mxu0 %v17457_v33  ;;  %15170 = vmatpush3.msra.mxu1 %v1879_v63  ;;  %v1841_v33 = vsub.f32 %v17646_v46, %v1840_v16 }
 0x143   :  { %15185 = vmatprep.mubr.f32.mxu1 %v17615_v7  ;;  %15122 = vmatprep.subr.mxu0 %v17464_v38 }
 0x144   :  { %15171 = vmatprep.subr.mxu1 %v1886_v32  ;;  %15123 = vmatpush3.msra.mxu0 %v17464_v38  ;;  %v1920_v38 = vsub.f32 %v17665_v9, %v17685_v22  ;;  %v1842_v14 = vand.u32 4294901760, %v1841_v33 }
 0x145   :  { %15172 = vmatpush3.msra.mxu1 %v1886_v32  ;;  %15124 = vmatprep.subr.mxu0 %v17478_v43  ;;  %v13828_v32 = vld [vmem:[%s20922_s4 + $0xa0] sm:$0xff] }
 0x146   :  { %15173 = vmatprep.subr.mxu1 %v1893_v40  ;;  %15125 = vmatpush3.msra.mxu0 %v17478_v43  ;;  %v1927_v43 = vsub.f32 %v17677_v21, %v17693_v54  ;;  %v1921_v52 = vand.u32 4294901760, %v1920_v38 }
 0x147   :  { %15174 = vmatpush3.msra.mxu1 %v1893_v40  ;;  %15126 = vmatprep.subr.mxu0 %v17488_v48  ;;  %v13827_v40 = vld [vmem:[%s20922_s4 + $0x98] sm:$0xff] }
 0x148   :  { %15175 = vmatprep.subr.mxu1 %v1900_v23  ;;  %15127 = vmatpush3.msra.mxu0 %v17488_v48  ;;  %v17711_v48 = vsub.f32 %v1763_v55, %v17702_v0  ;;  %v17927_v51 = vand.u32 4294901760, %v13827_v40 }
 0x149   :  { %15176 = vmatpush3.msra.mxu1 %v1900_v23  ;;  %15129 = vmatmul.mubr.f32.vlgmr.msra.gmra.mxu0 %v17506_v41  ;;  %v1928_v41 = vand.u32 4294901760, %v1927_v43 }
 0x14a   :  { %15150 = vmatprep.subr.mxu0 %v17545_v59  ;;  %15177 = vmatprep.subr.mxu1 %v1907_v6  ;;  %v1850_v57 = vand.u32 4294901760, %v17711_v48 }
 0x14b   :  { %15151 = vmatpush3.msra.mxu0 %v17545_v59  ;;  %15166 = vmatprep.mubr.f32.mxu0 %v1842_v14  ;;  %v17941_v14 = vsub.f32 %v13827_v40, %v17927_v51 }
 0x14c   :  { %15178 = vmatpush3.msra.mxu1 %v1907_v6  ;;  %15152 = vmatprep.subr.mxu0 %v17559_v10  ;;  %v1851_v25 = vsub.f32 %v17711_v48, %v1850_v57 }
 0x14d   :  { %15179 = vmatprep.subr.mxu1 %v1914_v34  ;;  %15153 = vmatpush3.msra.mxu0 %v17559_v10 }
 0x14e   :  { %15180 = vmatpush3.msra.mxu1 %v1914_v34  ;;  %15154 = vmatprep.subr.mxu0 %v17572_v53  ;;  %v1852_v30 = vand.u32 4294901760, %v1851_v25  ;;  %v13825_v34 = vld [vmem:[%s20922_s4 + $0x88] sm:$0xff]  ;;  %v13824_v25 = vld [vmem:[%s20922_s4 + $0x80] sm:$0xff] }
 0x14f   :  { %15181 = vmatprep.subr.mxu1 %v1921_v52  ;;  %15155 = vmatpush3.msra.mxu0 %v17572_v53 }
 0x150   :  { %15182 = vmatpush3.msra.mxu1 %v1921_v52  ;;  %15156 = vmatprep.subr.mxu0 %v17584_v42 }
 0x151   :  { %15183 = vmatprep.subr.mxu1 %v1928_v41  ;;  %15157 = vmatpush3.msra.mxu0 %v17584_v42 }
 0x152   :  { %15184 = vmatpush3.msra.mxu1 %v1928_v41  ;;  %15158 = vmatprep.subr.mxu0 %v17597_v61  ;;  %v17952_v41 = vand.u32 4294901760, %v13825_v34 }
 0x153   :  { %15186 = vmatmul.mubr.f32.vlgmr.msra.gmra.mxu1 %v17702_v0  ;;  %15207 = vmatprep.subr.mxu1 %v17545_v59 }
 0x154   :  { %15159 = vmatpush3.msra.mxu0 %v17597_v61  ;;  %15208 = vmatpush3.msra.mxu1 %v17545_v59 }
 0x155   :  { %15223 = vmatprep.mubr.f32.mxu1 %v1840_v16  ;;  %15160 = vmatprep.subr.mxu0 %v17621_v15 }
 0x156   :  { %15209 = vmatprep.subr.mxu1 %v17559_v10  ;;  %15161 = vmatpush3.msra.mxu0 %v17621_v15 }
 0x157   :  { %15210 = vmatpush3.msra.mxu1 %v17559_v10  ;;  %15162 = vmatprep.subr.mxu0 %v17636_v28 }
 0x158   :  { %15211 = vmatprep.subr.mxu1 %v17572_v53  ;;  %15163 = vmatpush3.msra.mxu0 %v17636_v28 }
 0x159   :  { %15212 = vmatpush3.msra.mxu1 %v17572_v53  ;;  %15164 = vmatprep.subr.mxu0 %v17653_v24 }
 0x15a   :  { %15213 = vmatprep.subr.mxu1 %v17584_v42  ;;  %15165 = vmatpush3.msra.mxu0 %v17653_v24 }
 0x15b   :  { %15214 = vmatpush3.msra.mxu1 %v17584_v42  ;;  %15167 = vmatmul.mubr.f32.vlgmr.msra.gmra.mxu0 %v1852_v30 }
 0x15c   :  { %15188 = vmatprep.subr.mxu0 %v17564_v27  ;;  %15215 = vmatprep.subr.mxu1 %v17597_v61 }
 0x15d   :  { %15189 = vmatpush3.msra.mxu0 %v17564_v27  ;;  %15204 = vmatprep.mubr.f32.mxu0 %v17646_v46  ;;  %v13822_v27 = vld [vmem:[%s20915_s25 + $0x20] sm:$0xff]  ;;  %v13830_v46 = vld [vmem:[%s20922_s4 + $0xb0] sm:$0xff] }
 0x15e   :  { %15216 = vmatpush3.msra.mxu1 %v17597_v61  ;;  %15190 = vmatprep.subr.mxu0 %v17582_v36 }
 0x15f   :  { %15217 = vmatprep.subr.mxu1 %v17621_v15  ;;  %15191 = vmatpush3.msra.mxu0 %v17582_v36  ;;  %v2349_v36 = vsel %vm83_vm0, %v13822_v27, 0 }
 0x160   :  { %15218 = vmatpush3.msra.mxu1 %v17621_v15  ;;  %15192 = vmatprep.subr.mxu0 %v17595_v39 }
 0x161   :  { %15219 = vmatprep.subr.mxu1 %v17636_v28  ;;  %15193 = vmatpush3.msra.mxu0 %v17595_v39 }
 0x162   :  { %15220 = vmatpush3.msra.mxu1 %v17636_v28  ;;  %15194 = vmatprep.subr.mxu0 %v17610_v44 }
 0x163   :  { %15221 = vmatprep.subr.mxu1 %v17653_v24  ;;  %15195 = vmatpush3.msra.mxu0 %v17610_v44 }
 0x164   :  { %15222 = vmatpush3.msra.mxu1 %v17653_v24  ;;  %15196 = vmatprep.subr.mxu0 %v17629_v26 }
 0x165   :  { %15224 = vmatmul.mubr.f32.vlgmr.msra.gmra.mxu1 %v1850_v57  ;;  %15245 = vmatprep.subr.mxu1 %v17545_v59  ;;  %v17956_v57 = vand.u32 4294901760, %v17941_v14 }
 0x166   :  { %15197 = vmatpush3.msra.mxu0 %v17629_v26  ;;  %15246 = vmatpush3.msra.mxu1 %v17545_v59  ;;  %v17774_v59 = vand.u32 4294901760, %v2349_v36  ;;  %v20926_v26 = vld [vmem:[#allocation5_spill] sm:$0xff] }
 0x167   :  { %15261 = vmatprep.mubr.f32.mxu1 %v17615_v7  ;;  %15198 = vmatprep.subr.mxu0 %v17651_v47 }
 0x168   :  { %15247 = vmatprep.subr.mxu1 %v17559_v10  ;;  %15199 = vmatpush3.msra.mxu0 %v17651_v47  ;;  %v17789_v39 = vsub.f32 %v2349_v36, %v17774_v59  ;;  %v17883_v47 = vand.u32 4294901760, %v13830_v46  ;;  %v17966_v36 = vsub.f32 %v13825_v34, %v17952_v41 }
 0x169   :  { %15248 = vmatpush3.msra.mxu1 %v17559_v10  ;;  %15200 = vmatprep.subr.mxu0 %v17665_v9  ;;  %v13823_v10 = vld [vmem:[%s20915_s25 + $0x28] sm:$0x3f] }
 0x16a   :  { %15249 = vmatprep.subr.mxu1 %v17572_v53  ;;  %15201 = vmatpush3.msra.mxu0 %v17665_v9 }
 0x16b   :  { %15250 = vmatpush3.msra.mxu1 %v17572_v53  ;;  %15202 = vmatprep.subr.mxu0 %v17677_v21  ;;  %v2352_v53 = vsel %vm83_vm0, %v13823_v10, 0  ;;  %v3038_v10 = vsub.f32 %v17941_v14, %v17956_v57 }
 0x16c   :  { %15251 = vmatprep.subr.mxu1 %v17584_v42  ;;  %15203 = vmatpush3.msra.mxu0 %v17677_v21  ;;  %v17911_v21 = vand.u32 4294901760, %v13828_v32 }
 0x16d   :  { %15252 = vmatpush3.msra.mxu1 %v17584_v42  ;;  %15205 = vmatmul.mubr.f32.vlgmr.msra.gmra.mxu0 %v17711_v48  ;;  %v17795_v42 = vand.u32 4294901760, %v2352_v53 }
 0x16e   :  { %15226 = vmatprep.subr.mxu0 %v17589_v56  ;;  %15253 = vmatprep.subr.mxu1 %v17597_v61  ;;  %v17924_v33 = vsub.f32 %v13828_v32, %v17911_v21 }
 0x16f   :  { %15227 = vmatpush3.msra.mxu0 %v17589_v56  ;;  %15242 = vmatprep.mubr.f32.mxu0 %v17615_v7  ;;  %v2425_v56 = vand.u32 4294901760, %v17789_v39 }
 0x170   :  { %15254 = vmatpush3.msra.mxu1 %v17597_v61  ;;  %15228 = vmatprep.subr.mxu0 %v17607_v62  ;;  %v2434_v61 = vsub.f32 %v2352_v53, %v17795_v42  ;;  %v17936_v38 = vand.u32 4294901760, %v17924_v33 }
 0x171   :  { %15255 = vmatprep.subr.mxu1 %v17621_v15  ;;  %15229 = vmatpush3.msra.mxu0 %v17607_v62  ;;  %v2426_v60 = vsub.f32 %v17789_v39, %v2425_v56 }
 0x172   :  { %15256 = vmatpush3.msra.mxu1 %v17621_v15  ;;  %15230 = vmatprep.subr.mxu0 %v17626_v19  ;;  %v2435_v62 = vand.u32 4294901760, %v2434_v61  ;;  %v20924_v15 = vld [vmem:[#allocation3_spill] sm:$0xff]  ;;  %v3031_v52 = vsub.f32 %v17924_v33, %v17936_v38 }
 0x173   :  { %15257 = vmatprep.subr.mxu1 %v17636_v28  ;;  %15231 = vmatpush3.msra.mxu0 %v17626_v19  ;;  %v2427_v44 = vand.u32 4294901760, %v2426_v60  ;;  %v20925_v19 = vld [vmem:[#allocation4_spill] sm:$0xff] }
 0x174   :  { %15258 = vmatpush3.msra.mxu1 %v17636_v28  ;;  %15232 = vmatprep.subr.mxu0 %v17643_v45  ;;  %v2436_v2 = vsub.f32 %v2434_v61, %v2435_v62  ;;  %v20928_v28 = vld [vmem:[#allocation7_spill] sm:$0xff]  ;;  %v3032_v30 = vand.u32 4294901760, %v3031_v52 }
 0x175   :  { %15259 = vmatprep.subr.mxu1 %v17653_v24  ;;  %15233 = vmatpush3.msra.mxu0 %v17643_v45  ;;  %v17875_v45 = vand.u32 4294901760, %v13831_v12 }
 0x176   :  { %15260 = vmatpush3.msra.mxu1 %v17653_v24  ;;  %15234 = vmatprep.subr.mxu0 %v17660_v50  ;;  %v2437_v7 = vand.u32 4294901760, %v2436_v2  ;;  %v13829_v24 = vld [vmem:[%s20922_s4 + $0xa8] sm:$0xff] }
 0x177   :  { %15262 = vmatmul.mubr.f32.vlgmr.msra.gmra.mxu1 %v17702_v0  ;;  %15235 = vmatpush3.msra.mxu0 %v17660_v50  ;;  %v17881_v63 = vsub.f32 %v13831_v12, %v17875_v45  ;;  %v17894_v50 = vsub.f32 %v13830_v46, %v17883_v47  ;;  %v17896_v9 = vand.u32 4294901760, %v13829_v24 }
 0x178   :  { %15236 = vmatprep.subr.mxu0 %v17674_v17  ;;  %15275 = vmatprep.subr.mxu1 %v17235_v29 }
 0x179   :  { %15237 = vmatpush3.msra.mxu0 %v17674_v17  ;;  %15276 = vmatpush3.msra.mxu1 %v17235_v29  ;;  %v17891_v49 = vand.u32 4294901760, %v17881_v63  ;;  %v17906_v16 = vand.u32 4294901760, %v17894_v50  ;;  %v17909_v17 = vsub.f32 %v13829_v24, %v17896_v9 }
 0x17a   :  { %15238 = vmatprep.subr.mxu0 %v17685_v22  ;;  %15277 = vmatprep.subr.mxu1 %v17238_v31 }
 0x17b   :  { %15239 = vmatpush3.msra.mxu0 %v17685_v22  ;;  %15278 = vmatpush3.msra.mxu1 %v17238_v31  ;;  %v3010_v18 = vsub.f32 %v17881_v63, %v17891_v49  ;;  %v3017_v22 = vsub.f32 %v17894_v50, %v17906_v16  ;;  %v17921_v23 = vand.u32 4294901760, %v17909_v17 }
 0x17c   :  { %15240 = vmatprep.subr.mxu0 %v17693_v54  ;;  %15279 = vmatprep.subr.mxu1 %v17246_v35 }
 0x17d   :  { %15241 = vmatpush3.msra.mxu0 %v17693_v54  ;;  %15280 = vmatpush3.msra.mxu1 %v17246_v35  ;;  %v3011_v20 = vand.u32 4294901760, %v3010_v18  ;;  %v13826_v54 = vld [vmem:[%s20922_s4 + $0x90] sm:$0xff]  ;;  %v3018_v55 = vand.u32 4294901760, %v3017_v22  ;;  %v3024_v6 = vsub.f32 %v17909_v17, %v17921_v23 }
 0x17e   :  { %15243 = vmatmul.mubr.f32.vlgmr.msra.gmra.mxu0 %v17702_v0  ;;  %15264 = vmatprep.subr.mxu0 %v17166_v3  ;;  %v17938_v0 = vand.u32 4294901760, %v13826_v54 }
 0x17f   :  { %15265 = vmatpush3.msra.mxu0 %v17166_v3  ;;  %15281 = vmatprep.subr.mxu1 %v17250_v37  ;;  %v3025_v43 = vand.u32 4294901760, %v3024_v6 }
 0x180   :  { %15266 = vmatprep.subr.mxu0 %v17168_v4  ;;  %15272 = vmatprep.mubr.f32.mxu0 %v2427_v44  ;;  %v17950_v48 = vsub.f32 %v13826_v54, %v17938_v0 }
 0x181   :  { %15267 = vmatpush3.msra.mxu0 %v17168_v4  ;;  %15282 = vmatpush3.msra.mxu1 %v17250_v37 }
 0x182   :  { %15268 = vmatprep.subr.mxu0 %v17170_v5  ;;  %15283 = vmatprep.mubr.f32.mxu1 %v17774_v59  ;;  %v17963_v27 = vand.u32 4294901760, %v17950_v48 }
 0x183   :  { %15269 = vmatpush3.msra.mxu0 %v17170_v5  ;;  %15284 = vmatmul.mubr.f32.vlgmr.msra.gmra.mxu1 %v17795_v42 }
 0x184   :  { %15270 = vmatprep.subr.mxu0 %v17178_v8  ;;  %15297 = vmatprep.subr.mxu1 %v17166_v3  ;;  %v3045_v53 = vsub.f32 %v17950_v48, %v17963_v27 }
 0x185   :  { %15271 = vmatpush3.msra.mxu0 %v17178_v8  ;;  %15298 = vmatpush3.msra.mxu1 %v17166_v3 }
 0x186   :  { %15273 = vmatmul.mubr.f32.vlgmr.msra.gmra.mxu0 %v2437_v7  ;;  %15286 = vmatprep.subr.mxu0 %v17186_v11 }
 0x187   :  { %15287 = vmatpush3.msra.mxu0 %v17186_v11  ;;  %15299 = vmatprep.subr.mxu1 %v17168_v4 }
 0x188   :  { %15288 = vmatprep.subr.mxu0 %v17191_v13  ;;  %15300 = vmatpush3.msra.mxu1 %v17168_v4 }
 0x189   :  { %15289 = vmatpush3.msra.mxu0 %v17191_v13  ;;  %15301 = vmatprep.subr.mxu1 %v17170_v5 }
 0x18a   :  { %15290 = vmatprep.subr.mxu0 %v20923_v1  ;;  %15302 = vmatpush3.msra.mxu1 %v17170_v5 }
 0x18b   :  { %15291 = vmatpush3.msra.mxu0 %v20923_v1  ;;  %15303 = vmatprep.subr.mxu1 %v17178_v8 }
 0x18c   :  { %15292 = vmatprep.subr.mxu0 %v20924_v15  ;;  %15294 = vmatprep.mubr.f32.mxu0 %v17789_v39  ;;  %v17977_v39 = vand.u32 4294901760, %v17966_v36 }
 0x18d   :  { %15293 = vmatpush3.msra.mxu0 %v20924_v15  ;;  %15304 = vmatpush3.msra.mxu1 %v17178_v8 }
 0x18e   :  { %15295 = vmatmul.mubr.f32.vlgmr.msra.gmra.mxu0 %v2434_v61  ;;  %15305 = vmatprep.mubr.f32.mxu1 %v2425_v56  ;;  %v3039_v56 = vand.u32 4294901760, %v3038_v10  ;;  %v3046_v61 = vand.u32 4294901760, %v3045_v53  ;;  %v3052_v60 = vsub.f32 %v17966_v36, %v17977_v39 }
 0x18f   :  { %15308 = vmatprep.subr.mxu0 %v20925_v19  ;;  %15319 = vmatprep.subr.mxu1 %v17166_v3 }
 0x190   :  { %15306 = vmatmul.mubr.f32.vlgmr.msra.gmra.mxu1 %v2435_v62  ;;  %15309 = vmatpush3.msra.mxu0 %v20925_v19  ;;  %v3053_v44 = vand.u32 4294901760, %v3052_v60 }
 0x191   :  { %15320 = vmatpush3.msra.mxu1 %v17166_v3  ;;  %15310 = vmatprep.subr.mxu0 %v20926_v26 }
 0x192   :  { %15321 = vmatprep.subr.mxu1 %v17168_v4  ;;  %15311 = vmatpush3.msra.mxu0 %v20926_v26 }
 0x193   :  { %15322 = vmatpush3.msra.mxu1 %v17168_v4  ;;  %15312 = vmatprep.subr.mxu0 %v20927_v58 }
 0x194   :  { %15323 = vmatprep.subr.mxu1 %v17170_v5  ;;  %15313 = vmatpush3.msra.mxu0 %v20927_v58 }
 0x195   :  { %15324 = vmatpush3.msra.mxu1 %v17170_v5  ;;  %15314 = vmatprep.subr.mxu0 %v20928_v28 }
 0x196   :  { %15325 = vmatprep.subr.mxu1 %v17178_v8  ;;  %15315 = vmatpush3.msra.mxu0 %v20928_v28 }
 0x197   :  { %15316 = vmatprep.mubr.f32.mxu0 %v17774_v59  ;;  %15326 = vmatpush3.msra.mxu1 %v17178_v8 }
 0x198   :  { %15327 = vmatprep.mubr.f32.mxu1 %v17774_v59  ;;  %15317 = vmatmul.mubr.f32.vlgmr.msra.gmra.mxu0 %v17795_v42  ;;  %v17968_v59 = vand.u32 4294901760, %v13824_v25 }
 0x199   :  { %15328 = vmatmul.mubr.f32.vlgmr.msra.gmra.mxu1 %v17795_v42  ;;  %15330 = vmatprep.subr.mxu0 %v17875_v45 }
 0x19a   :  { %15331 = vmatpush3.msra.mxu0 %v17875_v45  ;;  %15349 = vmatprep.subr.mxu1 %v3011_v20  ;;  %v17980_v42 = vsub.f32 %v13824_v25, %v17968_v59 }
 0x19b   :  { %15332 = vmatprep.subr.mxu0 %v17883_v47  ;;  %15350 = vmatpush3.msra.mxu1 %v3011_v20 }
 0x19c   :  { %15333 = vmatpush3.msra.mxu0 %v17883_v47  ;;  %15351 = vmatprep.subr.mxu1 %v3018_v55  ;;  %v17987_v62 = vand.u32 4294901760, %v17980_v42 }
 0x19d   :  { %15334 = vmatprep.subr.mxu0 %v17896_v9  ;;  %15352 = vmatpush3.msra.mxu1 %v3018_v55 }
 0x19e   :  { %15335 = vmatpush3.msra.mxu0 %v17896_v9  ;;  %15353 = vmatprep.subr.mxu1 %v3025_v43  ;;  %v3059_v2 = vsub.f32 %v17980_v42, %v17987_v62 }
 0x19f   :  { %15336 = vmatprep.subr.mxu0 %v17911_v21  ;;  %15354 = vmatpush3.msra.mxu1 %v3025_v43 }
 0x1a0   :  { %15337 = vmatpush3.msra.mxu0 %v17911_v21  ;;  %15355 = vmatprep.subr.mxu1 %v3032_v30  ;;  %v3060_v7 = vand.u32 4294901760, %v3059_v2 }
 0x1a1   :  { %15338 = vmatprep.subr.mxu0 %v17927_v51  ;;  %15356 = vmatpush3.msra.mxu1 %v3032_v30 }
 0x1a2   :  { %15339 = vmatpush3.msra.mxu0 %v17927_v51  ;;  %15357 = vmatprep.subr.mxu1 %v3039_v56 }
 0x1a3   :  { %15340 = vmatprep.subr.mxu0 %v17938_v0  ;;  %15358 = vmatpush3.msra.mxu1 %v3039_v56 }
 0x1a4   :  { %15341 = vmatpush3.msra.mxu0 %v17938_v0  ;;  %15359 = vmatprep.subr.mxu1 %v3046_v61 }
 0x1a5   :  { %15342 = vmatprep.subr.mxu0 %v17952_v41  ;;  %15360 = vmatpush3.msra.mxu1 %v3046_v61 }
 0x1a6   :  { %15343 = vmatpush3.msra.mxu0 %v17952_v41  ;;  %15361 = vmatprep.subr.mxu1 %v3053_v44 }
 0x1a7   :  { %15344 = vmatprep.subr.mxu0 %v17968_v59  ;;  %15362 = vmatpush3.msra.mxu1 %v3053_v44 }
 0x1a8   :  { %15345 = vmatpush3.msra.mxu0 %v17968_v59  ;;  %15363 = vmatprep.subr.mxu1 %v3060_v7 }
 0x1a9   :  { %15368 = vmatprep.subr.mxu0 %v17881_v63  ;;  %15364 = vmatpush3.msra.mxu1 %v3060_v7 }
 0x1aa   :  { %15387 = vmatprep.subr.mxu1 %v17875_v45 }
 0x1de   :  { %v15073_v12 = vpop.f32.mrf.mxu1 }
 0x1e0   :  { %v17996_v18 = vpop.f32.mrf.mxu1 }
 0x1e1   :  { %20930 = vst [vmem:[#allocation3_spill] sm:$0xff] %v17996_v18 }
 0x1e6   :  { %v15054_v46 = vpop.f32.mrf.mxu0 }
 0x1e7   :  { %v1386_v24 = vadd.f32 %v15073_v12, %v15054_v46 }
 0x1e8   :  { %v17994_v32 = vpop.f32.mrf.mxu0 }
 0x1e9   :  { %20929 = vst [vmem:[#allocation2_spill] sm:$0xff] %v17994_v32 }
 0x1ef   :  { %v15111_v22 = vpop.f32.mrf.mxu1 }
 0x1f1   :  { %v18000_v6 = vpop.f32.mrf.mxu1 }
 0x1f2   :  { %20932 = vst [vmem:[#allocation5_spill] sm:$0xff] %v18000_v6 }
 0x1f7   :  { %v15092_v40 = vpop.f32.mrf.mxu0 }
 0x1f8   :  { %v1481_v20 = vadd.f32 %v15092_v40, %v1386_v24 }
 0x1f9   :  { %v17998_v55 = vpop.f32.mrf.mxu0 }
 0x1fa   :  { %v1570_v54 = vadd.f32 %v15111_v22, %v1481_v20  ;;  %20931 = vst [vmem:[#allocation4_spill] sm:$0xff] %v17998_v55 }
 0x201   :  { %v15149_v52 = vpop.f32.mrf.mxu1 }
 0x203   :  { %v18004_v10 = vpop.f32.mrf.mxu1 }
 0x204   :  { %20934 = vst [vmem:[#allocation7_spill] sm:$0xff] %v18004_v10 }
 0x209   :  { %v15130_v34 = vpop.f32.mrf.mxu0 }
 0x20a   :  { %v1671_v43 = vadd.f32 %v15130_v34, %v1570_v54 }
 0x20b   :  { %v18002_v30 = vpop.f32.mrf.mxu0 }
 0x20c   :  { %v1756_v25 = vadd.f32 %v15149_v52, %v1671_v43  ;;  %20933 = vst [vmem:[#allocation6_spill] sm:$0xff] %v18002_v30 }
 0x213   :  { %v15187_v61 = vpop.f32.mrf.mxu1 }
 0x215   :  { %v18008_v2 = vpop.f32.mrf.mxu1 }
 0x216   :  { %20936 = vst [vmem:[#allocation9_spill] sm:$0xff] %v18008_v2 }
 0x21b   :  { %v15168_v53 = vpop.f32.mrf.mxu0 }
 0x21c   :  { %v1855_v56 = vadd.f32 %v15168_v53, %v1756_v25 }
 0x21d   :  { %v18006_v44 = vpop.f32.mrf.mxu0 }
 0x21e   :  { %v1972_v60 = vadd.f32 %v15187_v61, %v1855_v56  ;;  %20935 = vst [vmem:[#allocation8_spill] sm:$0xff] %v18006_v44 }
 0x225   :  { %v15225_v46 = vpop.f32.mrf.mxu1 }
 0x227   :  { %v18012_v20 = vpop.f32.mrf.mxu1 }
 0x228   :  { %20938 = vst [vmem:[#allocation11_spill] sm:$0xff] %v18012_v20 }
 0x22d   :  { %v15206_v7 = vpop.f32.mrf.mxu0 }
 0x22e   :  { %v2067_v12 = vadd.f32 %v15206_v7, %v1972_v60 }
 0x22f   :  { %v18010_v40 = vpop.f32.mrf.mxu0 }
 0x230   :  { %v2156_v24 = vadd.f32 %v15225_v46, %v2067_v12  ;;  %20937 = vst [vmem:[#allocation10_spill] sm:$0xff] %v18010_v40 }
 0x237   :  { %v15263_v34 = vpop.f32.mrf.mxu1 }
 0x239   :  { %v18018_v53 = vpop.f32.mrf.mxu1 }
 0x23a   :  { %20941 = vst [vmem:[#allocation14_spill] sm:$0xff] %v18018_v53 }
 0x23e   :  { %v15244_v22 = vpop.f32.mrf.mxu0 }
 0x23f   :  { %v2257_v54 = vadd.f32 %v15244_v22, %v2156_v24 }
 0x240   :  { %v18016_v52 = vpop.f32.mrf.mxu0 }
 0x241   :  { %v18014_v43 = vadd.f32 %v15263_v34, %v2257_v54  ;;  %20940 = vst [vmem:[#allocation13_spill] sm:$0xff] %v18016_v52 }
 0x243   :  { %20939 = vst [vmem:[#allocation12_spill] sm:$0xff] %v18014_v43  ;;  %v15285_v56 = vpop.f32.mrf.mxu1 }
 0x245   :  { %v2530_v60 = vpop.f32.mrf.mxu1 }
 0x246   :  { %v15274_v25 = vpop.f32.mrf.mxu0 }
 0x247   :  { %v2537_v7 = vadd.f32 %v15285_v56, %v15274_v25 }
 0x248   :  { %v2429_v61 = vpop.f32.mrf.mxu0 }
 0x249   :  { %v2531_v40 = vadd.f32 %v2530_v60, %v2429_v61  ;;  %v13834_v60 = vld [vmem:[%s20922_s4 + $0xc0] sm:$0xff] }
 0x24e   :  { %v15296_v2 = vpop.f32.mrf.mxu0 }
 0x24f   :  { %v2624_v44 = vadd.f32 %v15296_v2, %v2537_v7 }
 0x250   :  { %v15307_v12 = vpop.f32.mrf.mxu1  ;;  %v2616_v46 = vpop.f32.mrf.mxu0 }
 0x251   :  { %v2617_v20 = vadd.f32 %v2616_v46, %v2531_v40  ;;  %v2709_v24 = vadd.f32 %v15307_v12, %v2624_v44 }
 0x252   :  { %v2700_v10 = vpop.f32.mrf.mxu1 }
 0x253   :  { %v2701_v54 = vadd.f32 %v2700_v10, %v2617_v20 }
 0x258   :  { %v15318_v22 = vpop.f32.mrf.mxu0 }
 0x259   :  { %v2798_v34 = vadd.f32 %v15318_v22, %v2709_v24  ;;  %v15329_v30 = vpop.f32.mrf.mxu1  ;;  %v18259_v24 = vand.u32 4294901760, %v13834_v60 }
 0x25a   :  { %v2791_v52 = vpop.f32.mrf.mxu0 }
 0x25b   :  { %v2879_v6 = vadd.f32 %v15329_v30, %v2798_v34  ;;  %v2792_v55 = vadd.f32 %v2791_v52, %v2701_v54  ;;  %v2872_v53 = vpop.f32.mrf.mxu1 }
 0x25d   :  { %v2895_v18 = vsel %vm1172_vm1, %v2879_v6, 0  ;;  %v2873_v32 = vadd.f32 %v2872_v53, %v2792_v55  ;;  %v13835_v6 = vld [vmem:[%s20922_s4 + $0xc8] sm:$0xff] }
 0x25e   :  { %v18021_v43 = vand.u32 4294901760, %v2895_v18  ;;  %v18243_v53 = vand.u32 4294901760, %v13835_v6 }
 0x25f   :  { %v2892_v25 = vsel %vm1172_vm1, %v2873_v32, 0 }
 0x260   :  { %v2981_v2 = vsub.f32 %v2895_v18, %v18021_v43  ;;  %v2970_v40 = vand.u32 4294901760, %v2892_v25  ;;  %v18257_v46 = vsub.f32 %v13835_v6, %v18243_v53 }
 0x262   :  { %v2982_v56 = vand.u32 4294901760, %v2981_v2  ;;  %v2971_v44 = vsub.f32 %v2892_v25, %v2970_v40  ;;  %15365 = vmatprep.mubr.f32.mxu1 %v2970_v40  ;;  %v18268_v34 = vand.u32 4294901760, %v18257_v46  ;;  %v18271_v25 = vsub.f32 %v13834_v60, %v18259_v24 }
 0x263   :  { %15366 = vmatmul.mubr.f32.vlgmr.msra.gmra.mxu1 %v18021_v43 }
 0x264   :  { %15388 = vmatpush3.msra.mxu1 %v17875_v45  ;;  %v2972_v30 = vand.u32 4294901760, %v2971_v44  ;;  %v2983_v10 = vsub.f32 %v2981_v2, %v2982_v56 }
 0x265   :  { %15389 = vmatprep.subr.mxu1 %v17883_v47 }
 0x266   :  { %15390 = vmatpush3.msra.mxu1 %v17883_v47  ;;  %15403 = vmatprep.mubr.f32.mxu1 %v2972_v30  ;;  %v2973_v55 = vsub.f32 %v2971_v44, %v2972_v30  ;;  %v2984_v18 = vand.u32 4294901760, %v2983_v10 }
 0x267   :  { %15391 = vmatprep.subr.mxu1 %v17896_v9 }
 0x268   :  { %15392 = vmatpush3.msra.mxu1 %v17896_v9  ;;  %v2974_v32 = vand.u32 4294901760, %v2973_v55 }
 0x269   :  { %15393 = vmatprep.subr.mxu1 %v17911_v21 }
 0x26a   :  { %15394 = vmatpush3.msra.mxu1 %v17911_v21  ;;  %15346 = vmatprep.mubr.f32.mxu0 %v2974_v32 }
 0x26b   :  { %15395 = vmatprep.subr.mxu1 %v17927_v51  ;;  %15347 = vmatmul.mubr.f32.vlgmr.msra.gmra.mxu0 %v2984_v18 }
 0x26c   :  { %15369 = vmatpush3.msra.mxu0 %v17881_v63  ;;  %15396 = vmatpush3.msra.mxu1 %v17927_v51  ;;  %v13832_v63 = vld [vmem:[%s20915_s25 + $0x30] sm:$0xff] }
 0x26d   :  { %15370 = vmatprep.subr.mxu0 %v17894_v50  ;;  %15384 = vmatprep.mubr.f32.mxu0 %v2971_v44  ;;  %v18278_v44 = vand.u32 4294901760, %v18271_v25 }
 0x26e   :  { %15397 = vmatprep.subr.mxu1 %v17938_v0  ;;  %15371 = vmatpush3.msra.mxu0 %v17894_v50  ;;  %v3483_v50 = vsel %vm83_vm0, %v13832_v63, 0 }
 0x26f   :  { %15398 = vmatpush3.msra.mxu1 %v17938_v0  ;;  %15372 = vmatprep.subr.mxu0 %v17909_v17  ;;  %v4193_v10 = vsub.f32 %v18271_v25, %v18278_v44 }
 0x270   :  { %15399 = vmatprep.subr.mxu1 %v17952_v41  ;;  %15373 = vmatpush3.msra.mxu0 %v17909_v17 }
 0x271   :  { %15400 = vmatpush3.msra.mxu1 %v17952_v41  ;;  %15374 = vmatprep.subr.mxu0 %v17924_v33  ;;  %v4194_v55 = vand.u32 4294901760, %v4193_v10 }
 0x272   :  { %15401 = vmatprep.subr.mxu1 %v17968_v59  ;;  %15375 = vmatpush3.msra.mxu0 %v17924_v33 }
 0x273   :  { %15402 = vmatpush3.msra.mxu1 %v17968_v59  ;;  %15376 = vmatprep.subr.mxu0 %v17941_v14 }
 0x274   :  { %15404 = vmatmul.mubr.f32.vlgmr.msra.gmra.mxu1 %v2982_v56  ;;  %15425 = vmatprep.subr.mxu1 %v17875_v45  ;;  %v4186_v56 = vsub.f32 %v18257_v46, %v18268_v34 }
 0x275   :  { %15377 = vmatpush3.msra.mxu0 %v17941_v14  ;;  %15426 = vmatpush3.msra.mxu1 %v17875_v45  ;;  %v18067_v45 = vand.u32 4294901760, %v3483_v50 }
 0x276   :  { %15441 = vmatprep.mubr.f32.mxu1 %v2970_v40  ;;  %15378 = vmatprep.subr.mxu0 %v17950_v48  ;;  %v4187_v30 = vand.u32 4294901760, %v4186_v56 }
 0x277   :  { %15427 = vmatprep.subr.mxu1 %v17883_v47  ;;  %15379 = vmatpush3.msra.mxu0 %v17950_v48  ;;  %v18080_v17 = vsub.f32 %v3483_v50, %v18067_v45 }
 0x278   :  { %15428 = vmatpush3.msra.mxu1 %v17883_v47  ;;  %15380 = vmatprep.subr.mxu0 %v17966_v36  ;;  %v13833_v47 = vld [vmem:[%s20915_s25 + $0x38] sm:$0x3f]  ;;  %s20958_s25 = sld [smem:[#allocation21_spill]] }
 0x279   :  { %15429 = vmatprep.subr.mxu1 %v17896_v9  ;;  %15381 = vmatpush3.msra.mxu0 %v17966_v36 }
 0x27a   :  { %15430 = vmatpush3.msra.mxu1 %v17896_v9  ;;  %15382 = vmatprep.subr.mxu0 %v17980_v42  ;;  %v3486_v9 = vsel %vm83_vm0, %v13833_v47, 0 }
 0x27b   :  { %15431 = vmatprep.subr.mxu1 %v17911_v21  ;;  %15383 = vmatpush3.msra.mxu0 %v17980_v42 }
 0x27c   :  { %15432 = vmatpush3.msra.mxu1 %v17911_v21  ;;  %15385 = vmatmul.mubr.f32.vlgmr.msra.gmra.mxu0 %v2981_v2  ;;  %v18086_v21 = vand.u32 4294901760, %v3486_v9 }
 0x27d   :  { %15406 = vmatprep.subr.mxu0 %v17891_v49  ;;  %15433 = vmatprep.subr.mxu1 %v17927_v51 }
 0x27e   :  { %15407 = vmatpush3.msra.mxu0 %v17891_v49  ;;  %15422 = vmatprep.mubr.f32.mxu0 %v2970_v40  ;;  %v3559_v49 = vand.u32 4294901760, %v18080_v17 }
 0x27f   :  { %15434 = vmatpush3.msra.mxu1 %v17927_v51  ;;  %15408 = vmatprep.subr.mxu0 %v17906_v16 }
 0x280   :  { %15435 = vmatprep.subr.mxu1 %v17938_v0  ;;  %15409 = vmatpush3.msra.mxu0 %v17906_v16  ;;  %v3568_v16 = vsub.f32 %v3486_v9, %v18086_v21 }
 0x281   :  { %15436 = vmatpush3.msra.mxu1 %v17938_v0  ;;  %15410 = vmatprep.subr.mxu0 %v17921_v23 }
 0x282   :  { %15437 = vmatprep.subr.mxu1 %v17952_v41  ;;  %15411 = vmatpush3.msra.mxu0 %v17921_v23  ;;  %v3560_v23 = vsub.f32 %v18080_v17, %v3559_v49  ;;  %v3569_v33 = vand.u32 4294901760, %v3568_v16 }
 0x283   :  { %15438 = vmatpush3.msra.mxu1 %v17952_v41  ;;  %15412 = vmatprep.subr.mxu0 %v17936_v38 }
 0x284   :  { %15439 = vmatprep.subr.mxu1 %v17968_v59  ;;  %15413 = vmatpush3.msra.mxu0 %v17936_v38  ;;  %v3561_v51 = vand.u32 4294901760, %v3560_v23  ;;  %v13837_v38 = vld [vmem:[%s20922_s4 + $0xd8] sm:$0xff] }
 0x285   :  { %15440 = vmatpush3.msra.mxu1 %v17968_v59  ;;  %15414 = vmatprep.subr.mxu0 %v17956_v57 }
 0x286   :  { %15442 = vmatmul.mubr.f32.vlgmr.msra.gmra.mxu1 %v18021_v43  ;;  %15415 = vmatpush3.msra.mxu0 %v17956_v57  ;;  %v18218_v57 = vand.u32 4294901760, %v13837_v38 }
 0x287   :  { %15416 = vmatprep.subr.mxu0 %v17963_v27  ;;  %15455 = vmatprep.subr.mxu1 %v17235_v29 }
 0x288   :  { %15417 = vmatpush3.msra.mxu0 %v17963_v27  ;;  %15456 = vmatpush3.msra.mxu1 %v17235_v29  ;;  %v3570_v29 = vsub.f32 %v3568_v16, %v3569_v33  ;;  %v13836_v27 = vld [vmem:[%s20922_s4 + $0xd0] sm:$0xff] }
 0x289   :  { %15418 = vmatprep.subr.mxu0 %v17977_v39  ;;  %15457 = vmatprep.subr.mxu1 %v17238_v31  ;;  %v18229_v42 = vand.u32 4294901760, %v13836_v27 }
 0x28a   :  { %15419 = vmatpush3.msra.mxu0 %v17977_v39  ;;  %15458 = vmatpush3.msra.mxu1 %v17238_v31  ;;  %v3571_v31 = vand.u32 4294901760, %v3570_v29 }
 0x28b   :  { %15420 = vmatprep.subr.mxu0 %v17987_v62  ;;  %15459 = vmatprep.subr.mxu1 %v17246_v35  ;;  %v18241_v52 = vsub.f32 %v13836_v27, %v18229_v42 }
 0x28c   :  { %15421 = vmatpush3.msra.mxu0 %v17987_v62  ;;  %15460 = vmatpush3.msra.mxu1 %v17246_v35  ;;  %v18232_v62 = vsub.f32 %v13837_v38, %v18218_v57 }
 0x28d   :  { %15423 = vmatmul.mubr.f32.vlgmr.msra.gmra.mxu0 %v18021_v43  ;;  %15444 = vmatprep.subr.mxu0 %v17166_v3  ;;  %v18254_v12 = vand.u32 4294901760, %v18241_v52 }
 0x28e   :  { %15445 = vmatpush3.msra.mxu0 %v17166_v3  ;;  %15461 = vmatprep.subr.mxu1 %v17250_v37  ;;  %v18247_v61 = vand.u32 4294901760, %v18232_v62 }
 0x28f   :  { %15446 = vmatprep.subr.mxu0 %v17168_v4  ;;  %15452 = vmatprep.mubr.f32.mxu0 %v3561_v51  ;;  %v4179_v54 = vsub.f32 %v18241_v52, %v18254_v12 }
 0x290   :  { %15447 = vmatpush3.msra.mxu0 %v17168_v4  ;;  %15462 = vmatpush3.msra.mxu1 %v17250_v37  ;;  %v4172_v22 = vsub.f32 %v18232_v62, %v18247_v61 }
 0x291   :  { %15448 = vmatprep.subr.mxu0 %v17170_v5  ;;  %15463 = vmatprep.mubr.f32.mxu1 %v18067_v45  ;;  %v4180_v40 = vand.u32 4294901760, %v4179_v54 }
 0x292   :  { %15449 = vmatpush3.msra.mxu0 %v17170_v5  ;;  %15464 = vmatmul.mubr.f32.vlgmr.msra.gmra.mxu1 %v18086_v21  ;;  %v4173_v2 = vand.u32 4294901760, %v4172_v22 }
 0x293   :  { %15450 = vmatprep.subr.mxu0 %v17178_v8  ;;  %15477 = vmatprep.subr.mxu1 %v17166_v3 }
 0x294   :  { %15451 = vmatpush3.msra.mxu0 %v17178_v8  ;;  %15478 = vmatpush3.msra.mxu1 %v17166_v3 }
 0x295   :  { %15453 = vmatmul.mubr.f32.vlgmr.msra.gmra.mxu0 %v3571_v31  ;;  %15466 = vmatprep.subr.mxu0 %v17186_v11  ;;  %v20942_v31 = vld [vmem:[#allocation12_spill] sm:$0xff] }
 0x296   :  { %15467 = vmatpush3.msra.mxu0 %v17186_v11  ;;  %15479 = vmatprep.subr.mxu1 %v17168_v4 }
 0x297   :  { %15468 = vmatprep.subr.mxu0 %v17191_v13  ;;  %15480 = vmatpush3.msra.mxu1 %v17168_v4 }
 0x298   :  { %15469 = vmatpush3.msra.mxu0 %v17191_v13  ;;  %15481 = vmatprep.subr.mxu1 %v17170_v5  ;;  %v13839_v13 = vld [vmem:[%s20922_s4 + $0xe8] sm:$0xff] }
 0x299   :  { %15470 = vmatprep.subr.mxu0 %v20923_v1  ;;  %15482 = vmatpush3.msra.mxu1 %v17170_v5 }
 0x29a   :  { %15471 = vmatpush3.msra.mxu0 %v20923_v1  ;;  %15483 = vmatprep.subr.mxu1 %v17178_v8  ;;  %v18187_v1 = vand.u32 4294901760, %v13839_v13 }
 0x29b   :  { %15472 = vmatprep.subr.mxu0 %v20924_v15  ;;  %15474 = vmatprep.mubr.f32.mxu0 %v18080_v17 }
 0x29c   :  { %15473 = vmatpush3.msra.mxu0 %v20924_v15  ;;  %15484 = vmatpush3.msra.mxu1 %v17178_v8  ;;  %v13838_v15 = vld [vmem:[%s20922_s4 + $0xe0] sm:$0xff] }
 0x29d   :  { %15475 = vmatmul.mubr.f32.vlgmr.msra.gmra.mxu0 %v3568_v16  ;;  %15485 = vmatprep.mubr.f32.mxu1 %v3559_v49 }
 0x29e   :  { %15488 = vmatprep.subr.mxu0 %v20925_v19  ;;  %15499 = vmatprep.subr.mxu1 %v17166_v3 }
 0x29f   :  { %15486 = vmatmul.mubr.f32.vlgmr.msra.gmra.mxu1 %v3569_v33  ;;  %15489 = vmatpush3.msra.mxu0 %v20925_v19 }
 0x2a0   :  { %15500 = vmatpush3.msra.mxu1 %v17166_v3  ;;  %15490 = vmatprep.subr.mxu0 %v20926_v26  ;;  %v13841_v3 = vld [vmem:[%s20922_s4 + $0xf8] sm:$0xff] }
 0x2a1   :  { %15501 = vmatprep.subr.mxu1 %v17168_v4  ;;  %15491 = vmatpush3.msra.mxu0 %v20926_v26 }
 0x2a2   :  { %15502 = vmatpush3.msra.mxu1 %v17168_v4  ;;  %15492 = vmatprep.subr.mxu0 %v20927_v58  ;;  %v18166_v4 = vand.u32 4294901760, %v13841_v3 }
 0x2a3   :  { %15503 = vmatprep.subr.mxu1 %v17170_v5  ;;  %15493 = vmatpush3.msra.mxu0 %v20927_v58  ;;  %v18200_v58 = vsub.f32 %v13839_v13, %v18187_v1 }
 0x2a4   :  { %15504 = vmatpush3.msra.mxu1 %v17170_v5  ;;  %15494 = vmatprep.subr.mxu0 %v20928_v28  ;;  %v13840_v5 = vld [vmem:[%s20922_s4 + $0xf0] sm:$0xff]  ;;  %v18172_v11 = vsub.f32 %v13841_v3, %v18166_v4 }
 0x2a5   :  { %15505 = vmatprep.subr.mxu1 %v17178_v8  ;;  %15495 = vmatpush3.msra.mxu0 %v20928_v28  ;;  %v18202_v28 = vand.u32 4294901760, %v13838_v15  ;;  %v18212_v48 = vand.u32 4294901760, %v18200_v58 }
 0x2a6   :  { %15496 = vmatprep.mubr.f32.mxu0 %v18067_v45  ;;  %15506 = vmatpush3.msra.mxu1 %v17178_v8  ;;  %v18174_v8 = vand.u32 4294901760, %v13840_v5  ;;  %v18182_v35 = vand.u32 4294901760, %v18172_v11 }
 0x2a7   :  { %15507 = vmatprep.mubr.f32.mxu1 %v18067_v45  ;;  %15497 = vmatmul.mubr.f32.vlgmr.msra.gmra.mxu0 %v18086_v21  ;;  %v18215_v41 = vsub.f32 %v13838_v15, %v18202_v28  ;;  %v4158_v59 = vsub.f32 %v18200_v58, %v18212_v48 }
 0x2a8   :  { %15508 = vmatmul.mubr.f32.vlgmr.msra.gmra.mxu1 %v18086_v21  ;;  %15510 = vmatprep.subr.mxu0 %v18166_v4  ;;  %v18185_v37 = vsub.f32 %v13840_v5, %v18174_v8  ;;  %v4144_v19 = vsub.f32 %v18172_v11, %v18182_v35 }
 0x2a9   :  { %15511 = vmatpush3.msra.mxu0 %v18166_v4  ;;  %v18227_v39 = vand.u32 4294901760, %v18215_v41  ;;  %v4159_v20 = vand.u32 4294901760, %v4158_v59 }
 0x2aa   :  { %15512 = vmatprep.subr.mxu0 %v18174_v8  ;;  %v18197_v26 = vand.u32 4294901760, %v18185_v37  ;;  %v4145_v0 = vand.u32 4294901760, %v4144_v19 }
 0x2ab   :  { %15513 = vmatpush3.msra.mxu0 %v18174_v8  ;;  %v4165_v43 = vsub.f32 %v18215_v41, %v18227_v39 }
 0x2ac   :  { %15514 = vmatprep.subr.mxu0 %v18187_v1  ;;  %v4151_v14 = vsub.f32 %v18185_v37, %v18197_v26  ;;  %15529 = vmatprep.subr.mxu1 %v4145_v0 }
 0x2ad   :  { %15515 = vmatpush3.msra.mxu0 %v18187_v1  ;;  %15530 = vmatpush3.msra.mxu1 %v4145_v0  ;;  %v4166_v7 = vand.u32 4294901760, %v4165_v43 }
 0x2ae   :  { %15516 = vmatprep.subr.mxu0 %v18202_v28  ;;  %v4152_v36 = vand.u32 4294901760, %v4151_v14 }
 0x2af   :  { %15517 = vmatpush3.msra.mxu0 %v18202_v28 }
 0x2b0   :  { %15518 = vmatprep.subr.mxu0 %v18218_v57  ;;  %15531 = vmatprep.subr.mxu1 %v4152_v36 }
 0x2b1   :  { %15519 = vmatpush3.msra.mxu0 %v18218_v57  ;;  %15532 = vmatpush3.msra.mxu1 %v4152_v36 }
 0x2b2   :  { %15520 = vmatprep.subr.mxu0 %v18229_v42  ;;  %15533 = vmatprep.subr.mxu1 %v4159_v20 }
 0x2b3   :  { %15521 = vmatpush3.msra.mxu0 %v18229_v42  ;;  %15534 = vmatpush3.msra.mxu1 %v4159_v20 }
 0x2b4   :  { %15522 = vmatprep.subr.mxu0 %v18243_v53  ;;  %15535 = vmatprep.subr.mxu1 %v4166_v7 }
 0x2b5   :  { %15523 = vmatpush3.msra.mxu0 %v18243_v53  ;;  %15536 = vmatpush3.msra.mxu1 %v4166_v7 }
 0x2b6   :  { %15524 = vmatprep.subr.mxu0 %v18259_v24  ;;  %15537 = vmatprep.subr.mxu1 %v4173_v2 }
 0x2b7   :  { %15525 = vmatpush3.msra.mxu0 %v18259_v24  ;;  %15538 = vmatpush3.msra.mxu1 %v4173_v2 }
 0x2b8   :  { %15548 = vmatprep.subr.mxu0 %v18172_v11  ;;  %15539 = vmatprep.subr.mxu1 %v4180_v40 }
 0x2b9   :  { %15540 = vmatpush3.msra.mxu1 %v4180_v40 }
 0x2ba   :  { %15541 = vmatprep.subr.mxu1 %v4187_v30 }
 0x2bb   :  { %15542 = vmatpush3.msra.mxu1 %v4187_v30 }
 0x2bc   :  { %15543 = vmatprep.subr.mxu1 %v4194_v55 }
 0x2bd   :  { %15544 = vmatpush3.msra.mxu1 %v4194_v55 }
 0x2be   :  { %15567 = vmatprep.subr.mxu1 %v18166_v4 }
 0x323   :  { %v15367_v32 = vpop.f32.mrf.mxu1 }
 0x325   :  { %v18287_v45 = vpop.f32.mrf.mxu1 }
 0x32b   :  { %v15348_v18 = vpop.f32.mrf.mxu0 }
 0x32c   :  { %v3104_v63 = vadd.f32 %v15367_v32, %v15348_v18 }
 0x32d   :  { %v18285_v50 = vpop.f32.mrf.mxu0 }
 0x334   :  { %v15405_v17 = vpop.f32.mrf.mxu1 }
 0x336   :  { %v18291_v16 = vpop.f32.mrf.mxu1 }
 0x33c   :  { %v15386_v47 = vpop.f32.mrf.mxu0 }
 0x33d   :  { %v3199_v9 = vadd.f32 %v15386_v47, %v3104_v63 }
 0x33e   :  { %v18289_v49 = vpop.f32.mrf.mxu0 }
 0x33f   :  { %v3288_v21 = vadd.f32 %v15405_v17, %v3199_v9 }
 0x346   :  { %v15443_v51 = vpop.f32.mrf.mxu1 }
 0x348   :  { %v18298_v15 = vpop.f32.mrf.mxu1 }
 0x34d   :  { %v15424_v23 = vpop.f32.mrf.mxu0 }
 0x34e   :  { %v3389_v33 = vadd.f32 %v15424_v23, %v3288_v21 }
 0x34f   :  { %v18296_v5 = vpop.f32.mrf.mxu0 }
 0x350   :  { %v3474_v29 = vadd.f32 %v15443_v51, %v3389_v33 }
 0x352   :  { %v18294_v3 = vadd.f32 %v3474_v29, %v20942_v31  ;;  %v15465_v19 = vpop.f32.mrf.mxu1 }
 0x354   :  { %v3664_v14 = vpop.f32.mrf.mxu1 }
 0x355   :  { %v15454_v13 = vpop.f32.mrf.mxu0 }
 0x356   :  { %v3671_v27 = vadd.f32 %v15465_v19, %v15454_v13  ;;  %v20952_v19 = vld [vmem:[#allocation10_spill] sm:$0xff] }
 0x357   :  { %v3563_v38 = vpop.f32.mrf.mxu0 }
 0x358   :  { %v3665_v6 = vadd.f32 %v3664_v14, %v3563_v38 }
 0x35d   :  { %v15476_v0 = vpop.f32.mrf.mxu0 }
 0x35e   :  { %v3758_v20 = vadd.f32 %v15476_v0, %v3671_v27 }
 0x35f   :  { %v15487_v36 = vpop.f32.mrf.mxu1  ;;  %v3750_v59 = vpop.f32.mrf.mxu0 }
 0x360   :  { %v3751_v43 = vadd.f32 %v3750_v59, %v3665_v6  ;;  %v3843_v7 = vadd.f32 %v15487_v36, %v3758_v20  ;;  %v20953_v6 = vld [vmem:[#allocation11_spill] sm:$0xff] }
 0x361   :  { %v3834_v60 = vpop.f32.mrf.mxu1 }
 0x362   :  { %v3835_v54 = vadd.f32 %v3834_v60, %v3751_v43 }
 0x367   :  { %v15498_v22 = vpop.f32.mrf.mxu0 }
 0x368   :  { %v3932_v2 = vadd.f32 %v15498_v22, %v3843_v7  ;;  %v15509_v40 = vpop.f32.mrf.mxu1  ;;  %v20954_v22 = vld [vmem:[#allocation13_spill] sm:$0xff] }
 0x369   :  { %v3925_v56 = vpop.f32.mrf.mxu0 }
 0x36a   :  { %v4013_v30 = vadd.f32 %v15509_v40, %v3932_v2  ;;  %v3926_v10 = vadd.f32 %v3925_v56, %v3835_v54  ;;  %v4006_v55 = vpop.f32.mrf.mxu1 }
 0x36c   :  { %v4029_v32 = vsel %vm1172_vm1, %v4013_v30, 0  ;;  %v4007_v18 = vadd.f32 %v4006_v55, %v3926_v10 }
 0x36d   :  { %v18301_v63 = vand.u32 4294901760, %v4029_v32 }
 0x36e   :  { %v4026_v47 = vsel %vm1172_vm1, %v4007_v18, 0  ;;  %v20955_v18 = vld [vmem:[#allocation14_spill] sm:$0xff] }
 0x36f   :  { %v4115_v9 = vsub.f32 %v4029_v32, %v18301_v63  ;;  %v4104_v17 = vand.u32 4294901760, %v4026_v47 }
 0x371   :  { %v4116_v21 = vand.u32 4294901760, %v4115_v9  ;;  %v4105_v23 = vsub.f32 %v4026_v47, %v4104_v17  ;;  %15545 = vmatprep.mubr.f32.mxu1 %v4104_v17 }
 0x372   :  { %15546 = vmatmul.mubr.f32.vlgmr.msra.gmra.mxu1 %v18301_v63 }
 0x373   :  { %15568 = vmatpush3.msra.mxu1 %v18166_v4  ;;  %v4106_v33 = vand.u32 4294901760, %v4105_v23  ;;  %v4117_v51 = vsub.f32 %v4115_v9, %v4116_v21 }
 0x374   :  { %15569 = vmatprep.subr.mxu1 %v18174_v8 }
 0x375   :  { %15570 = vmatpush3.msra.mxu1 %v18174_v8  ;;  %15583 = vmatprep.mubr.f32.mxu1 %v4106_v33  ;;  %v4107_v29 = vsub.f32 %v4105_v23, %v4106_v33  ;;  %v4118_v13 = vand.u32 4294901760, %v4117_v51 }
 0x376   :  { %15571 = vmatprep.subr.mxu1 %v18187_v1 }
 0x377   :  { %15572 = vmatpush3.msra.mxu1 %v18187_v1  ;;  %v4108_v31 = vand.u32 4294901760, %v4107_v29 }
 0x378   :  { %15573 = vmatprep.subr.mxu1 %v18202_v28 }
 0x379   :  { %15574 = vmatpush3.msra.mxu1 %v18202_v28  ;;  %15526 = vmatprep.mubr.f32.mxu0 %v4108_v31  ;;  %v13843_v31 = vld [vmem:[%s20951_s6 + $0x8] sm:$0x3f] }
 0x37a   :  { %15575 = vmatprep.subr.mxu1 %v18218_v57  ;;  %15527 = vmatmul.mubr.f32.vlgmr.msra.gmra.mxu0 %v4118_v13 }
 0x37b   :  { %15549 = vmatpush3.msra.mxu0 %v18172_v11  ;;  %15576 = vmatpush3.msra.mxu1 %v18218_v57  ;;  %v20943_v11 = vld [vmem:[#allocation2_spill] sm:$0xff] }
 0x37c   :  { %15550 = vmatprep.subr.mxu0 %v18185_v37  ;;  %15564 = vmatprep.mubr.f32.mxu0 %v4105_v23 }
 0x37d   :  { %15577 = vmatprep.subr.mxu1 %v18229_v42  ;;  %15551 = vmatpush3.msra.mxu0 %v18185_v37  ;;  %v20945_v37 = vld [vmem:[#allocation4_spill] sm:$0xff] }
 0x37e   :  { %15578 = vmatpush3.msra.mxu1 %v18229_v42  ;;  %15552 = vmatprep.subr.mxu0 %v18200_v58 }
 0x37f   :  { %15579 = vmatprep.subr.mxu1 %v18243_v53  ;;  %15553 = vmatpush3.msra.mxu0 %v18200_v58 }
 0x380   :  { %15580 = vmatpush3.msra.mxu1 %v18243_v53  ;;  %15554 = vmatprep.subr.mxu0 %v18215_v41 }
 0x381   :  { %15581 = vmatprep.subr.mxu1 %v18259_v24  ;;  %15555 = vmatpush3.msra.mxu0 %v18215_v41 }
 0x382   :  { %15582 = vmatpush3.msra.mxu1 %v18259_v24  ;;  %15556 = vmatprep.subr.mxu0 %v18232_v62 }
 0x383   :  { %15584 = vmatmul.mubr.f32.vlgmr.msra.gmra.mxu1 %v4116_v21  ;;  %15605 = vmatprep.subr.mxu1 %v18166_v4 }
 0x384   :  { %15557 = vmatpush3.msra.mxu0 %v18232_v62  ;;  %15606 = vmatpush3.msra.mxu1 %v18166_v4  ;;  %v17030_v4 = vmov 0.0  }
 0x385   :  { %15621 = vmatprep.mubr.f32.mxu1 %v4104_v17  ;;  %15558 = vmatprep.subr.mxu0 %v18241_v52 }
 0x386   :  { %15607 = vmatprep.subr.mxu1 %v18174_v8  ;;  %15559 = vmatpush3.msra.mxu0 %v18241_v52 }
 0x387   :  { %15608 = vmatpush3.msra.mxu1 %v18174_v8  ;;  %15560 = vmatprep.subr.mxu0 %v18257_v46  ;;  %v20944_v8 = vld [vmem:[#allocation3_spill] sm:$0xff] }
 0x388   :  { %15609 = vmatprep.subr.mxu1 %v18187_v1  ;;  %15561 = vmatpush3.msra.mxu0 %v18257_v46  ;;  %v20950_v46 = vld [vmem:[#allocation9_spill] sm:$0xff] }
 0x389   :  { %15610 = vmatpush3.msra.mxu1 %v18187_v1  ;;  %15562 = vmatprep.subr.mxu0 %v18271_v25 }
 0x38a   :  { %15611 = vmatprep.subr.mxu1 %v18202_v28  ;;  %15563 = vmatpush3.msra.mxu0 %v18271_v25  ;;  %v4624_v25 = vld [vmem:[%s20951_s6] sm:$0x3f] }
 0x38b   :  { %15612 = vmatpush3.msra.mxu1 %v18202_v28  ;;  %15565 = vmatmul.mubr.f32.vlgmr.msra.gmra.mxu0 %v4115_v9  ;;  %v20947_v28 = vld [vmem:[#allocation6_spill] sm:$0xff]  ;;  %v4627_v36 = vsel %vm4625_vm3, %v4624_v25, 0 }
 0x38c   :  { %15586 = vmatprep.subr.mxu0 %v18182_v35  ;;  %15613 = vmatprep.subr.mxu1 %v18218_v57  ;;  %v18395_v60 = vand.u32 4294901760, %v4627_v36 }
 0x38d   :  { %15587 = vmatpush3.msra.mxu0 %v18182_v35  ;;  %15602 = vmatprep.mubr.f32.mxu0 %v4104_v17  ;;  %v1380_v35 = vadd.f32 %v20944_v8, %v20943_v11  ;;  %v13842_v17 = vld [vmem:[%s20956_s3] ss:$0 sm:$0xff] }
 0x38e   :  { %15614 = vmatpush3.msra.mxu1 %v18218_v57  ;;  %15588 = vmatprep.subr.mxu0 %v18197_v26  ;;  %v20948_v57 = vld [vmem:[#allocation7_spill] sm:$0xff] }
 0x38f   :  { %15615 = vmatprep.subr.mxu1 %v18229_v42  ;;  %15589 = vmatpush3.msra.mxu0 %v18197_v26  ;;  %v1474_v1 = vadd.f32 %v20945_v37, %v1380_v35  ;;  %v20946_v26 = vld [vmem:[#allocation5_spill] sm:$0xff]  ;;  %v5102_v35 = vsel %vm4625_vm3, %v13843_v31, 0 }
 0x390   :  { %15616 = vmatpush3.msra.mxu1 %v18229_v42  ;;  %15590 = vmatprep.subr.mxu0 %v18212_v48  ;;  %v20949_v42 = vld [vmem:[#allocation8_spill] sm:$0xff] }
 0x391   :  { %15617 = vmatprep.subr.mxu1 %v18243_v53  ;;  %15591 = vmatpush3.msra.mxu0 %v18212_v48  ;;  %v1562_v58 = vadd.f32 %v20946_v26, %v1474_v1 }
 0x392   :  { %15618 = vmatpush3.msra.mxu1 %v18243_v53  ;;  %15592 = vmatprep.subr.mxu0 %v18227_v39 }
 0x393   :  { %15619 = vmatprep.subr.mxu1 %v18259_v24  ;;  %15593 = vmatpush3.msra.mxu0 %v18227_v39  ;;  %v1665_v48 = vadd.f32 %v20947_v28, %v1562_v58  ;;  %v18418_v28 = vand.u32 4294901760, %v5102_v35 }
 0x394   :  { %15620 = vmatpush3.msra.mxu1 %v18259_v24  ;;  %15594 = vmatprep.subr.mxu0 %v18247_v61 }
 0x395   :  { %15622 = vmatmul.mubr.f32.vlgmr.msra.gmra.mxu1 %v18301_v63  ;;  %15595 = vmatpush3.msra.mxu0 %v18247_v61  ;;  %v1750_v39 = vadd.f32 %v20948_v57, %v1665_v48  ;;  %v3098_v61 = vadd.f32 %v18287_v45, %v18285_v50 }
 0x396   :  { %15596 = vmatprep.subr.mxu0 %v18254_v12  ;;  %15631 = vmatprep.subr.mxu1 %v17030_v4 }
 0x397   :  { %15597 = vmatpush3.msra.mxu0 %v18254_v12  ;;  %15635 = vmatprep.mubr.msk.f32.mxu1 %vm17031_vm2, %v17030_v4  ;;  %v1845_v62 = vadd.f32 %v20949_v42, %v1750_v39  ;;  %v18437_v42 = vsub.f32 %v5102_v35, %v18418_v28 }
 0x398   :  { %15598 = vmatprep.subr.mxu0 %v18268_v34 }
 0x399   :  { %15599 = vmatpush3.msra.mxu0 %v18268_v34  ;;  %v1966_v24 = vadd.f32 %v20950_v46, %v1845_v62  ;;  %v3192_v34 = vadd.f32 %v18289_v49, %v3098_v61 }
 0x39a   :  { %15600 = vmatprep.subr.mxu0 %v18278_v44 }
 0x39b   :  { %15601 = vmatpush3.msra.mxu0 %v18278_v44  ;;  %v2060_v38 = vadd.f32 %v20952_v19, %v1966_v24  ;;  %v3280_v50 = vadd.f32 %v18291_v16, %v3192_v34  ;;  %v18400_v16 = vsub.f32 %v4627_v36, %v18395_v60  ;;  %v13850_v34 = vld [vmem:[%s20957_s9 + $0x68] sm:$0xff] }
 0x39c   :  { %15603 = vmatmul.mubr.f32.vlgmr.msra.gmra.mxu0 %v18301_v63  ;;  %15624 = vmatprep.subr.mxu0 %v17030_v4  ;;  %v18528_v25 = vand.u32 4294901760, %v13850_v34 }
 0x39d   :  { %15628 = vmatprep.mubr.msk.f32.mxu0 %vm17031_vm2, %v17030_v4  ;;  %v2148_v20 = vadd.f32 %v20953_v6, %v2060_v38  ;;  %v3383_v49 = vadd.f32 %v18296_v5, %v3280_v50  ;;  %v13847_v50 = vld [vmem:[%s20957_s9 + $0x50] sm:$0xff] }
 0x39e   :  { %v18534_v19 = vsub.f32 %v13850_v34, %v18528_v25 }
 0x39f   :  { %v2251_v54 = vadd.f32 %v20954_v22, %v2148_v20  ;;  %v3468_v30 = vadd.f32 %v18298_v15, %v3383_v49  ;;  %v4702_v15 = vand.u32 4294901760, %v18400_v16  ;;  %v18561_v20 = vand.u32 4294901760, %v13847_v50  ;;  %v13846_v49 = vld [vmem:[%s20957_s9 + $0x48] sm:$0xff] }
 0x3a1   :  { %v2336_v63 = vadd.f32 %v20955_v18, %v2251_v54  ;;  %v4703_v8 = vsub.f32 %v18400_v16, %v4702_v15  ;;  %v18573_v22 = vsub.f32 %v13847_v50, %v18561_v20  ;;  %v18576_v54 = vand.u32 4294901760, %v13846_v49 }
 0x3a3   :  { %v3477_v21 = vadd.f32 %v3468_v30, %v2336_v63  ;;  %v4704_v58 = vand.u32 4294901760, %v4703_v8  ;;  %v5699_v30 = vand.u32 4294901760, %v18573_v22 }
 0x3a5   :  { %v5700_v18 = vsub.f32 %v18573_v22, %v5699_v30 }
 0x432   :  { %v15547_v52 = vpop.f32.mrf.mxu1 }
 0x434   :  { %v4231_v44 = vpop.f32.mrf.mxu1 }
 0x43a   :  { %v15528_v41 = vpop.f32.mrf.mxu0 }
 0x43b   :  { %v4238_v0 = vadd.f32 %v15547_v52, %v15528_v41 }
 0x43c   :  { %v4110_v53 = vpop.f32.mrf.mxu0 }
 0x43d   :  { %v4232_v45 = vadd.f32 %v4231_v44, %v4110_v53  ;;  %v13849_v44 = vld [vmem:[%s20957_s9 + $0x60] sm:$0xff] }
 0x43e   :  { %v18536_v38 = vand.u32 4294901760, %v13849_v44 }
 0x443   :  { %v15585_v14 = vpop.f32.mrf.mxu1 }
 0x445   :  { %v4413_v7 = vpop.f32.mrf.mxu1 }
 0x44b   :  { %v15566_v12 = vpop.f32.mrf.mxu0 }
 0x44c   :  { %v4333_v59 = vadd.f32 %v15566_v12, %v4238_v0  ;;  %v5173_v12 = vand.u32 4294901760, %v18437_v42  ;;  %v13848_v0 = vld [vmem:[%s20957_s9 + $0x58] sm:$0xff] }
 0x44d   :  { %v4325_v27 = vpop.f32.mrf.mxu0  ;;  %v18547_v36 = vand.u32 4294901760, %v13848_v0 }
 0x44e   :  { %v4326_v43 = vadd.f32 %v4325_v27, %v4232_v45  ;;  %v4422_v2 = vadd.f32 %v15585_v14, %v4333_v59  ;;  %v5174_v46 = vsub.f32 %v18437_v42, %v5173_v12  ;;  %v5678_v14 = vand.u32 4294901760, %v18534_v19 }
 0x44f   :  { %v18545_v27 = vsub.f32 %v13849_v44, %v18536_v38  ;;  %v18559_v6 = vsub.f32 %v13848_v0, %v18547_v36 }
 0x450   :  { %v4414_v55 = vadd.f32 %v4413_v7, %v4326_v43  ;;  %v5175_v24 = vand.u32 4294901760, %v5174_v46  ;;  %v5679_v45 = vsub.f32 %v18534_v19, %v5678_v14 }
 0x451   :  { %v5685_v59 = vand.u32 4294901760, %v18545_v27  ;;  %v5692_v7 = vand.u32 4294901760, %v18559_v6 }
 0x452   :  { %v5680_v43 = vand.u32 4294901760, %v5679_v45 }
 0x455   :  { %v15623_v40 = vpop.f32.mrf.mxu1 }
 0x457   :  { %v4601_v9 = vpop.f32.mrf.mxu1 }
 0x45c   :  { %v15604_v56 = vpop.f32.mrf.mxu0 }
 0x45d   :  { %v4523_v10 = vadd.f32 %v15604_v56, %v4422_v2  ;;  %v13845_v2 = vld [vmem:[%s20957_s9 + $0x40] sm:$0xff]  ;;  %v5693_v56 = vsub.f32 %v18559_v6, %v5692_v7 }
 0x45e   :  { %v4516_v32 = vpop.f32.mrf.mxu0 }
 0x45f   :  { %v4608_v5 = vadd.f32 %v15623_v40, %v4523_v10  ;;  %v4517_v47 = vadd.f32 %v4516_v32, %v4414_v55  ;;  %v18586_v10 = vand.u32 4294901760, %v13845_v2  ;;  %v18590_v55 = vsub.f32 %v13846_v49, %v18576_v54 }
 0x460   :  { %v5694_v32 = vand.u32 4294901760, %v5693_v56 }
 0x461   :  { %v4612_v23 = vadd.f32 %v4608_v5, %v18294_v3  ;;  %v4602_v33 = vadd.f32 %v4601_v9, %v4517_v47  ;;  %v18600_v63 = vsub.f32 %v13845_v2, %v18586_v10  ;;  %v5706_v47 = vand.u32 4294901760, %v18590_v55 }
 0x462   :  { %v5701_v9 = vand.u32 4294901760, %v5700_v18 }
 0x463   :  { %v4621_v51 = vadd.f32 %v13842_v17, %v4612_v23  ;;  %v4611_v29 = vadd.f32 %v4602_v33, %v3477_v21  ;;  %v5707_v23 = vsub.f32 %v18590_v55, %v5706_v47 }
 0x465   :  { %v4623_v13 = vmax.f32 %v4621_v51, 0.0  ;;  %v4620_v11 = vadd.f32 %v13842_v17, %v4611_v29  ;;  %v5713_v17 = vand.u32 4294901760, %v18600_v63  ;;  %v5708_v51 = vand.u32 4294901760, %v5707_v23 }
 0x467   :  { %v4631_v37 = vsel %vm4629_vm4, %v4623_v13, 0  ;;  %v4622_v1 = vmax.f32 %v4620_v11, 0.0  ;;  %v5714_v33 = vsub.f32 %v18600_v63, %v5713_v17 }
 0x468   :  { %v18414_v3 = vand.u32 4294901760, %v4631_v37 }
 0x469   :  { %v18416_v26 = vand.u32 4294901760, %v4622_v1  ;;  %v5715_v29 = vand.u32 4294901760, %v5714_v33 }
 0x46a   :  { %v18421_v48 = vsub.f32 %v4631_v37, %v18414_v3  ;;  %15625 = vmatpush3.msra.mxu0 %v18414_v3 }
 0x46b   :  { %v18425_v41 = vsub.f32 %v4622_v1, %v18416_v26  ;;  %15626 = vmatprep.subr.mxu0 %v17030_v4 }
 0x46c   :  { %15627 = vmatpush3.msra.mxu0 %v18416_v26  ;;  %v18430_v57 = vand.u32 4294901760, %v18421_v48 }
 0x46d   :  { %15638 = vmatprep.subr.mxu0 %v17030_v4  ;;  %15629 = vmatmul.mubr.f32.vlgmr.msra.gmra.mxu0 %v4704_v58  ;;  %v18434_v39 = vand.u32 4294901760, %v18425_v41 }
 0x46e   :  { %15639 = vmatpush3.msra.mxu0 %v18421_v48  ;;  %15642 = vmatprep.mubr.msk.f32.mxu0 %vm17031_vm2, %v17030_v4  ;;  %v4742_v62 = vsub.f32 %v18421_v48, %v18430_v57 }
 0x46f   :  { %15640 = vmatprep.subr.mxu0 %v17030_v4  ;;  %v4749_v52 = vsub.f32 %v18425_v41, %v18434_v39 }
 0x470   :  { %15641 = vmatpush3.msra.mxu0 %v18425_v41  ;;  %v18448_v53 = vand.u32 4294901760, %v4742_v62 }
 0x471   :  { %15652 = vmatprep.subr.mxu0 %v17030_v4  ;;  %15643 = vmatmul.mubr.f32.vlgmr.msra.gmra.mxu0 %v18400_v16  ;;  %v18452_v61 = vand.u32 4294901760, %v4749_v52  ;;  %v13844_v16 = vld [vmem:[%s20957_s9 + $0x38] sm:$0xff] }
 0x472   :  { %15632 = vmatpush3.msra.mxu1 %v18448_v53  ;;  %15653 = vmatpush3.msra.mxu0 %v18430_v57  ;;  %v18602_v5 = vand.u32 4294901760, %v13844_v16 }
 0x473   :  { %15633 = vmatprep.subr.mxu1 %v17030_v4  ;;  %15654 = vmatprep.subr.mxu0 %v17030_v4 }
 0x474   :  { %15634 = vmatpush3.msra.mxu1 %v18452_v61  ;;  %15655 = vmatpush3.msra.mxu0 %v18434_v39  ;;  %v18610_v21 = vsub.f32 %v13844_v16, %v18602_v5 }
 0x475   :  { %15636 = vmatmul.mubr.f32.vlgmr.msra.gmra.mxu1 %v18395_v60  ;;  %15645 = vmatprep.subr.mxu1 %v17030_v4 }
 0x476   :  { %15656 = vmatprep.mubr.msk.f32.mxu0 %vm17031_vm2, %v17030_v4  ;;  %15666 = vmatprep.subr.mxu0 %v17030_v4 }
 0x477   :  { %15646 = vmatpush3.msra.mxu1 %v18414_v3  ;;  %15657 = vmatmul.mubr.f32.vlgmr.msra.gmra.mxu0 %v18395_v60 }
 0x478   :  { %15667 = vmatpush3.msra.mxu0 %v18414_v3  ;;  %15647 = vmatprep.subr.mxu1 %v17030_v4 }
 0x479   :  { %15668 = vmatprep.subr.mxu0 %v17030_v4  ;;  %15648 = vmatpush3.msra.mxu1 %v18416_v26 }
 0x47a   :  { %15649 = vmatprep.mubr.msk.f32.mxu1 %vm17031_vm2, %v17030_v4  ;;  %15669 = vmatpush3.msra.mxu0 %v18416_v26 }
 0x47b   :  { %15650 = vmatmul.mubr.f32.vlgmr.msra.gmra.mxu1 %v4702_v15  ;;  %15659 = vmatprep.subr.mxu1 %v17030_v4  ;;  %v5720_v15 = vand.u32 4294901760, %v18610_v21 }
 0x47c   :  { %15670 = vmatprep.mubr.msk.f32.mxu0 %vm17031_vm2, %v17030_v4  ;;  %15680 = vmatprep.subr.mxu0 %v17030_v4 }
 0x47d   :  { %15660 = vmatpush3.msra.mxu1 %v18414_v3  ;;  %15671 = vmatmul.mubr.f32.vlgmr.msra.gmra.mxu0 %v5175_v24  ;;  %v5721_v31 = vsub.f32 %v18610_v21, %v5720_v15 }
 0x47e   :  { %15681 = vmatpush3.msra.mxu0 %v18421_v48  ;;  %15661 = vmatprep.subr.mxu1 %v17030_v4 }
 0x47f   :  { %15682 = vmatprep.subr.mxu0 %v17030_v4  ;;  %15662 = vmatpush3.msra.mxu1 %v18416_v26  ;;  %v5722_v13 = vand.u32 4294901760, %v5721_v31 }
 0x480   :  { %15663 = vmatprep.mubr.msk.f32.mxu1 %vm17031_vm2, %v17030_v4  ;;  %15683 = vmatpush3.msra.mxu0 %v18425_v41 }
 0x481   :  { %15664 = vmatmul.mubr.f32.vlgmr.msra.gmra.mxu1 %v18395_v60  ;;  %15673 = vmatprep.subr.mxu1 %v17030_v4  ;;  %v5686_v60 = vsub.f32 %v18545_v27, %v5685_v59 }
 0x482   :  { %15684 = vmatprep.mubr.msk.f32.mxu0 %vm17031_vm2, %v17030_v4  ;;  %15694 = vmatprep.subr.mxu0 %v17030_v4 }
 0x483   :  { %15674 = vmatpush3.msra.mxu1 %v18448_v53  ;;  %15685 = vmatmul.mubr.f32.vlgmr.msra.gmra.mxu0 %v18437_v42  ;;  %v5687_v40 = vand.u32 4294901760, %v5686_v60 }
 0x484   :  { %15695 = vmatpush3.msra.mxu0 %v18430_v57  ;;  %15675 = vmatprep.subr.mxu1 %v17030_v4 }
 0x485   :  { %15696 = vmatprep.subr.mxu0 %v17030_v4  ;;  %15676 = vmatpush3.msra.mxu1 %v18452_v61 }
 0x486   :  { %15677 = vmatprep.mubr.msk.f32.mxu1 %vm17031_vm2, %v17030_v4  ;;  %15697 = vmatpush3.msra.mxu0 %v18434_v39 }
 0x487   :  { %15678 = vmatmul.mubr.f32.vlgmr.msra.gmra.mxu1 %v18418_v28  ;;  %15687 = vmatprep.subr.mxu1 %v17030_v4 }
 0x488   :  { %15688 = vmatpush3.msra.mxu1 %v18414_v3  ;;  %15691 = vmatprep.mubr.msk.f32.mxu1 %vm17031_vm2, %v17030_v4 }
 0x489   :  { %15689 = vmatprep.subr.mxu1 %v17030_v4  ;;  %15698 = vmatprep.mubr.msk.f32.mxu0 %vm17031_vm2, %v17030_v4 }
 0x48a   :  { %15690 = vmatpush3.msra.mxu1 %v18416_v26  ;;  %15699 = vmatmul.mubr.f32.vlgmr.msra.gmra.mxu0 %v18418_v28 }
 0x48b   :  { %15692 = vmatmul.mubr.f32.vlgmr.msra.gmra.mxu1 %v5173_v12  ;;  %15701 = vmatprep.subr.mxu1 %v17030_v4 }
 0x48c   :  { %15702 = vmatpush3.msra.mxu1 %v18414_v3  ;;  %15705 = vmatprep.mubr.msk.f32.mxu1 %vm17031_vm2, %v17030_v4 }
 0x48d   :  { %15703 = vmatprep.subr.mxu1 %v17030_v4  ;;  %15708 = vmatprep.subr.mxu0 %v17030_v4 }
 0x48e   :  { %15704 = vmatpush3.msra.mxu1 %v18416_v26  ;;  %15722 = vmatprep.mubr.msk.f32.mxu0 %vm17031_vm2, %v17030_v4 }
 0x48f   :  { %15706 = vmatmul.mubr.f32.vlgmr.msra.gmra.mxu1 %v18418_v28  ;;  %15725 = vmatprep.subr.mxu1 %v17030_v4 }
 0x490   :  { %15739 = vmatprep.mubr.msk.f32.mxu1 %vm17031_vm2, %v17030_v4  ;;  %15709 = vmatpush3.msra.mxu0 %v18528_v25 }
 0x491   :  { %15710 = vmatprep.subr.mxu0 %v17030_v4  ;;  %15726 = vmatpush3.msra.mxu1 %v5680_v43 }
 0x492   :  { %15711 = vmatpush3.msra.mxu0 %v18536_v38  ;;  %15727 = vmatprep.subr.mxu1 %v17030_v4 }
 0x493   :  { %15712 = vmatprep.subr.mxu0 %v17030_v4  ;;  %15728 = vmatpush3.msra.mxu1 %v5687_v40 }
 0x494   :  { %15713 = vmatpush3.msra.mxu0 %v18547_v36  ;;  %15729 = vmatprep.subr.mxu1 %v17030_v4 }
 0x495   :  { %15714 = vmatprep.subr.mxu0 %v17030_v4  ;;  %15730 = vmatpush3.msra.mxu1 %v5694_v32 }
 0x496   :  { %15715 = vmatpush3.msra.mxu0 %v18561_v20  ;;  %15731 = vmatprep.subr.mxu1 %v17030_v4 }
 0x497   :  { %15716 = vmatprep.subr.mxu0 %v17030_v4  ;;  %15732 = vmatpush3.msra.mxu1 %v5701_v9 }
 0x498   :  { %15717 = vmatpush3.msra.mxu0 %v18576_v54  ;;  %15733 = vmatprep.subr.mxu1 %v17030_v4 }
 0x499   :  { %15718 = vmatprep.subr.mxu0 %v17030_v4  ;;  %15734 = vmatpush3.msra.mxu1 %v5708_v51 }
 0x49a   :  { %15719 = vmatpush3.msra.mxu0 %v18586_v10  ;;  %15735 = vmatprep.subr.mxu1 %v17030_v4 }
 0x49b   :  { %15720 = vmatprep.subr.mxu0 %v17030_v4  ;;  %15736 = vmatpush3.msra.mxu1 %v5715_v29 }
 0x49c   :  { %15721 = vmatpush3.msra.mxu0 %v18602_v5  ;;  %15737 = vmatprep.subr.mxu1 %v17030_v4 }
 0x49d   :  { %15742 = vmatprep.subr.mxu0 %v17030_v4  ;;  %15738 = vmatpush3.msra.mxu1 %v5722_v13 }
 0x49e   :  { %15759 = vmatprep.subr.mxu1 %v17030_v4 }
 0x52d   :  { %v4706_v11 = vpop.f32.mrf.mxu0 }
 0x52f   :  { %v15630_v8 = vpop.f32.mrf.mxu0 }
 0x531   :  { %v4863_v35 = vpop.f32.mrf.mxu0 }
 0x533   :  { %v15644_v37 = vpop.f32.mrf.mxu0 }
 0x535   :  { %v4787_v1 = vpop.f32.mrf.mxu1 }
 0x536   :  { %v4788_v58 = vadd.f32 %v4787_v1, %v4706_v11 }
 0x537   :  { %v15637_v28 = vpop.f32.mrf.mxu1  ;;  %v5015_v42 = vpop.f32.mrf.mxu0 }
 0x538   :  { %v4864_v62 = vadd.f32 %v4863_v35, %v4788_v58  ;;  %v5098_v58 = vld [vmem:[%s20957_s9 + $0x30] sm:$0xff]  ;;  %v5097_v28 = vld [vmem:[%s20957_s9 + $0x28] sm:$0xff] }
 0x539   :  { %v15658_v52 = vpop.f32.mrf.mxu0 }
 0x53a   :  { %v18671_v52 = vand.u32 4294901760, %v5097_v28 }
 0x53b   :  { %v4938_v12 = vpop.f32.mrf.mxu1 }
 0x53c   :  { %v4939_v46 = vadd.f32 %v4938_v12, %v4864_v62  ;;  %v5096_v62 = vld [vmem:[%s20957_s9 + $0x20] sm:$0xff]  ;;  %v5095_v12 = vld [vmem:[%s20957_s9 + $0x18] sm:$0xff] }
 0x53d   :  { %v15651_v24 = vpop.f32.mrf.mxu1  ;;  %v5177_v34 = vpop.f32.mrf.mxu0 }
 0x53e   :  { %v18630_v44 = vadd.f32 %v5015_v42, %v4939_v46  ;;  %v18663_v42 = vand.u32 4294901760, %v5098_v58  ;;  %v18683_v24 = vand.u32 4294901760, %v5096_v62 }
 0x53f   :  { %v15672_v0 = vpop.f32.mrf.mxu0 }
 0x540   :  { %v18681_v46 = vsub.f32 %v5098_v58, %v18663_v42  ;;  %v18692_v0 = vand.u32 4294901760, %v5095_v12 }
 0x541   :  { %v18632_v50 = vpop.f32.mrf.mxu1 }
 0x543   :  { %v15665_v45 = vpop.f32.mrf.mxu1  ;;  %v5334_v49 = vpop.f32.mrf.mxu0 }
 0x544   :  { %v18703_v45 = vsub.f32 %v5096_v62, %v18683_v24 }
 0x545   :  { %v15686_v43 = vpop.f32.mrf.mxu0 }
 0x547   :  { %v5258_v60 = vpop.f32.mrf.mxu1 }
 0x548   :  { %v5259_v2 = vadd.f32 %v5258_v60, %v5177_v34  ;;  %v18690_v34 = vsub.f32 %v5097_v28, %v18671_v52  ;;  %v18717_v60 = vsub.f32 %v5095_v12, %v18692_v0 }
 0x549   :  { %v15679_v40 = vpop.f32.mrf.mxu1 }
 0x54a   :  { %v5335_v56 = vadd.f32 %v5334_v49, %v5259_v2  ;;  %v5486_v16 = vpop.f32.mrf.mxu0  ;;  %v5093_v49 = vld [vmem:[%s20957_s9 + $0x8] sm:$0xff]  ;;  %v5092_v2 = vld [vmem:[%s20957_s9] sm:$0xff] }
 0x54b   :  { %v5409_v32 = vpop.f32.mrf.mxu1  ;;  %v18723_v40 = vand.u32 4294901760, %v5093_v49 }
 0x54c   :  { %v5410_v18 = vadd.f32 %v5409_v32, %v5335_v56  ;;  %v15700_v9 = vpop.f32.mrf.mxu0  ;;  %v6219_v56 = vand.u32 4294901760, %v18703_v45  ;;  %v18737_v32 = vand.u32 4294901760, %v5092_v2 }
 0x54d   :  { %v15693_v23 = vpop.f32.mrf.mxu1  ;;  %v5089_v9 = vadd.f32 %v18632_v50, %v18630_v44 }
 0x54e   :  { %v5487_v33 = vadd.f32 %v5486_v16, %v5410_v18  ;;  %v18762_v18 = vsub.f32 %v5092_v2, %v18737_v32 }
 0x54f   :  { %v5559_v51 = vpop.f32.mrf.mxu1 }
 0x550   :  { %v5560_v29 = vadd.f32 %v5559_v51, %v5487_v33  ;;  %v6247_v23 = vand.u32 4294901760, %v18762_v18 }
 0x551   :  { %v15707_v31 = vpop.f32.mrf.mxu1 }
 0x552   :  { %v5573_v13 = vsel %vm5571_vm5, %v5560_v29, 0 }
 0x553   :  { %v18635_v11 = vand.u32 4294901760, %v5573_v13 }
 0x555   :  { %v5648_v8 = vsub.f32 %v5573_v13, %v18635_v11  ;;  %15740 = vmatmul.mubr.f32.vlgmr.msra.gmra.mxu1 %v18635_v11  ;;  %v13851_v13 = vld [vmem:[%s20951_s6 + $0x10] sm:$0x3f] }
 0x556   :  { %15760 = vmatpush3.msra.mxu1 %v18528_v25  ;;  %15773 = vmatprep.mubr.msk.f32.mxu1 %vm17031_vm2, %v17030_v4 }
 0x557   :  { %v5649_v35 = vand.u32 4294901760, %v5648_v8  ;;  %15761 = vmatprep.subr.mxu1 %v17030_v4 }
 0x558   :  { %15762 = vmatpush3.msra.mxu1 %v18536_v38 }
 0x559   :  { %15763 = vmatprep.subr.mxu1 %v17030_v4  ;;  %v5650_v37 = vsub.f32 %v5648_v8, %v5649_v35 }
 0x55a   :  { %15764 = vmatpush3.msra.mxu1 %v18547_v36 }
 0x55b   :  { %15765 = vmatprep.subr.mxu1 %v17030_v4  ;;  %v5651_v1 = vand.u32 4294901760, %v5650_v37 }
 0x55c   :  { %15766 = vmatpush3.msra.mxu1 %v18561_v20 }
 0x55d   :  { %15767 = vmatprep.subr.mxu1 %v17030_v4  ;;  %15723 = vmatmul.mubr.f32.vlgmr.msra.gmra.mxu0 %v5651_v1 }
 0x55e   :  { %15743 = vmatpush3.msra.mxu0 %v18534_v19  ;;  %15768 = vmatpush3.msra.mxu1 %v18576_v54 }
 0x55f   :  { %15744 = vmatprep.subr.mxu0 %v17030_v4  ;;  %15769 = vmatprep.subr.mxu1 %v17030_v4 }
 0x560   :  { %15745 = vmatpush3.msra.mxu0 %v18545_v27  ;;  %15770 = vmatpush3.msra.mxu1 %v18586_v10 }
 0x561   :  { %15746 = vmatprep.subr.mxu0 %v17030_v4  ;;  %15771 = vmatprep.subr.mxu1 %v17030_v4 }
 0x562   :  { %15747 = vmatpush3.msra.mxu0 %v18559_v6  ;;  %15772 = vmatpush3.msra.mxu1 %v18602_v5 }
 0x563   :  { %15748 = vmatprep.subr.mxu0 %v17030_v4  ;;  %15774 = vmatmul.mubr.f32.vlgmr.msra.gmra.mxu1 %v5649_v35 }
 0x564   :  { %15793 = vmatprep.subr.mxu1 %v17030_v4  ;;  %15749 = vmatpush3.msra.mxu0 %v18573_v22  ;;  %v6100_v22 = vsel %vm5571_vm5, %v5089_v9, 0 }
 0x565   :  { %15794 = vmatpush3.msra.mxu1 %v18528_v25  ;;  %15750 = vmatprep.subr.mxu0 %v17030_v4  ;;  %v5094_v25 = vld [vmem:[%s20957_s9 + $0x10] sm:$0xff] }
 0x566   :  { %15795 = vmatprep.subr.mxu1 %v17030_v4  ;;  %15751 = vmatpush3.msra.mxu0 %v18590_v55  ;;  %v18710_v43 = vand.u32 4294901760, %v5094_v25 }
 0x567   :  { %15796 = vmatpush3.msra.mxu1 %v18536_v38  ;;  %15752 = vmatprep.subr.mxu0 %v17030_v4  ;;  %v6205_v38 = vand.u32 4294901760, %v18681_v46 }
 0x568   :  { %15797 = vmatprep.subr.mxu1 %v17030_v4  ;;  %15753 = vmatpush3.msra.mxu0 %v18600_v63  ;;  %v18735_v16 = vsub.f32 %v5094_v25, %v18710_v43  ;;  %v6248_v63 = vsub.f32 %v18762_v18, %v6247_v23 }
 0x569   :  { %15798 = vmatpush3.msra.mxu1 %v18547_v36  ;;  %15754 = vmatprep.subr.mxu0 %v17030_v4  ;;  %v6212_v36 = vand.u32 4294901760, %v18690_v34 }
 0x56a   :  { %15799 = vmatprep.subr.mxu1 %v17030_v4  ;;  %15755 = vmatpush3.msra.mxu0 %v18610_v21 }
 0x56b   :  { %15756 = vmatprep.mubr.msk.f32.mxu0 %vm17031_vm2, %v17030_v4  ;;  %15800 = vmatpush3.msra.mxu1 %v18561_v20  ;;  %v6206_v20 = vsub.f32 %v18681_v46, %v6205_v38  ;;  %v6213_v19 = vsub.f32 %v18690_v34, %v6212_v36 }
 0x56c   :  { %15757 = vmatmul.mubr.f32.vlgmr.msra.gmra.mxu0 %v5648_v8  ;;  %15776 = vmatprep.subr.mxu0 %v17030_v4 }
 0x56d   :  { %15801 = vmatprep.subr.mxu1 %v17030_v4  ;;  %15777 = vmatpush3.msra.mxu0 %v5678_v14  ;;  %v6226_v14 = vand.u32 4294901760, %v18717_v60  ;;  %v6207_v27 = vand.u32 4294901760, %v6206_v20  ;;  %v6214_v6 = vand.u32 4294901760, %v6213_v19  ;;  %v13852_v20 = vld [vmem:[%s20957_s9 + $0x70] sm:$0xff] }
 0x56e   :  { %15802 = vmatpush3.msra.mxu1 %v18576_v54  ;;  %15778 = vmatprep.subr.mxu0 %v17030_v4  ;;  %v18749_v54 = vsub.f32 %v5093_v49, %v18723_v40  ;;  %v13853_v49 = vld [vmem:[%s20957_s9 + $0x78] sm:$0xff]  ;;  %v19027_v19 = vand.u32 4294901760, %v13852_v20 }
 0x56f   :  { %15803 = vmatprep.subr.mxu1 %v17030_v4  ;;  %15779 = vmatpush3.msra.mxu0 %v5685_v59  ;;  %v6220_v59 = vsub.f32 %v18703_v45, %v6219_v56  ;;  %v19011_v2 = vand.u32 4294901760, %v13853_v49 }
 0x570   :  { %15804 = vmatpush3.msra.mxu1 %v18586_v10  ;;  %15780 = vmatprep.subr.mxu0 %v17030_v4  ;;  %v6233_v10 = vand.u32 4294901760, %v18735_v16 }
 0x571   :  { %15805 = vmatprep.subr.mxu1 %v17030_v4  ;;  %15781 = vmatpush3.msra.mxu0 %v5692_v7  ;;  %v6227_v7 = vsub.f32 %v18717_v60, %v6226_v14  ;;  %v6221_v44 = vand.u32 4294901760, %v6220_v59  ;;  %v19035_v59 = vsub.f32 %v13852_v20, %v19027_v19 }
 0x572   :  { %15806 = vmatpush3.msra.mxu1 %v18602_v5  ;;  %15807 = vmatprep.mubr.msk.f32.mxu1 %vm17031_vm2, %v17030_v4  ;;  %v6240_v5 = vand.u32 4294901760, %v18749_v54  ;;  %v6234_v50 = vsub.f32 %v18735_v16, %v6233_v10 }
 0x573   :  { %15782 = vmatprep.subr.mxu0 %v17030_v4  ;;  %15808 = vmatmul.mubr.f32.vlgmr.msra.gmra.mxu1 %v18635_v11  ;;  %v7246_v9 = vand.u32 4294901760, %v19035_v59 }
 0x574   :  { %15827 = vmatprep.subr.mxu1 %v17030_v4  ;;  %15783 = vmatpush3.msra.mxu0 %v5699_v30  ;;  %v6228_v30 = vand.u32 4294901760, %v6227_v7  ;;  %v6241_v55 = vsub.f32 %v18749_v54, %v6240_v5  ;;  %v6235_v33 = vand.u32 4294901760, %v6234_v50 }
 0x575   :  { %15828 = vmatpush3.msra.mxu1 %v6207_v27  ;;  %15784 = vmatprep.subr.mxu0 %v17030_v4 }
 0x576   :  { %15829 = vmatprep.subr.mxu1 %v17030_v4  ;;  %15785 = vmatpush3.msra.mxu0 %v5706_v47  ;;  %v18792_v47 = vand.u32 4294901760, %v6100_v22 }
 0x577   :  { %15830 = vmatpush3.msra.mxu1 %v6214_v6  ;;  %15786 = vmatprep.subr.mxu0 %v17030_v4 }
 0x578   :  { %15831 = vmatprep.subr.mxu1 %v17030_v4  ;;  %15787 = vmatpush3.msra.mxu0 %v5713_v17  ;;  %v6242_v17 = vand.u32 4294901760, %v6241_v55  ;;  %v18807_v21 = vsub.f32 %v6100_v22, %v18792_v47 }
 0x579   :  { %15832 = vmatpush3.msra.mxu1 %v6221_v44  ;;  %15788 = vmatprep.subr.mxu0 %v17030_v4 }
 0x57a   :  { %15833 = vmatprep.subr.mxu1 %v17030_v4  ;;  %15789 = vmatpush3.msra.mxu0 %v5720_v15  ;;  %v6249_v15 = vand.u32 4294901760, %v6248_v63  ;;  %v6176_v51 = vand.u32 4294901760, %v18807_v21 }
 0x57b   :  { %15790 = vmatprep.mubr.msk.f32.mxu0 %vm17031_vm2, %v17030_v4  ;;  %15834 = vmatpush3.msra.mxu1 %v6228_v30 }
 0x57c   :  { %15791 = vmatmul.mubr.f32.vlgmr.msra.gmra.mxu0 %v18635_v11  ;;  %15810 = vmatprep.subr.mxu0 %v17030_v4  ;;  %v6177_v29 = vsub.f32 %v18807_v21, %v6176_v51  ;;  %v6629_v11 = vsel %vm4625_vm3, %v13851_v13, 0 }
 0x57d   :  { %15835 = vmatprep.subr.mxu1 %v17030_v4  ;;  %15811 = vmatpush3.msra.mxu0 %v18663_v42  ;;  %v6698_v8 = vand.u32 4294901760, %v6629_v11 }
 0x57e   :  { %15836 = vmatpush3.msra.mxu1 %v6235_v33  ;;  %15812 = vmatprep.subr.mxu0 %v17030_v4  ;;  %v6178_v31 = vand.u32 4294901760, %v6177_v29 }
 0x57f   :  { %15837 = vmatprep.subr.mxu1 %v17030_v4  ;;  %15813 = vmatpush3.msra.mxu0 %v18671_v52  ;;  %v6699_v35 = vsub.f32 %v6629_v11, %v6698_v8 }
 0x580   :  { %15838 = vmatpush3.msra.mxu1 %v6242_v17  ;;  %15814 = vmatprep.subr.mxu0 %v17030_v4 }
 0x581   :  { %15839 = vmatprep.subr.mxu1 %v17030_v4  ;;  %15815 = vmatpush3.msra.mxu0 %v18683_v24  ;;  %v6700_v37 = vand.u32 4294901760, %v6699_v35 }
 0x582   :  { %15840 = vmatpush3.msra.mxu1 %v6249_v15  ;;  %15841 = vmatprep.mubr.msk.f32.mxu1 %vm17031_vm2, %v17030_v4 }
 0x583   :  { %15816 = vmatprep.subr.mxu0 %v17030_v4  ;;  %15842 = vmatmul.mubr.f32.vlgmr.msra.gmra.mxu1 %v18792_v47 }
 0x584   :  { %15861 = vmatprep.subr.mxu1 %v17030_v4  ;;  %15817 = vmatpush3.msra.mxu0 %v18692_v0 }
 0x585   :  { %15862 = vmatpush3.msra.mxu1 %v18663_v42  ;;  %15818 = vmatprep.subr.mxu0 %v17030_v4 }
 0x586   :  { %15863 = vmatprep.subr.mxu1 %v17030_v4  ;;  %15819 = vmatpush3.msra.mxu0 %v18710_v43 }
 0x587   :  { %15864 = vmatpush3.msra.mxu1 %v18671_v52  ;;  %15820 = vmatprep.subr.mxu0 %v17030_v4 }
 0x588   :  { %15865 = vmatprep.subr.mxu1 %v17030_v4  ;;  %15821 = vmatpush3.msra.mxu0 %v18723_v40 }
 0x589   :  { %15866 = vmatpush3.msra.mxu1 %v18683_v24  ;;  %15822 = vmatprep.subr.mxu0 %v17030_v4 }
 0x58a   :  { %15867 = vmatprep.subr.mxu1 %v17030_v4  ;;  %15823 = vmatpush3.msra.mxu0 %v18737_v32 }
 0x58b   :  { %15824 = vmatprep.mubr.msk.f32.mxu0 %vm17031_vm2, %v17030_v4  ;;  %15868 = vmatpush3.msra.mxu1 %v18692_v0 }
 0x58c   :  { %15825 = vmatmul.mubr.f32.vlgmr.msra.gmra.mxu0 %v6178_v31  ;;  %15844 = vmatprep.subr.mxu0 %v17030_v4 }
 0x58d   :  { %15869 = vmatprep.subr.mxu1 %v17030_v4  ;;  %15845 = vmatpush3.msra.mxu0 %v18681_v46 }
 0x58e   :  { %15870 = vmatpush3.msra.mxu1 %v18710_v43  ;;  %15846 = vmatprep.subr.mxu0 %v17030_v4 }
 0x58f   :  { %15871 = vmatprep.subr.mxu1 %v17030_v4  ;;  %15847 = vmatpush3.msra.mxu0 %v18690_v34 }
 0x590   :  { %15872 = vmatpush3.msra.mxu1 %v18723_v40  ;;  %15848 = vmatprep.subr.mxu0 %v17030_v4 }
 0x591   :  { %15873 = vmatprep.subr.mxu1 %v17030_v4  ;;  %15849 = vmatpush3.msra.mxu0 %v18703_v45 }
 0x592   :  { %15874 = vmatpush3.msra.mxu1 %v18737_v32  ;;  %15875 = vmatprep.mubr.msk.f32.mxu1 %vm17031_vm2, %v17030_v4 }
 0x593   :  { %15850 = vmatprep.subr.mxu0 %v17030_v4  ;;  %15876 = vmatmul.mubr.f32.vlgmr.msra.gmra.mxu1 %v6176_v51 }
 0x594   :  { %15895 = vmatprep.subr.mxu1 %v17030_v4  ;;  %15851 = vmatpush3.msra.mxu0 %v18717_v60 }
 0x595   :  { %15896 = vmatpush3.msra.mxu1 %v18663_v42  ;;  %15852 = vmatprep.subr.mxu0 %v17030_v4  ;;  %v13855_v42 = vld [vmem:[%s20957_s9 + $0x88] sm:$0xff] }
 0x596   :  { %15897 = vmatprep.subr.mxu1 %v17030_v4  ;;  %15853 = vmatpush3.msra.mxu0 %v18735_v16  ;;  %v18986_v46 = vand.u32 4294901760, %v13855_v42 }
 0x597   :  { %15898 = vmatpush3.msra.mxu1 %v18671_v52  ;;  %15854 = vmatprep.subr.mxu0 %v17030_v4 }
 0x598   :  { %15899 = vmatprep.subr.mxu1 %v17030_v4  ;;  %15855 = vmatpush3.msra.mxu0 %v18749_v54 }
 0x599   :  { %15900 = vmatpush3.msra.mxu1 %v18683_v24  ;;  %15856 = vmatprep.subr.mxu0 %v17030_v4  ;;  %v13854_v24 = vld [vmem:[%s20957_s9 + $0x80] sm:$0xff] }
 0x59a   :  { %15901 = vmatprep.subr.mxu1 %v17030_v4  ;;  %15857 = vmatpush3.msra.mxu0 %v18762_v18  ;;  %v19001_v45 = vand.u32 4294901760, %v13854_v24 }
 0x59b   :  { %15858 = vmatprep.mubr.msk.f32.mxu0 %vm17031_vm2, %v17030_v4  ;;  %15902 = vmatpush3.msra.mxu1 %v18692_v0 }
 0x59c   :  { %15859 = vmatmul.mubr.f32.vlgmr.msra.gmra.mxu0 %v18807_v21  ;;  %15878 = vmatprep.subr.mxu0 %v17030_v4 }
 0x59d   :  { %15903 = vmatprep.subr.mxu1 %v17030_v4  ;;  %15879 = vmatpush3.msra.mxu0 %v6205_v38  ;;  %v18998_v38 = vsub.f32 %v13855_v42, %v18986_v46 }
 0x59e   :  { %15904 = vmatpush3.msra.mxu1 %v18710_v43  ;;  %15880 = vmatprep.subr.mxu0 %v17030_v4 }
 0x59f   :  { %15905 = vmatprep.subr.mxu1 %v17030_v4  ;;  %15881 = vmatpush3.msra.mxu0 %v6212_v36  ;;  %v7225_v60 = vand.u32 4294901760, %v18998_v38 }
 0x5a0   :  { %15906 = vmatpush3.msra.mxu1 %v18723_v40  ;;  %15882 = vmatprep.subr.mxu0 %v17030_v4  ;;  %v19015_v40 = vsub.f32 %v13854_v24, %v19001_v45 }
 0x5a1   :  { %15907 = vmatprep.subr.mxu1 %v17030_v4  ;;  %15883 = vmatpush3.msra.mxu0 %v6219_v56  ;;  %v7226_v16 = vsub.f32 %v18998_v38, %v7225_v60 }
 0x5a2   :  { %15908 = vmatpush3.msra.mxu1 %v18737_v32  ;;  %15909 = vmatprep.mubr.msk.f32.mxu1 %vm17031_vm2, %v17030_v4  ;;  %v19025_v32 = vsub.f32 %v13853_v49, %v19011_v2 }
 0x5a3   :  { %15884 = vmatprep.subr.mxu0 %v17030_v4  ;;  %15910 = vmatmul.mubr.f32.vlgmr.msra.gmra.mxu1 %v18792_v47  ;;  %v7227_v54 = vand.u32 4294901760, %v7226_v16 }
 0x5a4   :  { %15919 = vmatprep.subr.mxu1 %v17030_v4  ;;  %15885 = vmatpush3.msra.mxu0 %v6226_v14  ;;  %v7232_v14 = vand.u32 4294901760, %v19015_v40  ;;  %v7239_v27 = vand.u32 4294901760, %v19025_v32 }
 0x5a5   :  { %15920 = vmatpush3.msra.mxu1 %v18448_v53  ;;  %15886 = vmatprep.subr.mxu0 %v17030_v4  ;;  %v6701_v53 = vsub.f32 %v6699_v35, %v6700_v37 }
 0x5a6   :  { %15921 = vmatprep.subr.mxu1 %v17030_v4  ;;  %15887 = vmatpush3.msra.mxu0 %v6233_v10  ;;  %v7233_v10 = vsub.f32 %v19015_v40, %v7232_v14  ;;  %v7240_v18 = vsub.f32 %v19025_v32, %v7239_v27 }
 0x5a7   :  { %15922 = vmatpush3.msra.mxu1 %v18452_v61  ;;  %15888 = vmatprep.subr.mxu0 %v17030_v4  ;;  %v6702_v61 = vand.u32 4294901760, %v6701_v53 }
 0x5a8   :  { %15923 = vmatprep.mubr.msk.f32.mxu1 %vm17031_vm2, %v17030_v4  ;;  %15933 = vmatprep.subr.mxu1 %v17030_v4  ;;  %v7234_v6 = vand.u32 4294901760, %v7233_v10  ;;  %v7241_v7 = vand.u32 4294901760, %v7240_v18 }
 0x5a9   :  { %15889 = vmatpush3.msra.mxu0 %v6240_v5  ;;  %15924 = vmatmul.mubr.f32.vlgmr.msra.gmra.mxu1 %v6698_v8  ;;  %v7247_v5 = vsub.f32 %v19035_v59, %v7246_v9 }
 0x5aa   :  { %15934 = vmatpush3.msra.mxu1 %v18414_v3  ;;  %15890 = vmatprep.subr.mxu0 %v17030_v4 }
 0x5ab   :  { %15935 = vmatprep.subr.mxu1 %v17030_v4  ;;  %15891 = vmatpush3.msra.mxu0 %v6247_v23  ;;  %v7248_v44 = vand.u32 4294901760, %v7247_v5 }
 0x5ac   :  { %15892 = vmatprep.mubr.msk.f32.mxu0 %vm17031_vm2, %v17030_v4  ;;  %15936 = vmatpush3.msra.mxu1 %v18416_v26 }
 0x5ad   :  { %15893 = vmatmul.mubr.f32.vlgmr.msra.gmra.mxu0 %v18792_v47  ;;  %15912 = vmatprep.subr.mxu0 %v17030_v4 }
 0x5ae   :  { %15937 = vmatprep.mubr.msk.f32.mxu1 %vm17031_vm2, %v17030_v4  ;;  %15947 = vmatprep.subr.mxu1 %v17030_v4 }
 0x5af   :  { %15913 = vmatpush3.msra.mxu0 %v18414_v3  ;;  %15938 = vmatmul.mubr.f32.vlgmr.msra.gmra.mxu1 %v6700_v37 }
 0x5b0   :  { %15948 = vmatpush3.msra.mxu1 %v18414_v3  ;;  %15914 = vmatprep.subr.mxu0 %v17030_v4  ;;  %v13858_v3 = vld [vmem:[%s20957_s9 + $0xa0] sm:$0xff] }
 0x5b1   :  { %15949 = vmatprep.subr.mxu1 %v17030_v4  ;;  %15915 = vmatpush3.msra.mxu0 %v18416_v26 }
 0x5b2   :  { %15916 = vmatprep.mubr.msk.f32.mxu0 %vm17031_vm2, %v17030_v4  ;;  %15950 = vmatpush3.msra.mxu1 %v18416_v26  ;;  %v18953_v26 = vand.u32 4294901760, %v13858_v3 }
 0x5b3   :  { %15917 = vmatmul.mubr.f32.vlgmr.msra.gmra.mxu0 %v6702_v61  ;;  %15926 = vmatprep.subr.mxu0 %v17030_v4 }
 0x5b4   :  { %15927 = vmatpush3.msra.mxu0 %v18421_v48  ;;  %15930 = vmatprep.mubr.msk.f32.mxu0 %vm17031_vm2, %v17030_v4  ;;  %v13857_v48 = vld [vmem:[%s20957_s9 + $0x98] sm:$0xff] }
 0x5b5   :  { %15928 = vmatprep.subr.mxu0 %v17030_v4  ;;  %15951 = vmatprep.mubr.msk.f32.mxu1 %vm17031_vm2, %v17030_v4 }
 0x5b6   :  { %15929 = vmatpush3.msra.mxu0 %v18425_v41  ;;  %15952 = vmatmul.mubr.f32.vlgmr.msra.gmra.mxu1 %v6698_v8  ;;  %v18959_v41 = vsub.f32 %v13858_v3, %v18953_v26 }
 0x5b7   :  { %15931 = vmatmul.mubr.f32.vlgmr.msra.gmra.mxu0 %v6699_v35  ;;  %15940 = vmatprep.subr.mxu0 %v17030_v4 }
 0x5b8   :  { %15941 = vmatpush3.msra.mxu0 %v18430_v57  ;;  %15944 = vmatprep.mubr.msk.f32.mxu0 %vm17031_vm2, %v17030_v4  ;;  %v18961_v57 = vand.u32 4294901760, %v13857_v48  ;;  %v7204_v1 = vand.u32 4294901760, %v18959_v41 }
 0x5b9   :  { %15942 = vmatprep.subr.mxu0 %v17030_v4  ;;  %15971 = vmatprep.subr.mxu1 %v17030_v4 }
 0x5ba   :  { %15943 = vmatpush3.msra.mxu0 %v18434_v39  ;;  %15985 = vmatprep.mubr.msk.f32.mxu1 %vm17031_vm2, %v17030_v4  ;;  %v13856_v39 = vld [vmem:[%s20957_s9 + $0x90] sm:$0xff]  ;;  %v18970_v58 = vsub.f32 %v13857_v48, %v18961_v57  ;;  %v7205_v62 = vsub.f32 %v18959_v41, %v7204_v1 }
 0x5bb   :  { %15945 = vmatmul.mubr.f32.vlgmr.msra.gmra.mxu0 %v6698_v8  ;;  %15954 = vmatprep.subr.mxu0 %v17030_v4  ;;  %v18972_v28 = vand.u32 4294901760, %v13856_v39 }
 0x5bc   :  { %15968 = vmatprep.mubr.msk.f32.mxu0 %vm17031_vm2, %v17030_v4  ;;  %15955 = vmatpush3.msra.mxu0 %v18953_v26  ;;  %v7211_v52 = vand.u32 4294901760, %v18970_v58  ;;  %v7206_v34 = vand.u32 4294901760, %v7205_v62 }
 0x5bd   :  { %15956 = vmatprep.subr.mxu0 %v17030_v4  ;;  %v18984_v12 = vsub.f32 %v13856_v39, %v18972_v28 }
 0x5be   :  { %15957 = vmatpush3.msra.mxu0 %v18961_v57  ;;  %v7212_v0 = vsub.f32 %v18970_v58, %v7211_v52  ;;  %15972 = vmatpush3.msra.mxu1 %v7206_v34 }
 0x5bf   :  { %15958 = vmatprep.subr.mxu0 %v17030_v4  ;;  %v7218_v25 = vand.u32 4294901760, %v18984_v12  ;;  %15973 = vmatprep.subr.mxu1 %v17030_v4 }
 0x5c0   :  { %15959 = vmatpush3.msra.mxu0 %v18972_v28  ;;  %v7213_v43 = vand.u32 4294901760, %v7212_v0 }
 0x5c1   :  { %15960 = vmatprep.subr.mxu0 %v17030_v4  ;;  %v7219_v36 = vsub.f32 %v18984_v12, %v7218_v25 }
 0x5c2   :  { %15961 = vmatpush3.msra.mxu0 %v18986_v46  ;;  %15974 = vmatpush3.msra.mxu1 %v7213_v43 }
 0x5c3   :  { %15962 = vmatprep.subr.mxu0 %v17030_v4  ;;  %v7220_v56 = vand.u32 4294901760, %v7219_v36  ;;  %15975 = vmatprep.subr.mxu1 %v17030_v4 }
 0x5c4   :  { %15963 = vmatpush3.msra.mxu0 %v19001_v45 }
 0x5c5   :  { %15964 = vmatprep.subr.mxu0 %v17030_v4  ;;  %15976 = vmatpush3.msra.mxu1 %v7220_v56 }
 0x5c6   :  { %15965 = vmatpush3.msra.mxu0 %v19011_v2  ;;  %15977 = vmatprep.subr.mxu1 %v17030_v4 }
 0x5c7   :  { %15966 = vmatprep.subr.mxu0 %v17030_v4  ;;  %15978 = vmatpush3.msra.mxu1 %v7227_v54 }
 0x5c8   :  { %15967 = vmatpush3.msra.mxu0 %v19027_v19  ;;  %15979 = vmatprep.subr.mxu1 %v17030_v4 }
 0x5c9   :  { %15988 = vmatprep.subr.mxu0 %v17030_v4  ;;  %15980 = vmatpush3.msra.mxu1 %v7234_v6 }
 0x5ca   :  { %15981 = vmatprep.subr.mxu1 %v17030_v4 }
 0x5cb   :  { %15982 = vmatpush3.msra.mxu1 %v7241_v7 }
 0x5cc   :  { %15983 = vmatprep.subr.mxu1 %v17030_v4 }
 0x5cd   :  { %15984 = vmatpush3.msra.mxu1 %v7248_v44 }
 0x5ce   :  { %16005 = vmatprep.subr.mxu1 %v17030_v4 }
 0x615   :  { %v5759_v50 = vpop.f32.mrf.mxu1 }
 0x617   :  { %v15741_v23 = vpop.f32.mrf.mxu1 }
 0x61d   :  { %v5653_v22 = vpop.f32.mrf.mxu0 }
 0x61e   :  { %v5760_v30 = vadd.f32 %v5759_v50, %v5653_v22 }
 0x61f   :  { %v15724_v55 = vpop.f32.mrf.mxu0 }
 0x623   :  { %v5925_v47 = vpop.f32.mrf.mxu1 }
 0x625   :  { %v15775_v33 = vpop.f32.mrf.mxu1 }
 0x62c   :  { %v5845_v63 = vpop.f32.mrf.mxu0 }
 0x62d   :  { %v5846_v17 = vadd.f32 %v5845_v63, %v5760_v30 }
 0x62e   :  { %v15758_v21 = vpop.f32.mrf.mxu0 }
 0x62f   :  { %v5926_v15 = vadd.f32 %v5925_v47, %v5846_v17 }
 0x633   :  { %v6095_v51 = vpop.f32.mrf.mxu1 }
 0x635   :  { %v15809_v29 = vpop.f32.mrf.mxu1 }
 0x63c   :  { %v6017_v31 = vpop.f32.mrf.mxu0 }
 0x63d   :  { %v6018_v13 = vadd.f32 %v6017_v31, %v5926_v15 }
 0x63e   :  { %v15792_v11 = vpop.f32.mrf.mxu0 }
 0x63f   :  { %v6096_v8 = vadd.f32 %v6095_v51, %v6018_v13 }
 0x643   :  { %v6286_v35 = vpop.f32.mrf.mxu1 }
 0x645   :  { %v15843_v37 = vpop.f32.mrf.mxu1 }
 0x646   :  { %v13859_v37 = vld [vmem:[%s20959_s5] ss:$0 sm:$0xff] }
 0x64c   :  { %v6180_v53 = vpop.f32.mrf.mxu0 }
 0x64d   :  { %v6181_v61 = vadd.f32 %v6180_v53, %v6096_v8 }
 0x64e   :  { %v15826_v3 = vpop.f32.mrf.mxu0 }
 0x64f   :  { %v6287_v48 = vadd.f32 %v6286_v35, %v6181_v61 }
 0x653   :  { %v6452_v39 = vpop.f32.mrf.mxu1 }
 0x655   :  { %v15877_v42 = vpop.f32.mrf.mxu1 }
 0x65c   :  { %v6372_v62 = vpop.f32.mrf.mxu0 }
 0x65d   :  { %v6373_v24 = vadd.f32 %v6372_v62, %v6287_v48 }
 0x65e   :  { %v15860_v34 = vpop.f32.mrf.mxu0 }
 0x65f   :  { %v6453_v0 = vadd.f32 %v6452_v39, %v6373_v24 }
 0x663   :  { %v6622_v49 = vpop.f32.mrf.mxu1 }
 0x665   :  { %v15911_v43 = vpop.f32.mrf.mxu1 }
 0x669   :  { %v6785_v36 = vpop.f32.mrf.mxu1 }
 0x66b   :  { %v15925_v20 = vpop.f32.mrf.mxu1 }
 0x66d   :  { %v6544_v56 = vpop.f32.mrf.mxu0 }
 0x66e   :  { %v6545_v16 = vadd.f32 %v6544_v56, %v6453_v0 }
 0x66f   :  { %v15894_v54 = vpop.f32.mrf.mxu0  ;;  %v6936_v10 = vpop.f32.mrf.mxu1 }
 0x670   :  { %v19055_v18 = vadd.f32 %v6622_v49, %v6545_v16 }
 0x671   :  { %v15939_v6 = vpop.f32.mrf.mxu1 }
 0x672   :  { %v13865_v6 = vld [vmem:[%s20960_s26 + $0x50] sm:$0xff] }
 0x673   :  { %v6704_v7 = vpop.f32.mrf.mxu0 }
 0x674   :  { %v6786_v44 = vadd.f32 %v6785_v36, %v6704_v7 }
 0x675   :  { %v15918_v5 = vpop.f32.mrf.mxu0 }
 0x676   :  { %v7086_v50 = vpop.f32.mrf.mxu1  ;;  %v19199_v5 = vand.u32 4294901760, %v13865_v6 }
 0x677   :  { %v6861_v23 = vpop.f32.mrf.mxu0 }
 0x678   :  { %v6862_v22 = vadd.f32 %v6861_v23, %v6786_v44  ;;  %v15953_v30 = vpop.f32.mrf.mxu1  ;;  %v13864_v44 = vld [vmem:[%s20960_s26 + $0x48] sm:$0xff]  ;;  %v19208_v23 = vsub.f32 %v13865_v6, %v19199_v5 }
 0x679   :  { %v15932_v55 = vpop.f32.mrf.mxu0  ;;  %v13863_v30 = vld [vmem:[%s20960_s26 + $0x40] sm:$0xff] }
 0x67a   :  { %v6937_v47 = vadd.f32 %v6936_v10, %v6862_v22  ;;  %v13866_v10 = vld [vmem:[%s20960_s26 + $0x58] sm:$0xff]  ;;  %v19210_v22 = vand.u32 4294901760, %v13864_v44 }
 0x67b   :  { %v7013_v33 = vpop.f32.mrf.mxu0 }
 0x67c   :  { %v7014_v63 = vadd.f32 %v7013_v33, %v6937_v47  ;;  %v8668_v47 = vand.u32 4294901760, %v19208_v23  ;;  %v19222_v33 = vsub.f32 %v13864_v44, %v19210_v22 }
 0x67d   :  { %v15946_v17 = vpop.f32.mrf.mxu0 }
 0x67e   :  { %v7087_v21 = vadd.f32 %v7086_v50, %v7014_v63  ;;  %v19224_v63 = vand.u32 4294901760, %v13863_v30  ;;  %v13862_v17 = vld [vmem:[%s20960_s26 + $0x38] sm:$0xff] }
 0x680   :  { %v7099_v15 = vsel %vm5571_vm5, %v7087_v21, 0 }
 0x681   :  { %v19058_v51 = vand.u32 4294901760, %v7099_v15 }
 0x683   :  { %v7174_v29 = vsub.f32 %v7099_v15, %v19058_v51  ;;  %15986 = vmatmul.mubr.f32.vlgmr.msra.gmra.mxu1 %v19058_v51  ;;  %v8669_v15 = vsub.f32 %v19208_v23, %v8668_v47 }
 0x684   :  { %16006 = vmatpush3.msra.mxu1 %v18953_v26  ;;  %16019 = vmatprep.mubr.msk.f32.mxu1 %vm17031_vm2, %v17030_v4 }
 0x685   :  { %v7175_v31 = vand.u32 4294901760, %v7174_v29  ;;  %16007 = vmatprep.subr.mxu1 %v17030_v4 }
 0x686   :  { %16008 = vmatpush3.msra.mxu1 %v18961_v57 }
 0x687   :  { %16009 = vmatprep.subr.mxu1 %v17030_v4  ;;  %v7176_v13 = vsub.f32 %v7174_v29, %v7175_v31 }
 0x688   :  { %16010 = vmatpush3.msra.mxu1 %v18972_v28 }
 0x689   :  { %16011 = vmatprep.subr.mxu1 %v17030_v4  ;;  %v7177_v11 = vand.u32 4294901760, %v7176_v13  ;;  %v13861_v13 = vld [vmem:[%s20960_s26 + $0x30] sm:$0xff] }
 0x68a   :  { %16012 = vmatpush3.msra.mxu1 %v18986_v46 }
 0x68b   :  { %16013 = vmatprep.subr.mxu1 %v17030_v4  ;;  %15969 = vmatmul.mubr.f32.vlgmr.msra.gmra.mxu0 %v7177_v11  ;;  %v8670_v11 = vand.u32 4294901760, %v8669_v15  ;;  %v8094_v15 = vld [vmem:[%s20960_s26 + $0x28] sm:$0xff] }
 0x68c   :  { %15989 = vmatpush3.msra.mxu0 %v18959_v41  ;;  %16014 = vmatpush3.msra.mxu1 %v19001_v45 }
 0x68d   :  { %15990 = vmatprep.subr.mxu0 %v17030_v4  ;;  %16015 = vmatprep.subr.mxu1 %v17030_v4 }
 0x68e   :  { %15991 = vmatpush3.msra.mxu0 %v18970_v58  ;;  %16016 = vmatpush3.msra.mxu1 %v19011_v2 }
 0x68f   :  { %15992 = vmatprep.subr.mxu0 %v17030_v4  ;;  %16017 = vmatprep.subr.mxu1 %v17030_v4 }
 0x690   :  { %15993 = vmatpush3.msra.mxu0 %v18984_v12  ;;  %16018 = vmatpush3.msra.mxu1 %v19027_v19 }
 0x691   :  { %15994 = vmatprep.subr.mxu0 %v17030_v4  ;;  %16020 = vmatmul.mubr.f32.vlgmr.msra.gmra.mxu1 %v7175_v31  ;;  %v19239_v31 = vand.u32 4294901760, %v13862_v17 }
 0x692   :  { %16039 = vmatprep.subr.mxu1 %v17030_v4  ;;  %15995 = vmatpush3.msra.mxu0 %v18998_v38 }
 0x693   :  { %16040 = vmatpush3.msra.mxu1 %v18953_v26  ;;  %15996 = vmatprep.subr.mxu0 %v17030_v4 }
 0x694   :  { %16041 = vmatprep.subr.mxu1 %v17030_v4  ;;  %15997 = vmatpush3.msra.mxu0 %v19015_v40 }
 0x695   :  { %16042 = vmatpush3.msra.mxu1 %v18961_v57  ;;  %15998 = vmatprep.subr.mxu0 %v17030_v4 }
 0x696   :  { %16043 = vmatprep.subr.mxu1 %v17030_v4  ;;  %15999 = vmatpush3.msra.mxu0 %v19025_v32 }
 0x697   :  { %16044 = vmatpush3.msra.mxu1 %v18972_v28  ;;  %16000 = vmatprep.subr.mxu0 %v17030_v4 }
 0x698   :  { %16045 = vmatprep.subr.mxu1 %v17030_v4  ;;  %16001 = vmatpush3.msra.mxu0 %v19035_v59 }
 0x699   :  { %16002 = vmatprep.mubr.msk.f32.mxu0 %vm17031_vm2, %v17030_v4  ;;  %16046 = vmatpush3.msra.mxu1 %v18986_v46  ;;  %v7635_v46 = vld [vmem:[%s20958_s25] sm:$0xf] }
 0x69a   :  { %16003 = vmatmul.mubr.f32.vlgmr.msra.gmra.mxu0 %v7174_v29  ;;  %16022 = vmatprep.subr.mxu0 %v17030_v4  ;;  %v7638_v38 = vsel %vm7636_vm6, %v7635_v46, 0  ;;  %v19236_v29 = vsub.f32 %v13863_v30, %v19224_v63 }
 0x69b   :  { %16047 = vmatprep.subr.mxu1 %v17030_v4  ;;  %16023 = vmatpush3.msra.mxu0 %v7204_v1  ;;  %v7709_v40 = vand.u32 4294901760, %v7638_v38 }
 0x69c   :  { %16048 = vmatpush3.msra.mxu1 %v19001_v45  ;;  %16024 = vmatprep.subr.mxu0 %v17030_v4 }
 0x69d   :  { %16049 = vmatprep.subr.mxu1 %v17030_v4  ;;  %16025 = vmatpush3.msra.mxu0 %v7211_v52 }
 0x69e   :  { %16050 = vmatpush3.msra.mxu1 %v19011_v2  ;;  %16026 = vmatprep.subr.mxu0 %v17030_v4 }
 0x69f   :  { %16051 = vmatprep.subr.mxu1 %v17030_v4  ;;  %16027 = vmatpush3.msra.mxu0 %v7218_v25 }
 0x6a0   :  { %16052 = vmatpush3.msra.mxu1 %v19027_v19  ;;  %16053 = vmatprep.mubr.msk.f32.mxu1 %vm17031_vm2, %v17030_v4  ;;  %v7710_v19 = vsub.f32 %v7638_v38, %v7709_v40 }
 0x6a1   :  { %16028 = vmatprep.subr.mxu0 %v17030_v4  ;;  %16054 = vmatmul.mubr.f32.vlgmr.msra.gmra.mxu1 %v19058_v51 }
 0x6a2   :  { %16029 = vmatpush3.msra.mxu0 %v7225_v60  ;;  %16036 = vmatprep.mubr.msk.f32.mxu0 %vm17031_vm2, %v17030_v4  ;;  %v7711_v35 = vand.u32 4294901760, %v7710_v19 }
 0x6a3   :  { %16030 = vmatprep.subr.mxu0 %v17030_v4  ;;  %16061 = vmatprep.subr.mxu1 %v17030_v4 }
 0x6a4   :  { %16031 = vmatpush3.msra.mxu0 %v7232_v14  ;;  %16063 = vmatprep.mubr.msk.f32.mxu1 %vm17031_vm2, %v17030_v4  ;;  %v7712_v48 = vsub.f32 %v7710_v19, %v7711_v35 }
 0x6a5   :  { %16032 = vmatprep.subr.mxu0 %v17030_v4 }
 0x6a6   :  { %16033 = vmatpush3.msra.mxu0 %v7239_v27  ;;  %v7713_v24 = vand.u32 4294901760, %v7712_v48 }
 0x6a7   :  { %16034 = vmatprep.subr.mxu0 %v17030_v4 }
 0x6a8   :  { %16035 = vmatpush3.msra.mxu0 %v7246_v9  ;;  %v13860_v9 = vld [vmem:[%s20958_s25 + $0x4] sm:$0xf] }
 0x6a9   :  { %16037 = vmatmul.mubr.f32.vlgmr.msra.gmra.mxu0 %v19058_v51  ;;  %16056 = vmatprep.subr.mxu0 %v17030_v4  ;;  %v8098_v61 = vsel %vm7636_vm6, %v13860_v9, 0  ;;  %v8675_v51 = vand.u32 4294901760, %v19222_v33 }
 0x6aa   :  { %16058 = vmatprep.mubr.msk.f32.mxu0 %vm17031_vm2, %v17030_v4  ;;  %v8166_v39 = vand.u32 4294901760, %v8098_v61 }
 0x6ac   :  { %v8167_v0 = vsub.f32 %v8098_v61, %v8166_v39 }
 0x6ae   :  { %v8168_v36 = vand.u32 4294901760, %v8167_v0 }
 0x6b0   :  { %v8169_v16 = vsub.f32 %v8167_v0, %v8168_v36 }
 0x6b2   :  { %v8170_v54 = vand.u32 4294901760, %v8169_v16 }
 0x743   :  { %v7285_v26 = vpop.f32.mrf.mxu1 }
 0x745   :  { %v15987_v41 = vpop.f32.mrf.mxu1 }
 0x746   :  { %v8682_v41 = vand.u32 4294901760, %v19236_v29 }
 0x74b   :  { %v7179_v57 = vpop.f32.mrf.mxu0 }
 0x74c   :  { %v7286_v45 = vadd.f32 %v7285_v26, %v7179_v57  ;;  %v8676_v26 = vsub.f32 %v19222_v33, %v8675_v51  ;;  %v19249_v57 = vand.u32 4294901760, %v13861_v13 }
 0x74d   :  { %v15970_v1 = vpop.f32.mrf.mxu0 }
 0x74e   :  { %v19253_v1 = vsub.f32 %v13862_v17, %v19239_v31 }
 0x751   :  { %v7451_v58 = vpop.f32.mrf.mxu1 }
 0x753   :  { %v16021_v28 = vpop.f32.mrf.mxu1 }
 0x754   :  { %v8683_v28 = vsub.f32 %v19236_v29, %v8682_v41 }
 0x756   :  { %v8684_v46 = vand.u32 4294901760, %v8683_v28  ;;  %v8092_v28 = vld [vmem:[%s20960_s26 + $0x18] sm:$0xff] }
 0x75a   :  { %v7371_v52 = vpop.f32.mrf.mxu0 }
 0x75b   :  { %v7372_v2 = vadd.f32 %v7371_v52, %v7286_v45  ;;  %v19260_v52 = vsub.f32 %v13861_v13, %v19249_v57 }
 0x75c   :  { %v16004_v12 = vpop.f32.mrf.mxu0 }
 0x75d   :  { %v7452_v32 = vadd.f32 %v7451_v58, %v7372_v2  ;;  %v8677_v58 = vand.u32 4294901760, %v8676_v26  ;;  %v8689_v12 = vand.u32 4294901760, %v19253_v1 }
 0x75f   :  { %v8690_v38 = vsub.f32 %v19253_v1, %v8689_v12 }
 0x761   :  { %v7621_v25 = vpop.f32.mrf.mxu1 }
 0x763   :  { %v16055_v60 = vpop.f32.mrf.mxu1 }
 0x764   :  { %v8691_v60 = vand.u32 4294901760, %v8690_v38  ;;  %v8091_v38 = vld [vmem:[%s20960_s26 + $0x10] sm:$0xff] }
 0x769   :  { %v7543_v14 = vpop.f32.mrf.mxu0 }
 0x76a   :  { %v7544_v27 = vadd.f32 %v7543_v14, %v7452_v32 }
 0x76b   :  { %v16038_v59 = vpop.f32.mrf.mxu0 }
 0x76c   :  { %v7622_v8 = vadd.f32 %v7621_v25, %v7544_v27  ;;  %v8696_v25 = vand.u32 4294901760, %v19260_v52 }
 0x76e   :  { %v7625_v53 = vadd.f32 %v7622_v8, %v19055_v18  ;;  %v19191_v18 = vand.u32 4294901760, %v13866_v10  ;;  %v8697_v45 = vsub.f32 %v19260_v52, %v8696_v25 }
 0x770   :  { %v7633_v3 = vadd.f32 %v13859_v37, %v7625_v53  ;;  %v19197_v7 = vsub.f32 %v13866_v10, %v19191_v18  ;;  %v8698_v2 = vand.u32 4294901760, %v8697_v45 }
 0x772   :  { %v7634_v42 = vmax.f32 %v7633_v3, 0.0  ;;  %v8661_v50 = vand.u32 4294901760, %v19197_v7 }
 0x774   :  { %v7641_v62 = vsel %vm4629_vm4, %v7634_v42, 0  ;;  %v8662_v55 = vsub.f32 %v19197_v7, %v8661_v50 }
 0x775   :  { %v7674_v34 = vand.u32 4294901760, %v7641_v62 }
 0x776   :  { %v8663_v21 = vand.u32 4294901760, %v8662_v55 }
 0x777   :  { %16057 = vmatpush3.msra.mxu0 %v7674_v34  ;;  %v7751_v49 = vsub.f32 %v7641_v62, %v7674_v34 }
 0x778   :  { %16059 = vmatmul.mubr.f32.vlgmr.msra.gmra.mxu0 %v7713_v24  ;;  %16066 = vmatprep.subr.mxu0 %v17030_v4 }
 0x779   :  { %16067 = vmatpush3.msra.mxu0 %v7751_v49  ;;  %16068 = vmatprep.mubr.msk.f32.mxu0 %vm17031_vm2, %v17030_v4  ;;  %v7752_v43 = vand.u32 4294901760, %v7751_v49 }
 0x77a   :  { %16076 = vmatprep.subr.mxu0 %v17030_v4 }
 0x77b   :  { %v7753_v20 = vsub.f32 %v7751_v49, %v7752_v43 }
 0x77c   :  { %16069 = vmatmul.mubr.f32.vlgmr.msra.gmra.mxu0 %v7710_v19 }
 0x77d   :  { %16077 = vmatpush3.msra.mxu0 %v7752_v43  ;;  %v7754_v56 = vand.u32 4294901760, %v7753_v20  ;;  %16078 = vmatprep.mubr.msk.f32.mxu0 %vm17031_vm2, %v17030_v4 }
 0x77e   :  { %16086 = vmatprep.subr.mxu0 %v17030_v4 }
 0x77f   :  { %16062 = vmatpush3.msra.mxu1 %v7754_v56 }
 0x780   :  { %16064 = vmatmul.mubr.f32.vlgmr.msra.gmra.mxu1 %v7709_v40  ;;  %16071 = vmatprep.subr.mxu1 %v17030_v4 }
 0x781   :  { %16079 = vmatmul.mubr.f32.vlgmr.msra.gmra.mxu0 %v7709_v40  ;;  %16072 = vmatpush3.msra.mxu1 %v7674_v34 }
 0x782   :  { %16087 = vmatpush3.msra.mxu0 %v7674_v34  ;;  %16073 = vmatprep.mubr.msk.f32.mxu1 %vm17031_vm2, %v17030_v4 }
 0x783   :  { %16081 = vmatprep.subr.mxu1 %v17030_v4  ;;  %16088 = vmatprep.mubr.msk.f32.mxu0 %vm17031_vm2, %v17030_v4 }
 0x784   :  { %16096 = vmatprep.subr.mxu0 %v17030_v4  ;;  %16074 = vmatmul.mubr.f32.vlgmr.msra.gmra.mxu1 %v7711_v35 }
 0x785   :  { %16082 = vmatpush3.msra.mxu1 %v7674_v34  ;;  %16089 = vmatmul.mubr.f32.vlgmr.msra.gmra.mxu0 %v8170_v54 }
 0x786   :  { %16097 = vmatpush3.msra.mxu0 %v7751_v49  ;;  %16083 = vmatprep.mubr.msk.f32.mxu1 %vm17031_vm2, %v17030_v4 }
 0x787   :  { %16091 = vmatprep.subr.mxu1 %v17030_v4  ;;  %16098 = vmatprep.mubr.msk.f32.mxu0 %vm17031_vm2, %v17030_v4 }
 0x788   :  { %16106 = vmatprep.subr.mxu0 %v17030_v4  ;;  %16084 = vmatmul.mubr.f32.vlgmr.msra.gmra.mxu1 %v7709_v40 }
 0x789   :  { %16092 = vmatpush3.msra.mxu1 %v7754_v56  ;;  %16099 = vmatmul.mubr.f32.vlgmr.msra.gmra.mxu0 %v8167_v0 }
 0x78a   :  { %16107 = vmatpush3.msra.mxu0 %v7752_v43  ;;  %16093 = vmatprep.mubr.msk.f32.mxu1 %vm17031_vm2, %v17030_v4 }
 0x78b   :  { %16101 = vmatprep.subr.mxu1 %v17030_v4  ;;  %16108 = vmatprep.mubr.msk.f32.mxu0 %vm17031_vm2, %v17030_v4 }
 0x78c   :  { %16094 = vmatmul.mubr.f32.vlgmr.msra.gmra.mxu1 %v8166_v39  ;;  %16116 = vmatprep.subr.mxu0 %v17030_v4 }
 0x78d   :  { %16102 = vmatpush3.msra.mxu1 %v7674_v34  ;;  %16103 = vmatprep.mubr.msk.f32.mxu1 %vm17031_vm2, %v17030_v4 }
 0x78e   :  { %16111 = vmatprep.subr.mxu1 %v17030_v4  ;;  %16109 = vmatmul.mubr.f32.vlgmr.msra.gmra.mxu0 %v8166_v39 }
 0x78f   :  { %16128 = vmatprep.mubr.msk.f32.mxu0 %vm17031_vm2, %v17030_v4  ;;  %16117 = vmatpush3.msra.mxu0 %v19191_v18 }
 0x790   :  { %16104 = vmatmul.mubr.f32.vlgmr.msra.gmra.mxu1 %v8168_v36  ;;  %16118 = vmatprep.subr.mxu0 %v17030_v4 }
 0x791   :  { %16112 = vmatpush3.msra.mxu1 %v7674_v34  ;;  %16113 = vmatprep.mubr.msk.f32.mxu1 %vm17031_vm2, %v17030_v4 }
 0x792   :  { %16131 = vmatprep.subr.mxu1 %v17030_v4  ;;  %16119 = vmatpush3.msra.mxu0 %v19199_v5 }
 0x793   :  { %16120 = vmatprep.subr.mxu0 %v17030_v4 }
 0x794   :  { %16114 = vmatmul.mubr.f32.vlgmr.msra.gmra.mxu1 %v8166_v39  ;;  %16121 = vmatpush3.msra.mxu0 %v19210_v22 }
 0x795   :  { %16143 = vmatprep.mubr.msk.f32.mxu1 %vm17031_vm2, %v17030_v4  ;;  %16122 = vmatprep.subr.mxu0 %v17030_v4 }
 0x796   :  { %16123 = vmatpush3.msra.mxu0 %v19224_v63  ;;  %16132 = vmatpush3.msra.mxu1 %v8663_v21 }
 0x797   :  { %16124 = vmatprep.subr.mxu0 %v17030_v4  ;;  %16133 = vmatprep.subr.mxu1 %v17030_v4 }
 0x798   :  { %16125 = vmatpush3.msra.mxu0 %v19239_v31  ;;  %16134 = vmatpush3.msra.mxu1 %v8670_v11  ;;  %v8093_v11 = vld [vmem:[%s20960_s26 + $0x20] sm:$0xff] }
 0x799   :  { %16126 = vmatprep.subr.mxu0 %v17030_v4  ;;  %16135 = vmatprep.subr.mxu1 %v17030_v4 }
 0x79a   :  { %16127 = vmatpush3.msra.mxu0 %v19249_v57  ;;  %16136 = vmatpush3.msra.mxu1 %v8677_v58  ;;  %v19305_v58 = vand.u32 4294901760, %v8094_v15 }
 0x79b   :  { %16146 = vmatprep.subr.mxu0 %v17030_v4  ;;  %16137 = vmatprep.subr.mxu1 %v17030_v4 }
 0x79c   :  { %16138 = vmatpush3.msra.mxu1 %v8684_v46  ;;  %v19314_v46 = vand.u32 4294901760, %v8093_v11 }
 0x79d   :  { %16139 = vmatprep.subr.mxu1 %v17030_v4 }
 0x79e   :  { %16140 = vmatpush3.msra.mxu1 %v8691_v60  ;;  %v19323_v60 = vsub.f32 %v8094_v15, %v19305_v58 }
 0x79f   :  { %16141 = vmatprep.subr.mxu1 %v17030_v4 }
 0x7a0   :  { %16142 = vmatpush3.msra.mxu1 %v8698_v2  ;;  %v19325_v2 = vand.u32 4294901760, %v8092_v28 }
 0x7a1   :  { %16161 = vmatprep.subr.mxu1 %v17030_v4 }
 0x838   :  { %v7715_v40 = vpop.f32.mrf.mxu0 }
 0x83a   :  { %v16060_v32 = vpop.f32.mrf.mxu0 }
 0x83b   :  { %v19334_v32 = vand.u32 4294901760, %v8091_v38 }
 0x83c   :  { %v7865_v19 = vpop.f32.mrf.mxu0 }
 0x83e   :  { %v16070_v14 = vpop.f32.mrf.mxu0 }
 0x840   :  { %v7791_v27 = vpop.f32.mrf.mxu1 }
 0x841   :  { %v19278_v59 = vpop.f32.mrf.mxu0  ;;  %v7792_v26 = vadd.f32 %v7791_v27, %v7715_v40  ;;  %v19332_v40 = vsub.f32 %v8093_v11, %v19314_v46  ;;  %v19346_v27 = vsub.f32 %v8092_v28, %v19325_v2 }
 0x842   :  { %v16065_v9 = vpop.f32.mrf.mxu1 }
 0x843   :  { %v16080_v8 = vpop.f32.mrf.mxu0  ;;  %v7866_v45 = vadd.f32 %v7865_v19, %v7792_v26  ;;  %v8090_v19 = vld [vmem:[%s20960_s26 + $0x8] sm:$0xff]  ;;  %v8089_v9 = vld [vmem:[%s20960_s26] sm:$0xff] }
 0x844   :  { %v19280_v35 = vpop.f32.mrf.mxu1  ;;  %v19353_v8 = vand.u32 4294901760, %v8090_v19 }
 0x845   :  { %v8172_v37 = vpop.f32.mrf.mxu0  ;;  %v7940_v14 = vadd.f32 %v19280_v35, %v7866_v45  ;;  %v19359_v35 = vsub.f32 %v8091_v38, %v19334_v32 }
 0x846   :  { %v16075_v53 = vpop.f32.mrf.mxu1 }
 0x847   :  { %v16090_v61 = vpop.f32.mrf.mxu0  ;;  %v8014_v53 = vadd.f32 %v19278_v59, %v7940_v14  ;;  %v9196_v59 = vand.u32 4294901760, %v19359_v35 }
 0x848   :  { %v19282_v3 = vpop.f32.mrf.mxu1  ;;  %v9189_v61 = vand.u32 4294901760, %v19346_v27 }
 0x849   :  { %v8322_v48 = vpop.f32.mrf.mxu0 }
 0x84a   :  { %v16085_v39 = vpop.f32.mrf.mxu1 }
 0x84b   :  { %v16100_v42 = vpop.f32.mrf.mxu0 }
 0x84c   :  { %v8248_v62 = vpop.f32.mrf.mxu1  ;;  %v8086_v42 = vadd.f32 %v19282_v3, %v8014_v53 }
 0x84d   :  { %v8249_v24 = vadd.f32 %v8248_v62, %v8172_v37  ;;  %v19363_v37 = vand.u32 4294901760, %v8089_v9 }
 0x84e   :  { %v16095_v34 = vpop.f32.mrf.mxu1  ;;  %v8470_v0 = vpop.f32.mrf.mxu0 }
 0x84f   :  { %v8323_v49 = vadd.f32 %v8322_v48, %v8249_v24  ;;  %v19375_v48 = vsub.f32 %v8090_v19, %v19353_v8  ;;  %v19387_v39 = vsub.f32 %v8089_v9, %v19363_v37 }
 0x850   :  { %v8396_v43 = vpop.f32.mrf.mxu1  ;;  %v16110_v36 = vpop.f32.mrf.mxu0 }
 0x851   :  { %v8397_v20 = vadd.f32 %v8396_v43, %v8323_v49 }
 0x852   :  { %v16105_v56 = vpop.f32.mrf.mxu1 }
 0x853   :  { %v8471_v16 = vadd.f32 %v8470_v0, %v8397_v20 }
 0x854   :  { %v8542_v54 = vpop.f32.mrf.mxu1 }
 0x855   :  { %v8543_v10 = vadd.f32 %v8542_v54, %v8471_v16 }
 0x856   :  { %v16115_v6 = vpop.f32.mrf.mxu1 }
 0x857   :  { %v8555_v44 = vsel %vm8553_vm7, %v8543_v10, 0 }
 0x858   :  { %v19285_v30 = vand.u32 4294901760, %v8555_v44 }
 0x85a   :  { %v8629_v55 = vsub.f32 %v8555_v44, %v19285_v30  ;;  %16144 = vmatmul.mubr.f32.vlgmr.msra.gmra.mxu1 %v19285_v30 }
 0x85b   :  { %16162 = vmatpush3.msra.mxu1 %v19191_v18  ;;  %16173 = vmatprep.mubr.msk.f32.mxu1 %vm17031_vm2, %v17030_v4 }
 0x85c   :  { %v8630_v17 = vand.u32 4294901760, %v8629_v55  ;;  %16163 = vmatprep.subr.mxu1 %v17030_v4 }
 0x85d   :  { %16164 = vmatpush3.msra.mxu1 %v19199_v5 }
 0x85e   :  { %16165 = vmatprep.subr.mxu1 %v17030_v4  ;;  %v8631_v21 = vsub.f32 %v8629_v55, %v8630_v17 }
 0x85f   :  { %16166 = vmatpush3.msra.mxu1 %v19210_v22 }
 0x860   :  { %16167 = vmatprep.subr.mxu1 %v17030_v4  ;;  %v8632_v13 = vand.u32 4294901760, %v8631_v21 }
 0x861   :  { %16168 = vmatpush3.msra.mxu1 %v19224_v63 }
 0x862   :  { %16169 = vmatprep.subr.mxu1 %v17030_v4  ;;  %16129 = vmatmul.mubr.f32.vlgmr.msra.gmra.mxu0 %v8632_v13 }
 0x863   :  { %16147 = vmatpush3.msra.mxu0 %v19197_v7  ;;  %16170 = vmatpush3.msra.mxu1 %v19239_v31 }
 0x864   :  { %16148 = vmatprep.subr.mxu0 %v17030_v4  ;;  %16171 = vmatprep.subr.mxu1 %v17030_v4 }
 0x865   :  { %16149 = vmatpush3.msra.mxu0 %v19208_v23  ;;  %16172 = vmatpush3.msra.mxu1 %v19249_v57  ;;  %v9197_v23 = vsub.f32 %v19359_v35, %v9196_v59 }
 0x866   :  { %16150 = vmatprep.subr.mxu0 %v17030_v4  ;;  %16174 = vmatmul.mubr.f32.vlgmr.msra.gmra.mxu1 %v8630_v17 }
 0x867   :  { %16191 = vmatprep.subr.mxu1 %v17030_v4  ;;  %16151 = vmatpush3.msra.mxu0 %v19222_v33  ;;  %v9198_v33 = vand.u32 4294901760, %v9197_v23 }
 0x868   :  { %16192 = vmatpush3.msra.mxu1 %v19191_v18  ;;  %16152 = vmatprep.subr.mxu0 %v17030_v4  ;;  %v9175_v18 = vand.u32 4294901760, %v19323_v60 }
 0x869   :  { %16193 = vmatprep.subr.mxu1 %v17030_v4  ;;  %16153 = vmatpush3.msra.mxu0 %v19236_v29 }
 0x86a   :  { %16194 = vmatpush3.msra.mxu1 %v19199_v5  ;;  %16154 = vmatprep.subr.mxu0 %v17030_v4  ;;  %v9182_v5 = vand.u32 4294901760, %v19332_v40 }
 0x86b   :  { %16195 = vmatprep.subr.mxu1 %v17030_v4  ;;  %16155 = vmatpush3.msra.mxu0 %v19253_v1 }
 0x86c   :  { %16196 = vmatpush3.msra.mxu1 %v19210_v22  ;;  %16156 = vmatprep.subr.mxu0 %v17030_v4  ;;  %v9176_v22 = vsub.f32 %v19323_v60, %v9175_v18 }
 0x86d   :  { %16197 = vmatprep.subr.mxu1 %v17030_v4  ;;  %16157 = vmatpush3.msra.mxu0 %v19260_v52 }
 0x86e   :  { %16158 = vmatprep.mubr.msk.f32.mxu0 %vm17031_vm2, %v17030_v4  ;;  %16198 = vmatpush3.msra.mxu1 %v19224_v63  ;;  %v9183_v63 = vsub.f32 %v19332_v40, %v9182_v5  ;;  %v9177_v7 = vand.u32 4294901760, %v9176_v22  ;;  %v13867_v22 = vld [vmem:[%s20853_s11] ss:$0 sm:$0xff] }
 0x86f   :  { %16159 = vmatmul.mubr.f32.vlgmr.msra.gmra.mxu0 %v8629_v55  ;;  %16176 = vmatprep.subr.mxu0 %v17030_v4 }
 0x870   :  { %16199 = vmatprep.subr.mxu1 %v17030_v4  ;;  %16177 = vmatpush3.msra.mxu0 %v8661_v50  ;;  %v9190_v50 = vsub.f32 %v19346_v27, %v9189_v61  ;;  %v9184_v3 = vand.u32 4294901760, %v9183_v63 }
 0x871   :  { %16200 = vmatpush3.msra.mxu1 %v19239_v31  ;;  %16178 = vmatprep.subr.mxu0 %v17030_v4  ;;  %v9203_v31 = vand.u32 4294901760, %v19375_v48 }
 0x872   :  { %16201 = vmatprep.subr.mxu1 %v17030_v4  ;;  %16179 = vmatpush3.msra.mxu0 %v8668_v47  ;;  %v9210_v47 = vand.u32 4294901760, %v19387_v39  ;;  %v9191_v62 = vand.u32 4294901760, %v9190_v50 }
 0x873   :  { %16202 = vmatpush3.msra.mxu1 %v19249_v57  ;;  %16203 = vmatprep.mubr.msk.f32.mxu1 %vm17031_vm2, %v17030_v4  ;;  %v9069_v57 = vsel %vm8553_vm7, %v8086_v42, 0  ;;  %v9204_v24 = vsub.f32 %v19375_v48, %v9203_v31 }
 0x874   :  { %16180 = vmatprep.subr.mxu0 %v17030_v4  ;;  %16204 = vmatmul.mubr.f32.vlgmr.msra.gmra.mxu1 %v19285_v30  ;;  %v9211_v29 = vsub.f32 %v19387_v39, %v9210_v47 }
 0x875   :  { %16221 = vmatprep.subr.mxu1 %v17030_v4  ;;  %16181 = vmatpush3.msra.mxu0 %v8675_v51  ;;  %v19418_v51 = vand.u32 4294901760, %v9069_v57 }
 0x876   :  { %16222 = vmatpush3.msra.mxu1 %v9177_v7  ;;  %16182 = vmatprep.subr.mxu0 %v17030_v4 }
 0x877   :  { %16223 = vmatprep.subr.mxu1 %v17030_v4  ;;  %16183 = vmatpush3.msra.mxu0 %v8682_v41  ;;  %v9205_v41 = vand.u32 4294901760, %v9204_v24  ;;  %v9143_v1 = vsub.f32 %v9069_v57, %v19418_v51  ;;  %v10053_v57 = vld [vmem:[%s20854_s13 + $0x38] sm:$0xff]  ;;  %v10052_v24 = vld [vmem:[%s20854_s13 + $0x30] sm:$0xff] }
 0x878   :  { %16224 = vmatpush3.msra.mxu1 %v9184_v3  ;;  %16184 = vmatprep.subr.mxu0 %v17030_v4 }
 0x879   :  { %16225 = vmatprep.subr.mxu1 %v17030_v4  ;;  %16185 = vmatpush3.msra.mxu0 %v8689_v12  ;;  %v9212_v12 = vand.u32 4294901760, %v9211_v29  ;;  %v9144_v52 = vand.u32 4294901760, %v9143_v1  ;;  %v10051_v29 = vld [vmem:[%s20854_s13 + $0x28] sm:$0xff] }
 0x87a   :  { %16226 = vmatpush3.msra.mxu1 %v9191_v62  ;;  %16186 = vmatprep.subr.mxu0 %v17030_v4  ;;  %v19552_v62 = vand.u32 4294901760, %v10053_v57 }
 0x87b   :  { %16227 = vmatprep.subr.mxu1 %v17030_v4  ;;  %16187 = vmatpush3.msra.mxu0 %v8696_v25  ;;  %v9145_v25 = vsub.f32 %v9143_v1, %v9144_v52 }
 0x87c   :  { %16188 = vmatprep.mubr.msk.f32.mxu0 %vm17031_vm2, %v17030_v4  ;;  %16228 = vmatpush3.msra.mxu1 %v9198_v33  ;;  %v19558_v33 = vsub.f32 %v10053_v57, %v19552_v62 }
 0x87d   :  { %16189 = vmatmul.mubr.f32.vlgmr.msra.gmra.mxu0 %v19285_v30  ;;  %16206 = vmatprep.subr.mxu0 %v17030_v4  ;;  %v9146_v34 = vand.u32 4294901760, %v9145_v25 }
 0x87e   :  { %16229 = vmatprep.subr.mxu1 %v17030_v4  ;;  %16207 = vmatpush3.msra.mxu0 %v19305_v58 }
 0x87f   :  { %16230 = vmatpush3.msra.mxu1 %v9205_v41  ;;  %16208 = vmatprep.subr.mxu0 %v17030_v4  ;;  %v10159_v41 = vand.u32 4294901760, %v19558_v33 }
 0x880   :  { %16231 = vmatprep.subr.mxu1 %v17030_v4  ;;  %16209 = vmatpush3.msra.mxu0 %v19314_v46 }
 0x881   :  { %16232 = vmatpush3.msra.mxu1 %v9212_v12  ;;  %16233 = vmatprep.mubr.msk.f32.mxu1 %vm17031_vm2, %v17030_v4  ;;  %v19571_v12 = vand.u32 4294901760, %v10051_v29  ;;  %v10160_v25 = vsub.f32 %v19558_v33, %v10159_v41 }
 0x882   :  { %16210 = vmatprep.subr.mxu0 %v17030_v4  ;;  %16234 = vmatmul.mubr.f32.vlgmr.msra.gmra.mxu1 %v19418_v51 }
 0x883   :  { %16251 = vmatprep.subr.mxu1 %v17030_v4  ;;  %16211 = vmatpush3.msra.mxu0 %v19325_v2 }
 0x884   :  { %16252 = vmatpush3.msra.mxu1 %v19305_v58  ;;  %16212 = vmatprep.subr.mxu0 %v17030_v4 }
 0x885   :  { %16253 = vmatprep.subr.mxu1 %v17030_v4  ;;  %16213 = vmatpush3.msra.mxu0 %v19334_v32 }
 0x886   :  { %16254 = vmatpush3.msra.mxu1 %v19314_v46  ;;  %16214 = vmatprep.subr.mxu0 %v17030_v4 }
 0x887   :  { %16255 = vmatprep.subr.mxu1 %v17030_v4  ;;  %16215 = vmatpush3.msra.mxu0 %v19353_v8 }
 0x888   :  { %16256 = vmatpush3.msra.mxu1 %v19325_v2  ;;  %16216 = vmatprep.subr.mxu0 %v17030_v4 }
 0x889   :  { %16257 = vmatprep.subr.mxu1 %v17030_v4  ;;  %16217 = vmatpush3.msra.mxu0 %v19363_v37 }
 0x88a   :  { %16218 = vmatprep.mubr.msk.f32.mxu0 %vm17031_vm2, %v17030_v4  ;;  %16258 = vmatpush3.msra.mxu1 %v19334_v32 }
 0x88b   :  { %16219 = vmatmul.mubr.f32.vlgmr.msra.gmra.mxu0 %v9146_v34  ;;  %16236 = vmatprep.subr.mxu0 %v17030_v4 }
 0x88c   :  { %16259 = vmatprep.subr.mxu1 %v17030_v4  ;;  %16237 = vmatpush3.msra.mxu0 %v19323_v60  ;;  %v9591_v60 = vld [vmem:[%s20852_s12] sm:$0x3] }
 0x88d   :  { %16260 = vmatpush3.msra.mxu1 %v19353_v8  ;;  %16238 = vmatprep.subr.mxu0 %v17030_v4 }
 0x88e   :  { %16261 = vmatprep.subr.mxu1 %v17030_v4  ;;  %16239 = vmatpush3.msra.mxu0 %v19332_v40 }
 0x88f   :  { %16262 = vmatpush3.msra.mxu1 %v19363_v37  ;;  %16263 = vmatprep.mubr.msk.f32.mxu1 %vm17031_vm2, %v17030_v4 }
 0x890   :  { %16240 = vmatprep.subr.mxu0 %v17030_v4  ;;  %16264 = vmatmul.mubr.f32.vlgmr.msra.gmra.mxu1 %v9144_v52  ;;  %v10050_v52 = vld [vmem:[%s20854_s13 + $0x20] sm:$0xff] }
 0x891   :  { %16281 = vmatprep.subr.mxu1 %v17030_v4  ;;  %16241 = vmatpush3.msra.mxu0 %v19346_v27 }
 0x892   :  { %16282 = vmatpush3.msra.mxu1 %v19305_v58  ;;  %16242 = vmatprep.subr.mxu0 %v17030_v4 }
 0x893   :  { %16283 = vmatprep.subr.mxu1 %v17030_v4  ;;  %16243 = vmatpush3.msra.mxu0 %v19359_v35 }
 0x894   :  { %16284 = vmatpush3.msra.mxu1 %v19314_v46  ;;  %16244 = vmatprep.subr.mxu0 %v17030_v4 }
 0x895   :  { %16285 = vmatprep.subr.mxu1 %v17030_v4  ;;  %16245 = vmatpush3.msra.mxu0 %v19375_v48 }
 0x896   :  { %16286 = vmatpush3.msra.mxu1 %v19325_v2  ;;  %16246 = vmatprep.subr.mxu0 %v17030_v4 }
 0x897   :  { %16287 = vmatprep.subr.mxu1 %v17030_v4  ;;  %16247 = vmatpush3.msra.mxu0 %v19387_v39 }
 0x898   :  { %16248 = vmatprep.mubr.msk.f32.mxu0 %vm17031_vm2, %v17030_v4  ;;  %16288 = vmatpush3.msra.mxu1 %v19334_v32  ;;  %v9594_v32 = vsel %vm9592_vm8, %v9591_v60, 0 }
 0x899   :  { %16249 = vmatmul.mubr.f32.vlgmr.msra.gmra.mxu0 %v9143_v1  ;;  %16266 = vmatprep.subr.mxu0 %v17030_v4 }
 0x89a   :  { %16289 = vmatprep.subr.mxu1 %v17030_v4  ;;  %16267 = vmatpush3.msra.mxu0 %v9175_v18  ;;  %v9666_v18 = vand.u32 4294901760, %v9594_v32 }
 0x89b   :  { %16290 = vmatpush3.msra.mxu1 %v19353_v8  ;;  %16268 = vmatprep.subr.mxu0 %v17030_v4 }
 0x89c   :  { %16291 = vmatprep.subr.mxu1 %v17030_v4  ;;  %16269 = vmatpush3.msra.mxu0 %v9182_v5  ;;  %v9667_v8 = vsub.f32 %v9594_v32, %v9666_v18 }
 0x89d   :  { %16292 = vmatpush3.msra.mxu1 %v19363_v37  ;;  %16293 = vmatprep.mubr.msk.f32.mxu1 %vm17031_vm2, %v17030_v4 }
 0x89e   :  { %16270 = vmatprep.subr.mxu0 %v17030_v4  ;;  %16294 = vmatmul.mubr.f32.vlgmr.msra.gmra.mxu1 %v19418_v51  ;;  %v9668_v53 = vand.u32 4294901760, %v9667_v8 }
 0x89f   :  { %16271 = vmatpush3.msra.mxu0 %v9189_v61  ;;  %16278 = vmatprep.mubr.msk.f32.mxu0 %vm17031_vm2, %v17030_v4 }
 0x8a0   :  { %16272 = vmatprep.subr.mxu0 %v17030_v4  ;;  %16301 = vmatprep.subr.mxu1 %v17030_v4 }
 0x8a1   :  { %16273 = vmatpush3.msra.mxu0 %v9196_v59  ;;  %16303 = vmatprep.mubr.msk.f32.mxu1 %vm17031_vm2, %v17030_v4  ;;  %v9669_v59 = vsub.f32 %v9667_v8, %v9668_v53 }
 0x8a2   :  { %16274 = vmatprep.subr.mxu0 %v17030_v4 }
 0x8a3   :  { %16275 = vmatpush3.msra.mxu0 %v9203_v31  ;;  %v9670_v7 = vand.u32 4294901760, %v9669_v59 }
 0x8a4   :  { %16276 = vmatprep.subr.mxu0 %v17030_v4 }
 0x8a5   :  { %16277 = vmatpush3.msra.mxu0 %v9210_v47 }
 0x8a6   :  { %16279 = vmatmul.mubr.f32.vlgmr.msra.gmra.mxu0 %v19418_v51  ;;  %16296 = vmatprep.subr.mxu0 %v17030_v4  ;;  %v19560_v51 = vand.u32 4294901760, %v10052_v24 }
 0x8a7   :  { %16298 = vmatprep.mubr.msk.f32.mxu0 %vm17031_vm2, %v17030_v4 }
 0x8a8   :  { %v19569_v1 = vsub.f32 %v10052_v24, %v19560_v51 }
 0x8aa   :  { %v10166_v34 = vand.u32 4294901760, %v19569_v1 }
 0x91a   :  { %v8735_v0 = vpop.f32.mrf.mxu1 }
 0x91c   :  { %v16145_v49 = vpop.f32.mrf.mxu1 }
 0x91d   :  { %v19585_v49 = vand.u32 4294901760, %v10050_v52 }
 0x922   :  { %v8634_v43 = vpop.f32.mrf.mxu0 }
 0x923   :  { %v8736_v15 = vadd.f32 %v8735_v0, %v8634_v43  ;;  %v19583_v0 = vsub.f32 %v10051_v29, %v19571_v12  ;;  %v10049_v43 = vld [vmem:[%s20854_s13 + $0x18] sm:$0xff] }
 0x924   :  { %v16130_v36 = vpop.f32.mrf.mxu0 }
 0x925   :  { %v10161_v36 = vand.u32 4294901760, %v10160_v25 }
 0x926   :  { %v8898_v20 = vpop.f32.mrf.mxu1 }
 0x928   :  { %v16175_v56 = vpop.f32.mrf.mxu1 }
 0x929   :  { %v10173_v56 = vand.u32 4294901760, %v19583_v0 }
 0x92f   :  { %v8819_v16 = vpop.f32.mrf.mxu0 }
 0x930   :  { %v8820_v11 = vadd.f32 %v8819_v16, %v8736_v15  ;;  %v19597_v16 = vsub.f32 %v10050_v52, %v19585_v49 }
 0x931   :  { %v16160_v54 = vpop.f32.mrf.mxu0 }
 0x932   :  { %v8899_v28 = vadd.f32 %v8898_v20, %v8820_v11  ;;  %v10167_v20 = vsub.f32 %v19569_v1, %v10166_v34  ;;  %v19600_v54 = vand.u32 4294901760, %v10049_v43 }
 0x934   :  { %v9064_v10 = vpop.f32.mrf.mxu1 }
 0x936   :  { %v16205_v6 = vpop.f32.mrf.mxu1 }
 0x937   :  { %v10168_v6 = vand.u32 4294901760, %v10167_v20 }
 0x93d   :  { %v8987_v44 = vpop.f32.mrf.mxu0 }
 0x93e   :  { %v8988_v46 = vadd.f32 %v8987_v44, %v8899_v28  ;;  %v10174_v44 = vsub.f32 %v19583_v0, %v10173_v56  ;;  %v10046_v28 = vld [vmem:[%s20854_s13] sm:$0xff] }
 0x93f   :  { %v16190_v30 = vpop.f32.mrf.mxu0  ;;  %v19639_v60 = vand.u32 4294901760, %v10046_v28 }
 0x940   :  { %v9065_v38 = vadd.f32 %v9064_v10, %v8988_v46  ;;  %v10048_v10 = vld [vmem:[%s20854_s13 + $0x10] sm:$0xff]  ;;  %v10180_v30 = vand.u32 4294901760, %v19597_v16  ;;  %v10175_v15 = vand.u32 4294901760, %v10174_v44 }
 0x942   :  { %v9249_v55 = vpop.f32.mrf.mxu1 }
 0x944   :  { %v16235_v17 = vpop.f32.mrf.mxu1 }
 0x945   :  { %v19614_v17 = vsub.f32 %v10049_v43, %v19600_v54 }
 0x94b   :  { %v9148_v21 = vpop.f32.mrf.mxu0 }
 0x94c   :  { %v9149_v2 = vadd.f32 %v9148_v21, %v9065_v38  ;;  %v10047_v21 = vld [vmem:[%s20854_s13 + $0x8] sm:$0xff] }
 0x94d   :  { %v16220_v13 = vpop.f32.mrf.mxu0 }
 0x94e   :  { %v9250_v14 = vadd.f32 %v9249_v55, %v9149_v2  ;;  %v19610_v55 = vand.u32 4294901760, %v10048_v10  ;;  %v10181_v13 = vsub.f32 %v19597_v16, %v10180_v30 }
 0x950   :  { %v9412_v26 = vpop.f32.mrf.mxu1  ;;  %v19624_v11 = vsub.f32 %v10048_v10, %v19610_v55  ;;  %v10182_v46 = vand.u32 4294901760, %v10181_v13  ;;  %v10595_v10 = vld [vmem:[%s20855_s14] sm:$0x3f] }
 0x952   :  { %v16265_v58 = vpop.f32.mrf.mxu1  ;;  %v10194_v38 = vand.u32 4294901760, %v19624_v11 }
 0x953   :  { %v10187_v58 = vand.u32 4294901760, %v19614_v17 }
 0x955   :  { %v10188_v2 = vsub.f32 %v19614_v17, %v10187_v58 }
 0x959   :  { %v9333_v45 = vpop.f32.mrf.mxu0 }
 0x95a   :  { %v9334_v9 = vadd.f32 %v9333_v45, %v9250_v14  ;;  %v10189_v14 = vand.u32 4294901760, %v10188_v2 }
 0x95b   :  { %v16250_v40 = vpop.f32.mrf.mxu0 }
 0x95c   :  { %v9413_v5 = vadd.f32 %v9412_v26, %v9334_v9  ;;  %v19626_v26 = vand.u32 4294901760, %v10047_v21  ;;  %v10195_v40 = vsub.f32 %v19624_v11, %v10194_v38 }
 0x95e   :  { %v9578_v19 = vpop.f32.mrf.mxu1  ;;  %v19637_v45 = vsub.f32 %v10047_v21, %v19626_v26  ;;  %v10594_v21 = vld [vmem:[%s20856_s1] sm:$0x3] }
 0x960   :  { %v16295_v27 = vpop.f32.mrf.mxu1  ;;  %v10201_v32 = vand.u32 4294901760, %v19637_v45 }
 0x962   :  { %v10202_v27 = vsub.f32 %v19637_v45, %v10201_v32 }
 0x966   :  { %v9501_v35 = vpop.f32.mrf.mxu0 }
 0x967   :  { %v9502_v37 = vadd.f32 %v9501_v35, %v9413_v5 }
 0x968   :  { %v16280_v61 = vpop.f32.mrf.mxu0 }
 0x969   :  { %v9579_v48 = vadd.f32 %v9578_v19, %v9502_v37  ;;  %v19652_v19 = vsub.f32 %v10046_v28, %v19639_v60 }
 0x96b   :  { %v9589_v63 = vadd.f32 %v13867_v22, %v9579_v48  ;;  %v10208_v9 = vand.u32 4294901760, %v19652_v19 }
 0x96d   :  { %v9590_v39 = vmax.f32 %v9589_v63, 0.0  ;;  %v10209_v5 = vsub.f32 %v19652_v19, %v10208_v9 }
 0x96f   :  { %v9598_v42 = vsel %vm9596_vm9, %v9590_v39, 0  ;;  %v10210_v35 = vand.u32 4294901760, %v10209_v5 }
 0x970   :  { %v9631_v50 = vand.u32 4294901760, %v9598_v42 }
 0x972   :  { %16297 = vmatpush3.msra.mxu0 %v9631_v50  ;;  %v9708_v31 = vsub.f32 %v9598_v42, %v9631_v50 }
 0x973   :  { %16299 = vmatmul.mubr.f32.vlgmr.msra.gmra.mxu0 %v9670_v7  ;;  %16306 = vmatprep.subr.mxu0 %v17030_v4 }
 0x974   :  { %16307 = vmatpush3.msra.mxu0 %v9708_v31  ;;  %16308 = vmatprep.mubr.msk.f32.mxu0 %vm17031_vm2, %v17030_v4  ;;  %v9709_v3 = vand.u32 4294901760, %v9708_v31 }
 0x975   :  { %16316 = vmatprep.subr.mxu0 %v17030_v4 }
 0x976   :  { %v9710_v23 = vsub.f32 %v9708_v31, %v9709_v3 }
 0x977   :  { %16309 = vmatmul.mubr.f32.vlgmr.msra.gmra.mxu0 %v9667_v8  ;;  %v10203_v8 = vand.u32 4294901760, %v10202_v27 }
 0x978   :  { %16317 = vmatpush3.msra.mxu0 %v9709_v3  ;;  %v9711_v47 = vand.u32 4294901760, %v9710_v23  ;;  %16318 = vmatprep.mubr.msk.f32.mxu0 %vm17031_vm2, %v17030_v4 }
 0x979   :  { %16326 = vmatprep.subr.mxu0 %v17030_v4 }
 0x97a   :  { %16302 = vmatpush3.msra.mxu1 %v9711_v47 }
 0x97b   :  { %16304 = vmatmul.mubr.f32.vlgmr.msra.gmra.mxu1 %v9666_v18  ;;  %16311 = vmatprep.subr.mxu1 %v17030_v4 }
 0x97c   :  { %16312 = vmatpush3.msra.mxu1 %v9631_v50  ;;  %16313 = vmatprep.mubr.msk.f32.mxu1 %vm17031_vm2, %v17030_v4 }
 0x97d   :  { %16321 = vmatprep.subr.mxu1 %v17030_v4  ;;  %16319 = vmatmul.mubr.f32.vlgmr.msra.gmra.mxu0 %v9666_v18 }
 0x97e   :  { %16342 = vmatprep.mubr.msk.f32.mxu0 %vm17031_vm2, %v17030_v4  ;;  %16327 = vmatpush3.msra.mxu0 %v19552_v62 }
 0x97f   :  { %16314 = vmatmul.mubr.f32.vlgmr.msra.gmra.mxu1 %v9668_v53  ;;  %16328 = vmatprep.subr.mxu0 %v17030_v4 }
 0x980   :  { %16322 = vmatpush3.msra.mxu1 %v9631_v50  ;;  %16323 = vmatprep.mubr.msk.f32.mxu1 %vm17031_vm2, %v17030_v4 }
 0x981   :  { %16345 = vmatprep.subr.mxu1 %v17030_v4  ;;  %16329 = vmatpush3.msra.mxu0 %v19560_v51 }
 0x982   :  { %16330 = vmatprep.subr.mxu0 %v17030_v4 }
 0x983   :  { %16324 = vmatmul.mubr.f32.vlgmr.msra.gmra.mxu1 %v9666_v18  ;;  %16331 = vmatpush3.msra.mxu0 %v19571_v12  ;;  %v10196_v18 = vand.u32 4294901760, %v10195_v40 }
 0x984   :  { %16361 = vmatprep.mubr.msk.f32.mxu1 %vm17031_vm2, %v17030_v4  ;;  %16332 = vmatprep.subr.mxu0 %v17030_v4 }
 0x985   :  { %16333 = vmatpush3.msra.mxu0 %v19585_v49  ;;  %16346 = vmatpush3.msra.mxu1 %v10161_v36 }
 0x986   :  { %16334 = vmatprep.subr.mxu0 %v17030_v4  ;;  %16347 = vmatprep.subr.mxu1 %v17030_v4 }
 0x987   :  { %16335 = vmatpush3.msra.mxu0 %v19600_v54  ;;  %16348 = vmatpush3.msra.mxu1 %v10168_v6  ;;  %v10607_v6 = vsel %vm4629_vm4, %v10595_v10, 0 }
 0x988   :  { %16336 = vmatprep.subr.mxu0 %v17030_v4  ;;  %16349 = vmatprep.subr.mxu1 %v17030_v4  ;;  %v19705_v44 = vand.u32 4294901760, %v10607_v6 }
 0x989   :  { %16337 = vmatpush3.msra.mxu0 %v19610_v55  ;;  %16350 = vmatpush3.msra.mxu1 %v10175_v15 }
 0x98a   :  { %16338 = vmatprep.subr.mxu0 %v17030_v4  ;;  %16351 = vmatprep.subr.mxu1 %v17030_v4 }
 0x98b   :  { %16339 = vmatpush3.msra.mxu0 %v19626_v26  ;;  %16352 = vmatpush3.msra.mxu1 %v10182_v46 }
 0x98c   :  { %16340 = vmatprep.subr.mxu0 %v17030_v4  ;;  %16353 = vmatprep.subr.mxu1 %v17030_v4 }
 0x98d   :  { %16341 = vmatpush3.msra.mxu0 %v19639_v60  ;;  %16354 = vmatpush3.msra.mxu1 %v10189_v14 }
 0x98e   :  { %16364 = vmatprep.subr.mxu0 %v17030_v4  ;;  %16355 = vmatprep.subr.mxu1 %v17030_v4 }
 0x98f   :  { %16356 = vmatpush3.msra.mxu1 %v10196_v18 }
 0x990   :  { %16357 = vmatprep.subr.mxu1 %v17030_v4 }
 0x991   :  { %16358 = vmatpush3.msra.mxu1 %v10203_v8 }
 0x992   :  { %16359 = vmatprep.subr.mxu1 %v17030_v4 }
 0x993   :  { %16360 = vmatpush3.msra.mxu1 %v10210_v35 }
 0x994   :  { %16383 = vmatprep.subr.mxu1 %v17030_v4 }
 0xa33   :  { %v9672_v37 = vpop.f32.mrf.mxu0 }
 0xa35   :  { %v16300_v53 = vpop.f32.mrf.mxu0 }
 0xa37   :  { %v9822_v22 = vpop.f32.mrf.mxu0 }
 0xa39   :  { %v16310_v61 = vpop.f32.mrf.mxu0 }
 0xa3b   :  { %v9748_v48 = vpop.f32.mrf.mxu1 }
 0xa3c   :  { %v9749_v63 = vadd.f32 %v9748_v48, %v9672_v37  ;;  %v13868_v37 = vld [vmem:[%s20858_s15] ss:$0 sm:$0xff] }
 0xa3d   :  { %v16305_v59 = vpop.f32.mrf.mxu1  ;;  %v9970_v39 = vpop.f32.mrf.mxu0 }
 0xa3e   :  { %v9823_v42 = vadd.f32 %v9822_v22, %v9749_v63 }
 0xa3f   :  { %v9896_v7 = vpop.f32.mrf.mxu1  ;;  %v16320_v50 = vpop.f32.mrf.mxu0 }
 0xa40   :  { %v9897_v31 = vadd.f32 %v9896_v7, %v9823_v42 }
 0xa41   :  { %v16315_v3 = vpop.f32.mrf.mxu1 }
 0xa42   :  { %v9971_v23 = vadd.f32 %v9970_v39, %v9897_v31  ;;  %v11059_v31 = vld [vmem:[%s20859_s16 + $0x18] sm:$0xff] }
 0xa43   :  { %v10042_v47 = vpop.f32.mrf.mxu1 }
 0xa44   :  { %v10043_v57 = vadd.f32 %v10042_v47, %v9971_v23  ;;  %v11058_v47 = vld [vmem:[%s20859_s16 + $0x10] sm:$0xff] }
 0xa45   :  { %v16325_v24 = vpop.f32.mrf.mxu1 }
 0xa46   :  { %v10055_v29 = vsel %vm1172_vm1, %v10043_v57, 0  ;;  %v19836_v24 = vand.u32 4294901760, %v11059_v31 }
 0xa47   :  { %v19670_v52 = vand.u32 4294901760, %v10055_v29 }
 0xa49   :  { %v10131_v25 = vsub.f32 %v10055_v29, %v19670_v52  ;;  %16362 = vmatmul.mubr.f32.vlgmr.msra.gmra.mxu1 %v19670_v52 }
 0xa4a   :  { %16384 = vmatpush3.msra.mxu1 %v19552_v62  ;;  %16399 = vmatprep.mubr.msk.f32.mxu1 %vm17031_vm2, %v17030_v4 }
 0xa4b   :  { %v10132_v43 = vand.u32 4294901760, %v10131_v25  ;;  %16385 = vmatprep.subr.mxu1 %v17030_v4 }
 0xa4c   :  { %16386 = vmatpush3.msra.mxu1 %v19560_v51 }
 0xa4d   :  { %v10133_v36 = vsub.f32 %v10131_v25, %v10132_v43  ;;  %16387 = vmatprep.subr.mxu1 %v17030_v4 }
 0xa4e   :  { %16388 = vmatpush3.msra.mxu1 %v19571_v12 }
 0xa4f   :  { %v10134_v20 = vand.u32 4294901760, %v10133_v36  ;;  %16389 = vmatprep.subr.mxu1 %v17030_v4  ;;  %v19841_v36 = vand.u32 4294901760, %v11058_v47 }
 0xa50   :  { %16390 = vmatpush3.msra.mxu1 %v19585_v49 }
 0xa51   :  { %16391 = vmatprep.subr.mxu1 %v17030_v4  ;;  %16343 = vmatmul.mubr.f32.vlgmr.msra.gmra.mxu0 %v10134_v20 }
 0xa52   :  { %16365 = vmatpush3.msra.mxu0 %v19558_v33  ;;  %16392 = vmatpush3.msra.mxu1 %v19600_v54 }
 0xa53   :  { %16366 = vmatprep.subr.mxu0 %v17030_v4  ;;  %16393 = vmatprep.subr.mxu1 %v17030_v4 }
 0xa54   :  { %16367 = vmatpush3.msra.mxu0 %v19569_v1  ;;  %16394 = vmatpush3.msra.mxu1 %v19610_v55 }
 0xa55   :  { %16368 = vmatprep.subr.mxu0 %v17030_v4  ;;  %16395 = vmatprep.subr.mxu1 %v17030_v4 }
 0xa56   :  { %16369 = vmatpush3.msra.mxu0 %v19583_v0  ;;  %16396 = vmatpush3.msra.mxu1 %v19626_v26 }
 0xa57   :  { %16370 = vmatprep.subr.mxu0 %v17030_v4  ;;  %16397 = vmatprep.subr.mxu1 %v17030_v4 }
 0xa58   :  { %16371 = vmatpush3.msra.mxu0 %v19597_v16  ;;  %16398 = vmatpush3.msra.mxu1 %v19639_v60 }
 0xa59   :  { %16372 = vmatprep.subr.mxu0 %v17030_v4  ;;  %16400 = vmatmul.mubr.f32.vlgmr.msra.gmra.mxu1 %v10132_v43 }
 0xa5a   :  { %16421 = vmatprep.subr.mxu1 %v17030_v4  ;;  %16373 = vmatpush3.msra.mxu0 %v19614_v17 }
 0xa5b   :  { %16422 = vmatpush3.msra.mxu1 %v19552_v62  ;;  %16374 = vmatprep.subr.mxu0 %v17030_v4  ;;  %v19719_v62 = vsub.f32 %v10607_v6, %v19705_v44  ;;  %v11056_v6 = vld [vmem:[%s20859_s16] sm:$0xff] }
 0xa5c   :  { %16423 = vmatprep.subr.mxu1 %v17030_v4  ;;  %16375 = vmatpush3.msra.mxu0 %v19624_v11 }
 0xa5d   :  { %16424 = vmatpush3.msra.mxu1 %v19560_v51  ;;  %16376 = vmatprep.subr.mxu0 %v17030_v4  ;;  %v10604_v51 = vsel %vm7636_vm6, %v10594_v21, 0  ;;  %v10718_v15 = vand.u32 4294901760, %v19719_v62 }
 0xa5e   :  { %16425 = vmatprep.subr.mxu1 %v17030_v4  ;;  %16377 = vmatpush3.msra.mxu0 %v19637_v45 }
 0xa5f   :  { %16426 = vmatpush3.msra.mxu1 %v19571_v12  ;;  %16378 = vmatprep.subr.mxu0 %v17030_v4  ;;  %v10675_v12 = vand.u32 4294901760, %v10604_v51 }
 0xa60   :  { %16427 = vmatprep.subr.mxu1 %v17030_v4  ;;  %16379 = vmatpush3.msra.mxu0 %v19652_v19 }
 0xa61   :  { %16380 = vmatprep.mubr.msk.f32.mxu0 %vm17031_vm2, %v17030_v4  ;;  %16428 = vmatpush3.msra.mxu1 %v19585_v49  ;;  %v10719_v49 = vsub.f32 %v19719_v62, %v10718_v15  ;;  %v10676_v33 = vsub.f32 %v10604_v51, %v10675_v12  ;;  %v19852_v51 = vsub.f32 %v11058_v47, %v19841_v36 }
 0xa62   :  { %16381 = vmatmul.mubr.f32.vlgmr.msra.gmra.mxu0 %v10131_v25  ;;  %16402 = vmatprep.subr.mxu0 %v17030_v4  ;;  %v11057_v25 = vld [vmem:[%s20859_s16 + $0x8] sm:$0xff] }
 0xa63   :  { %16429 = vmatprep.subr.mxu1 %v17030_v4  ;;  %16403 = vmatpush3.msra.mxu0 %v10159_v41  ;;  %v10720_v41 = vand.u32 4294901760, %v10719_v49  ;;  %v10677_v1 = vand.u32 4294901760, %v10676_v33  ;;  %v19849_v21 = vand.u32 4294901760, %v11057_v25 }
 0xa64   :  { %16430 = vmatpush3.msra.mxu1 %v19600_v54  ;;  %16404 = vmatprep.subr.mxu0 %v17030_v4  ;;  %v11060_v54 = vld [vmem:[%s20857_s17] sm:$0xff] }
 0xa65   :  { %16431 = vmatprep.subr.mxu1 %v17030_v4  ;;  %16405 = vmatpush3.msra.mxu0 %v10166_v34  ;;  %v10678_v34 = vsub.f32 %v10676_v33, %v10677_v1 }
 0xa66   :  { %16432 = vmatpush3.msra.mxu1 %v19610_v55  ;;  %16406 = vmatprep.subr.mxu0 %v17030_v4  ;;  %v19808_v55 = vand.u32 4294901760, %v11060_v54 }
 0xa67   :  { %16433 = vmatprep.subr.mxu1 %v17030_v4  ;;  %16407 = vmatpush3.msra.mxu0 %v10173_v56  ;;  %v10679_v0 = vand.u32 4294901760, %v10678_v34  ;;  %v11061_v56 = vld [vmem:[%s20857_s17 + $0x8] sm:$0xff] }
 0xa68   :  { %16434 = vmatpush3.msra.mxu1 %v19626_v26  ;;  %16408 = vmatprep.subr.mxu0 %v17030_v4  ;;  %v19800_v16 = vand.u32 4294901760, %v11061_v56  ;;  %v19814_v13 = vsub.f32 %v11060_v54, %v19808_v55 }
 0xa69   :  { %16435 = vmatprep.subr.mxu1 %v17030_v4  ;;  %16409 = vmatpush3.msra.mxu0 %v10180_v30 }
 0xa6a   :  { %16436 = vmatpush3.msra.mxu1 %v19639_v60  ;;  %16437 = vmatprep.mubr.msk.f32.mxu1 %vm17031_vm2, %v17030_v4  ;;  %v19806_v30 = vsub.f32 %v11061_v56, %v19800_v16  ;;  %v11181_v26 = vand.u32 4294901760, %v19814_v13  ;;  %v11641_v56 = vand.u32 4294901760, %v19852_v51 }
 0xa6b   :  { %16410 = vmatprep.subr.mxu0 %v17030_v4  ;;  %16438 = vmatmul.mubr.f32.vlgmr.msra.gmra.mxu1 %v19670_v52 }
 0xa6c   :  { %16411 = vmatpush3.msra.mxu0 %v10187_v58  ;;  %16418 = vmatprep.mubr.msk.f32.mxu0 %vm17031_vm2, %v17030_v4  ;;  %v11174_v17 = vand.u32 4294901760, %v19806_v30  ;;  %v11182_v28 = vsub.f32 %v19814_v13, %v11181_v26 }
 0xa6d   :  { %16412 = vmatprep.subr.mxu0 %v17030_v4  ;;  %16445 = vmatprep.subr.mxu1 %v17030_v4 }
 0xa6e   :  { %16413 = vmatpush3.msra.mxu0 %v10194_v38  ;;  %16446 = vmatpush3.msra.mxu1 %v10720_v41  ;;  %v11175_v11 = vsub.f32 %v19806_v30, %v11174_v17  ;;  %v11183_v46 = vand.u32 4294901760, %v11182_v28 }
 0xa6f   :  { %16414 = vmatprep.subr.mxu0 %v17030_v4  ;;  %16447 = vmatprep.mubr.msk.f32.mxu1 %vm17031_vm2, %v17030_v4 }
 0xa70   :  { %16415 = vmatpush3.msra.mxu0 %v10201_v32  ;;  %16448 = vmatmul.mubr.f32.vlgmr.msra.gmra.mxu1 %v10675_v12  ;;  %v11176_v58 = vand.u32 4294901760, %v11175_v11 }
 0xa71   :  { %16416 = vmatprep.subr.mxu0 %v17030_v4  ;;  %16455 = vmatprep.subr.mxu1 %v17030_v4 }
 0xa72   :  { %16417 = vmatpush3.msra.mxu0 %v10208_v9  ;;  %16456 = vmatpush3.msra.mxu1 %v19705_v44 }
 0xa73   :  { %16419 = vmatmul.mubr.f32.vlgmr.msra.gmra.mxu0 %v19670_v52  ;;  %16440 = vmatprep.subr.mxu0 %v17030_v4 }
 0xa74   :  { %16441 = vmatpush3.msra.mxu0 %v19705_v44  ;;  %16442 = vmatprep.mubr.msk.f32.mxu0 %vm17031_vm2, %v17030_v4 }
 0xa75   :  { %16450 = vmatprep.subr.mxu0 %v17030_v4  ;;  %16457 = vmatprep.mubr.msk.f32.mxu1 %vm17031_vm2, %v17030_v4 }
 0xa76   :  { %16458 = vmatmul.mubr.f32.vlgmr.msra.gmra.mxu1 %v10677_v1  ;;  %16465 = vmatprep.subr.mxu1 %v17030_v4  ;;  %v19860_v1 = vsub.f32 %v11057_v25, %v19849_v21  ;;  %v12489_v25 = vld [vmem:[%s20862_s20 + $0x60] sm:$0xff] }
 0xa77   :  { %16443 = vmatmul.mubr.f32.vlgmr.msra.gmra.mxu0 %v10679_v0  ;;  %16466 = vmatpush3.msra.mxu1 %v19705_v44  ;;  %v19847_v44 = vsub.f32 %v11059_v31, %v19836_v24 }
 0xa78   :  { %16451 = vmatpush3.msra.mxu0 %v19719_v62  ;;  %16452 = vmatprep.mubr.msk.f32.mxu0 %vm17031_vm2, %v17030_v4  ;;  %v11648_v28 = vand.u32 4294901760, %v19860_v1 }
 0xa79   :  { %16460 = vmatprep.subr.mxu0 %v17030_v4  ;;  %16467 = vmatprep.mubr.msk.f32.mxu1 %vm17031_vm2, %v17030_v4  ;;  %v11634_v41 = vand.u32 4294901760, %v19847_v44 }
 0xa7a   :  { %16468 = vmatmul.mubr.f32.vlgmr.msra.gmra.mxu1 %v10675_v12  ;;  %16477 = vmatprep.subr.mxu1 %v17030_v4 }
 0xa7b   :  { %16453 = vmatmul.mubr.f32.vlgmr.msra.gmra.mxu0 %v10676_v33  ;;  %16481 = vmatprep.mubr.msk.f32.mxu1 %vm17031_vm2, %v17030_v4 }
 0xa7c   :  { %16461 = vmatpush3.msra.mxu0 %v10718_v15  ;;  %16462 = vmatprep.mubr.msk.f32.mxu0 %vm17031_vm2, %v17030_v4  ;;  %v19854_v15 = vand.u32 4294901760, %v11056_v6 }
 0xa7d   :  { %16470 = vmatprep.subr.mxu0 %v17030_v4  ;;  %16478 = vmatpush3.msra.mxu1 %v11176_v58  ;;  %v11635_v58 = vsub.f32 %v19847_v44, %v11634_v41 }
 0xa7e   :  { %16479 = vmatprep.subr.mxu1 %v17030_v4  ;;  %v19866_v54 = vsub.f32 %v11056_v6, %v19854_v15  ;;  %v12488_v6 = vld [vmem:[%s20862_s20 + $0x58] sm:$0xff] }
 0xa7f   :  { %16463 = vmatmul.mubr.f32.vlgmr.msra.gmra.mxu0 %v10675_v12  ;;  %16480 = vmatpush3.msra.mxu1 %v11183_v46 }
 0xa80   :  { %16474 = vmatprep.mubr.msk.f32.mxu0 %vm17031_vm2, %v17030_v4  ;;  %16471 = vmatpush3.msra.mxu0 %v19800_v16 }
 0xa81   :  { %16472 = vmatprep.subr.mxu0 %v17030_v4  ;;  %16491 = vmatprep.subr.mxu1 %v17030_v4 }
 0xa82   :  { %16473 = vmatpush3.msra.mxu0 %v19808_v55 }
 0xa83   :  { %16484 = vmatprep.subr.mxu0 %v17030_v4 }
 0xb09   :  { %v10247_v38 = vpop.f32.mrf.mxu1 }
 0xb0b   :  { %v16363_v45 = vpop.f32.mrf.mxu1 }
 0xb0c   :  { %v11642_v45 = vsub.f32 %v19852_v51, %v11641_v56 }
 0xb11   :  { %v10136_v60 = vpop.f32.mrf.mxu0 }
 0xb12   :  { %v10248_v29 = vadd.f32 %v10247_v38, %v10136_v60  ;;  %v11655_v60 = vand.u32 4294901760, %v19866_v54 }
 0xb13   :  { %v16344_v2 = vpop.f32.mrf.mxu0 }
 0xb19   :  { %v10416_v40 = vpop.f32.mrf.mxu1 }
 0xb1b   :  { %v16401_v32 = vpop.f32.mrf.mxu1 }
 0xb1c   :  { %v11649_v32 = vsub.f32 %v19860_v1, %v11648_v28 }
 0xb22   :  { %v10335_v19 = vpop.f32.mrf.mxu0 }
 0xb23   :  { %v10336_v20 = vadd.f32 %v10335_v19, %v10248_v29 }
 0xb24   :  { %v16382_v14 = vpop.f32.mrf.mxu0 }
 0xb25   :  { %v10417_v12 = vadd.f32 %v10416_v40, %v10336_v20  ;;  %v11636_v40 = vand.u32 4294901760, %v11635_v58  ;;  %v11643_v14 = vand.u32 4294901760, %v11642_v45 }
 0xb2b   :  { %v10590_v18 = vpop.f32.mrf.mxu1 }
 0xb2d   :  { %v16439_v27 = vpop.f32.mrf.mxu1 }
 0xb2e   :  { %v11650_v27 = vand.u32 4294901760, %v11649_v32  ;;  %v12484_v32 = vld [vmem:[%s20862_s20 + $0x38] sm:$0xff] }
 0xb30   :  { %v10757_v9 = vpop.f32.mrf.mxu1 }
 0xb32   :  { %v16449_v8 = vpop.f32.mrf.mxu1 }
 0xb33   :  { %v10511_v5 = vpop.f32.mrf.mxu0  ;;  %v12014_v8 = vld [vmem:[%s20860_s18] sm:$0xf] }
 0xb34   :  { %v10512_v34 = vadd.f32 %v10511_v5, %v10417_v12  ;;  %v12487_v12 = vld [vmem:[%s20862_s20 + $0x50] sm:$0xff] }
 0xb35   :  { %v16420_v35 = vpop.f32.mrf.mxu0 }
 0xb36   :  { %v10905_v53 = vpop.f32.mrf.mxu1  ;;  %v10591_v46 = vadd.f32 %v10590_v18, %v10512_v34 }
 0xb37   :  { %v10681_v22 = vpop.f32.mrf.mxu0 }
 0xb38   :  { %v10682_v61 = vadd.f32 %v13868_v37, %v10681_v22  ;;  %v16459_v48 = vpop.f32.mrf.mxu1  ;;  %v11526_v19 = vsel %vm83_vm0, %v10591_v46, 0  ;;  %v12485_v46 = vld [vmem:[%s20862_s20 + $0x40] sm:$0xff] }
 0xb39   :  { %v16444_v63 = vpop.f32.mrf.mxu0  ;;  %v19897_v18 = vand.u32 4294901760, %v11526_v19 }
 0xb3a   :  { %v10758_v59 = vadd.f32 %v10757_v9, %v10682_v61  ;;  %v11051_v39 = vpop.f32.mrf.mxu1 }
 0xb3b   :  { %v10831_v42 = vpop.f32.mrf.mxu0  ;;  %v19907_v9 = vsub.f32 %v11526_v19, %v19897_v18 }
 0xb3c   :  { %v10832_v7 = vadd.f32 %v10831_v42, %v10758_v59  ;;  %v16469_v50 = vpop.f32.mrf.mxu1 }
 0xb3d   :  { %v16454_v3 = vpop.f32.mrf.mxu0  ;;  %v11599_v5 = vand.u32 4294901760, %v19907_v9  ;;  %v12492_v50 = vld [vmem:[%s20862_s20 + $0x78] sm:$0xff] }
 0xb3e   :  { %v10906_v23 = vadd.f32 %v10905_v53, %v10832_v7  ;;  %v20026_v31 = vand.u32 4294901760, %v12492_v50  ;;  %v12491_v3 = vld [vmem:[%s20862_s20 + $0x70] sm:$0xff] }
 0xb3f   :  { %v10979_v57 = vpop.f32.mrf.mxu0  ;;  %v20034_v47 = vand.u32 4294901760, %v12491_v3 }
 0xb40   :  { %v10980_v52 = vadd.f32 %v10979_v57, %v10906_v23  ;;  %v20032_v23 = vsub.f32 %v12492_v50, %v20026_v31  ;;  %v12490_v57 = vld [vmem:[%s20862_s20 + $0x68] sm:$0xff] }
 0xb41   :  { %v16464_v43 = vpop.f32.mrf.mxu0  ;;  %v20043_v29 = vsub.f32 %v12491_v3, %v20034_v47 }
 0xb42   :  { %v11052_v10 = vadd.f32 %v11051_v39, %v10980_v52  ;;  %v20045_v52 = vand.u32 4294901760, %v12490_v57 }
 0xb44   :  { %v11055_v62 = vmax.f32 %v11052_v10, 0.0  ;;  %v20057_v20 = vsub.f32 %v12490_v57, %v20045_v52  ;;  %v20059_v10 = vand.u32 4294901760, %v12489_v25 }
 0xb46   :  { %v11064_v49 = vsel %vm11062_vm10, %v11055_v62, 0  ;;  %v20900_v62 = vand.u32 4294901760, %v20057_v20 }
 0xb47   :  { %v19856_v33 = vand.u32 4294901760, %v11064_v49 }
 0xb49   :  { %v11134_v0 = vsub.f32 %v11064_v49, %v19856_v33  ;;  %16482 = vmatmul.mubr.f32.vlgmr.msra.gmra.mxu1 %v19856_v33 }
 0xb4a   :  { %16492 = vmatpush3.msra.mxu1 %v19800_v16  ;;  %16495 = vmatprep.mubr.msk.f32.mxu1 %vm17031_vm2, %v17030_v4 }
 0xb4b   :  { %v11135_v11 = vand.u32 4294901760, %v11134_v0  ;;  %16493 = vmatprep.subr.mxu1 %v17030_v4 }
 0xb4c   :  { %16494 = vmatpush3.msra.mxu1 %v19808_v55 }
 0xb4d   :  { %v11136_v38 = vsub.f32 %v11134_v0, %v11135_v11  ;;  %16505 = vmatprep.subr.mxu1 %v17030_v4  ;;  %16496 = vmatmul.mubr.f32.vlgmr.msra.gmra.mxu1 %v11135_v11 }
 0xb4e   :  { %16506 = vmatpush3.msra.mxu1 %v19800_v16  ;;  %16509 = vmatprep.mubr.msk.f32.mxu1 %vm17031_vm2, %v17030_v4  ;;  %v11656_v16 = vsub.f32 %v19866_v54, %v11655_v60 }
 0xb4f   :  { %v11137_v2 = vand.u32 4294901760, %v11136_v38  ;;  %16507 = vmatprep.subr.mxu1 %v17030_v4 }
 0xb50   :  { %16508 = vmatpush3.msra.mxu1 %v19808_v55  ;;  %v11657_v55 = vand.u32 4294901760, %v11656_v16 }
 0xb51   :  { %16523 = vmatprep.subr.mxu1 %v17030_v4  ;;  %16475 = vmatmul.mubr.f32.vlgmr.msra.gmra.mxu0 %v11137_v2  ;;  %v20113_v2 = vand.u32 4294901760, %v12485_v46 }
 0xb52   :  { %16485 = vmatpush3.msra.mxu0 %v19806_v30  ;;  %16510 = vmatmul.mubr.f32.vlgmr.msra.gmra.mxu1 %v19856_v33  ;;  %v12019_v30 = vsel %vm9596_vm9, %v12014_v8, 0 }
 0xb53   :  { %16524 = vmatpush3.msra.mxu1 %v11636_v40  ;;  %16486 = vmatprep.subr.mxu0 %v17030_v4  ;;  %v20129_v16 = vsub.f32 %v12485_v46, %v20113_v2 }
 0xb54   :  { %16525 = vmatprep.subr.mxu1 %v17030_v4  ;;  %16487 = vmatpush3.msra.mxu0 %v19814_v13  ;;  %v19934_v13 = vand.u32 4294901760, %v12019_v30 }
 0xb55   :  { %16526 = vmatpush3.msra.mxu1 %v11643_v14  ;;  %16488 = vmatprep.mubr.msk.f32.mxu0 %vm17031_vm2, %v17030_v4 }
 0xb56   :  { %16498 = vmatprep.subr.mxu0 %v17030_v4  ;;  %16527 = vmatprep.subr.mxu1 %v17030_v4  ;;  %v19949_v37 = vsub.f32 %v12019_v30, %v19934_v13 }
 0xb57   :  { %16489 = vmatmul.mubr.f32.vlgmr.msra.gmra.mxu0 %v11134_v0  ;;  %16528 = vmatpush3.msra.mxu1 %v11650_v27  ;;  %v12486_v0 = vld [vmem:[%s20862_s20 + $0x48] sm:$0xff] }
 0xb58   :  { %16499 = vmatpush3.msra.mxu0 %v11174_v17  ;;  %16529 = vmatprep.subr.mxu1 %v17030_v4  ;;  %v11600_v17 = vsub.f32 %v19907_v9, %v11599_v5  ;;  %v12130_v22 = vand.u32 4294901760, %v19949_v37  ;;  %v20100_v58 = vand.u32 4294901760, %v12486_v0 }
 0xb59   :  { %16500 = vmatprep.subr.mxu0 %v17030_v4  ;;  %16530 = vmatpush3.msra.mxu1 %v11657_v55  ;;  %v12483_v55 = vld [vmem:[%s20862_s20 + $0x30] sm:$0xff] }
 0xb5a   :  { %16501 = vmatpush3.msra.mxu0 %v11181_v26  ;;  %16531 = vmatprep.mubr.msk.f32.mxu1 %vm17031_vm2, %v17030_v4  ;;  %v12013_v26 = vld [vmem:[%s20861_s2] sm:$0x3]  ;;  %v11601_v35 = vand.u32 4294901760, %v11600_v17  ;;  %v12131_v48 = vsub.f32 %v19949_v37, %v12130_v22  ;;  %v20147_v17 = vand.u32 4294901760, %v12483_v55 }
 0xb5b   :  { %16502 = vmatprep.mubr.msk.f32.mxu0 %vm17031_vm2, %v17030_v4  ;;  %16512 = vmatprep.subr.mxu0 %v17030_v4  ;;  %v12016_v53 = vsel %vm9592_vm8, %v12013_v26, 0 }
 0xb5c   :  { %16532 = vmatmul.mubr.f32.vlgmr.msra.gmra.mxu1 %v19897_v18  ;;  %16545 = vmatprep.subr.mxu1 %v17030_v4  ;;  %v12087_v61 = vand.u32 4294901760, %v12016_v53  ;;  %v12132_v59 = vand.u32 4294901760, %v12131_v48 }
 0xb5d   :  { %16503 = vmatmul.mubr.f32.vlgmr.msra.gmra.mxu0 %v19856_v33  ;;  %16546 = vmatpush3.msra.mxu1 %v19836_v24  ;;  %v12609_v33 = vsub.f32 %v20057_v20, %v20900_v62 }
 0xb5e   :  { %16513 = vmatpush3.msra.mxu0 %v19836_v24  ;;  %16547 = vmatprep.subr.mxu1 %v17030_v4  ;;  %v12088_v63 = vsub.f32 %v12016_v53, %v12087_v61 }
 0xb5f   :  { %16514 = vmatprep.subr.mxu0 %v17030_v4  ;;  %16548 = vmatpush3.msra.mxu1 %v19841_v36 }
 0xb60   :  { %16515 = vmatpush3.msra.mxu0 %v19841_v36  ;;  %16549 = vmatprep.subr.mxu1 %v17030_v4  ;;  %v12089_v39 = vand.u32 4294901760, %v12088_v63 }
 0xb61   :  { %16516 = vmatprep.subr.mxu0 %v17030_v4  ;;  %16550 = vmatpush3.msra.mxu1 %v19849_v21 }
 0xb62   :  { %16517 = vmatpush3.msra.mxu0 %v19849_v21  ;;  %16551 = vmatprep.subr.mxu1 %v17030_v4  ;;  %v12090_v42 = vsub.f32 %v12088_v63, %v12089_v39 }
 0xb63   :  { %16518 = vmatprep.subr.mxu0 %v17030_v4  ;;  %16520 = vmatprep.mubr.msk.f32.mxu0 %vm17031_vm2, %v17030_v4 }
 0xb64   :  { %16519 = vmatpush3.msra.mxu0 %v19854_v15  ;;  %16552 = vmatpush3.msra.mxu1 %v19854_v15  ;;  %v12091_v7 = vand.u32 4294901760, %v12090_v42 }
 0xb65   :  { %16553 = vmatprep.mubr.msk.f32.mxu1 %vm17031_vm2, %v17030_v4  ;;  %16521 = vmatmul.mubr.f32.vlgmr.msra.gmra.mxu0 %v11601_v35 }
 0xb66   :  { %16534 = vmatprep.subr.mxu0 %v17030_v4  ;;  %16554 = vmatmul.mubr.f32.vlgmr.msra.gmra.mxu1 %v11599_v5  ;;  %v20895_v5 = vand.u32 4294901760, %v20129_v16 }
 0xb67   :  { %16567 = vmatprep.subr.mxu1 %v17030_v4  ;;  %16535 = vmatpush3.msra.mxu0 %v19847_v44 }
 0xb68   :  { %16568 = vmatpush3.msra.mxu1 %v19836_v24  ;;  %16536 = vmatprep.subr.mxu0 %v17030_v4  ;;  %v12594_v24 = vand.u32 4294901760, %v20032_v23  ;;  %v12644_v35 = vsub.f32 %v20129_v16, %v20895_v5 }
 0xb69   :  { %16569 = vmatprep.subr.mxu1 %v17030_v4  ;;  %16537 = vmatpush3.msra.mxu0 %v19852_v51  ;;  %v20071_v51 = vsub.f32 %v12489_v25, %v20059_v10 }
 0xb6a   :  { %16570 = vmatpush3.msra.mxu1 %v19841_v36  ;;  %16538 = vmatprep.subr.mxu0 %v17030_v4  ;;  %v12595_v43 = vsub.f32 %v20032_v23, %v12594_v24  ;;  %v12601_v36 = vand.u32 4294901760, %v20043_v29  ;;  %v12645_v48 = vand.u32 4294901760, %v12644_v35 }
 0xb6b   :  { %16571 = vmatprep.subr.mxu1 %v17030_v4  ;;  %16539 = vmatpush3.msra.mxu0 %v19860_v1  ;;  %v20084_v1 = vand.u32 4294901760, %v12487_v12 }
 0xb6c   :  { %16572 = vmatpush3.msra.mxu1 %v19849_v21  ;;  %16540 = vmatprep.subr.mxu0 %v17030_v4  ;;  %v12596_v44 = vand.u32 4294901760, %v12595_v43  ;;  %v12602_v21 = vsub.f32 %v20043_v29, %v12601_v36 }
 0xb6d   :  { %16573 = vmatprep.subr.mxu1 %v17030_v4  ;;  %16541 = vmatpush3.msra.mxu0 %v19866_v54  ;;  %v20098_v11 = vsub.f32 %v12487_v12, %v20084_v1 }
 0xb6e   :  { %16542 = vmatprep.mubr.msk.f32.mxu0 %vm17031_vm2, %v17030_v4  ;;  %16574 = vmatpush3.msra.mxu1 %v19854_v15  ;;  %v20074_v15 = vand.u32 4294901760, %v12488_v6  ;;  %v12603_v49 = vand.u32 4294901760, %v12602_v21 }
 0xb6f   :  { %16575 = vmatprep.mubr.msk.f32.mxu1 %vm17031_vm2, %v17030_v4  ;;  %16543 = vmatmul.mubr.f32.vlgmr.msra.gmra.mxu0 %v19907_v9  ;;  %v20897_v45 = vand.u32 4294901760, %v20098_v11 }
 0xb70   :  { %16556 = vmatprep.subr.mxu0 %v17030_v4  ;;  %16576 = vmatmul.mubr.f32.vlgmr.msra.gmra.mxu1 %v19897_v18  ;;  %v20088_v34 = vsub.f32 %v12488_v6, %v20074_v15  ;;  %v12479_v6 = vld [vmem:[%s20862_s20 + $0x10] sm:$0xff] }
 0xb71   :  { %16557 = vmatpush3.msra.mxu0 %v11634_v41  ;;  %16564 = vmatprep.mubr.msk.f32.mxu0 %vm17031_vm2, %v17030_v4  ;;  %v20899_v41 = vand.u32 4294901760, %v20071_v51  ;;  %v12630_v19 = vsub.f32 %v20098_v11, %v20897_v45 }
 0xb72   :  { %16558 = vmatprep.subr.mxu0 %v17030_v4  ;;  %16583 = vmatprep.subr.mxu1 %v17030_v4 }
 0xb73   :  { %16559 = vmatpush3.msra.mxu0 %v11641_v56  ;;  %16584 = vmatpush3.msra.mxu1 %v12132_v59  ;;  %v12610_v56 = vand.u32 4294901760, %v12609_v33  ;;  %v12616_v54 = vsub.f32 %v20071_v51, %v20899_v41  ;;  %v12631_v9 = vand.u32 4294901760, %v12630_v19 }
 0xb74   :  { %16560 = vmatprep.subr.mxu0 %v17030_v4  ;;  %16585 = vmatprep.mubr.msk.f32.mxu1 %vm17031_vm2, %v17030_v4 }
 0xb75   :  { %16561 = vmatpush3.msra.mxu0 %v11648_v28  ;;  %16586 = vmatmul.mubr.f32.vlgmr.msra.gmra.mxu1 %v12087_v61  ;;  %v20898_v28 = vand.u32 4294901760, %v20088_v34  ;;  %v12617_v38 = vand.u32 4294901760, %v12616_v54 }
 0xb76   :  { %16562 = vmatprep.subr.mxu0 %v17030_v4  ;;  %16593 = vmatprep.subr.mxu1 %v17030_v4 }
 0xb77   :  { %16563 = vmatpush3.msra.mxu0 %v11655_v60  ;;  %16594 = vmatpush3.msra.mxu1 %v19934_v13  ;;  %v20111_v60 = vsub.f32 %v12486_v0, %v20100_v58  ;;  %v12623_v40 = vsub.f32 %v20088_v34, %v20898_v28  ;;  %v12478_v0 = vld [vmem:[%s20862_s20 + $0x8] sm:$0xff] }
 0xb78   :  { %16565 = vmatmul.mubr.f32.vlgmr.msra.gmra.mxu0 %v19897_v18  ;;  %16578 = vmatprep.subr.mxu0 %v17030_v4  ;;  %v20131_v18 = vand.u32 4294901760, %v12484_v32 }
 0xb79   :  { %16579 = vmatpush3.msra.mxu0 %v19934_v13  ;;  %16580 = vmatprep.mubr.msk.f32.mxu0 %vm17031_vm2, %v17030_v4  ;;  %v20896_v14 = vand.u32 4294901760, %v20111_v60  ;;  %v12624_v27 = vand.u32 4294901760, %v12623_v40  ;;  %v20222_v40 = vand.u32 4294901760, %v12478_v0 }
 0xb7a   :  { %16588 = vmatprep.subr.mxu0 %v17030_v4  ;;  %16595 = vmatprep.mubr.msk.f32.mxu1 %vm17031_vm2, %v17030_v4  ;;  %v20144_v30 = vsub.f32 %v12484_v32, %v20131_v18  ;;  %v12477_v32 = vld [vmem:[%s20862_s20] sm:$0xff] }
 0xb7b   :  { %16596 = vmatmul.mubr.f32.vlgmr.msra.gmra.mxu1 %v12089_v39  ;;  %16603 = vmatprep.subr.mxu1 %v17030_v4  ;;  %v12637_v8 = vsub.f32 %v20111_v60, %v20896_v14 }
 0xb7c   :  { %16581 = vmatmul.mubr.f32.vlgmr.msra.gmra.mxu0 %v12091_v7  ;;  %16604 = vmatpush3.msra.mxu1 %v19934_v13  ;;  %v12482_v13 = vld [vmem:[%s20862_s20 + $0x28] sm:$0xff]  ;;  %v12480_v7 = vld [vmem:[%s20862_s20 + $0x18] sm:$0xff] }
 0xb7d   :  { %16589 = vmatpush3.msra.mxu0 %v19949_v37  ;;  %16590 = vmatprep.mubr.msk.f32.mxu0 %vm17031_vm2, %v17030_v4  ;;  %v12638_v26 = vand.u32 4294901760, %v12637_v8  ;;  %v20894_v37 = vand.u32 4294901760, %v20144_v30  ;;  %v20158_v53 = vand.u32 4294901760, %v12482_v13  ;;  %v20188_v25 = vand.u32 4294901760, %v12480_v7 }
 0xb7e   :  { %16598 = vmatprep.subr.mxu0 %v17030_v4  ;;  %16605 = vmatprep.mubr.msk.f32.mxu1 %vm17031_vm2, %v17030_v4  ;;  %v20237_v8 = vsub.f32 %v12478_v0, %v20222_v40 }
 0xb7f   :  { %16606 = vmatmul.mubr.f32.vlgmr.msra.gmra.mxu1 %v12087_v61  ;;  %16643 = vmatprep.subr.mxu1 %v17030_v4  ;;  %v20173_v59 = vsub.f32 %v12482_v13, %v20158_v53  ;;  %v20204_v12 = vsub.f32 %v12480_v7, %v20188_v25 }
 0xb80   :  { %16591 = vmatmul.mubr.f32.vlgmr.msra.gmra.mxu0 %v12088_v63  ;;  %16675 = vmatprep.mubr.msk.f32.mxu1 %vm17031_vm2, %v17030_v4  ;;  %v12651_v63 = vsub.f32 %v20144_v30, %v20894_v37 }
 0xb81   :  { %16599 = vmatpush3.msra.mxu0 %v12130_v22  ;;  %16600 = vmatprep.mubr.msk.f32.mxu0 %vm17031_vm2, %v17030_v4  ;;  %v20162_v22 = vsub.f32 %v12483_v55, %v20147_v17  ;;  %v20892_v3 = vand.u32 4294901760, %v20173_v59  ;;  %v20890_v46 = vand.u32 4294901760, %v20204_v12 }
 0xb82   :  { %16608 = vmatprep.subr.mxu0 %v17030_v4  ;;  %16644 = vmatpush3.msra.mxu1 %v12596_v44  ;;  %v12652_v50 = vand.u32 4294901760, %v12651_v63 }
 0xb83   :  { %16645 = vmatprep.subr.mxu1 %v17030_v4  ;;  %v20893_v42 = vand.u32 4294901760, %v20162_v22  ;;  %v12665_v44 = vsub.f32 %v20173_v59, %v20892_v3 }
 0xb84   :  { %16601 = vmatmul.mubr.f32.vlgmr.msra.gmra.mxu0 %v12087_v61  ;;  %16646 = vmatpush3.msra.mxu1 %v12603_v49  ;;  %v12481_v61 = vld [vmem:[%s20862_s20 + $0x20] sm:$0xff]  ;;  %v20206_v49 = vand.u32 4294901760, %v12479_v6 }
 0xb85   :  { %16640 = vmatprep.mubr.msk.f32.mxu0 %vm17031_vm2, %v17030_v4  ;;  %16609 = vmatpush3.msra.mxu0 %v20026_v31  ;;  %v20175_v39 = vand.u32 4294901760, %v12481_v61  ;;  %v12658_v43 = vsub.f32 %v20162_v22, %v20893_v42 }
 0xb86   :  { %16610 = vmatprep.subr.mxu0 %v17030_v4  ;;  %16647 = vmatprep.subr.mxu1 %v17030_v4 }
 0xb87   :  { %16611 = vmatpush3.msra.mxu0 %v20034_v47  ;;  %16648 = vmatpush3.msra.mxu1 %v12610_v56  ;;  %v20186_v57 = vsub.f32 %v12481_v61, %v20175_v39  ;;  %v12659_v33 = vand.u32 4294901760, %v12658_v43  ;;  %v12666_v56 = vand.u32 4294901760, %v12665_v44  ;;  %v20888_v61 = vand.u32 4294901760, %v20237_v8 }
 0xb88   :  { %16612 = vmatprep.subr.mxu0 %v17030_v4  ;;  %16649 = vmatprep.subr.mxu1 %v17030_v4 }
 0xb89   :  { %16613 = vmatpush3.msra.mxu0 %v20045_v52  ;;  %16650 = vmatpush3.msra.mxu1 %v12617_v38  ;;  %v20891_v21 = vand.u32 4294901760, %v20186_v57  ;;  %v20219_v38 = vsub.f32 %v12479_v6, %v20206_v49  ;;  %v12693_v7 = vsub.f32 %v20237_v8, %v20888_v61 }
 0xb8a   :  { %16614 = vmatprep.subr.mxu0 %v17030_v4  ;;  %16651 = vmatprep.subr.mxu1 %v17030_v4 }
 0xb8b   :  { %16615 = vmatpush3.msra.mxu0 %v20059_v10  ;;  %16652 = vmatpush3.msra.mxu1 %v12624_v27  ;;  %v12672_v54 = vsub.f32 %v20186_v57, %v20891_v21  ;;  %v12679_v27 = vsub.f32 %v20204_v12, %v20890_v46  ;;  %v20889_v55 = vand.u32 4294901760, %v20219_v38  ;;  %v12694_v43 = vand.u32 4294901760, %v12693_v7 }
 0xb8c   :  { %16616 = vmatprep.subr.mxu0 %v17030_v4  ;;  %16653 = vmatprep.subr.mxu1 %v17030_v4 }
 0xb8d   :  { %16617 = vmatpush3.msra.mxu0 %v20074_v15  ;;  %16654 = vmatpush3.msra.mxu1 %v12631_v9  ;;  %v12673_v19 = vand.u32 4294901760, %v12672_v54  ;;  %v20233_v9 = vand.u32 4294901760, %v12477_v32  ;;  %v12680_v13 = vand.u32 4294901760, %v12679_v27 }
 0xb8e   :  { %16618 = vmatprep.subr.mxu0 %v17030_v4  ;;  %16655 = vmatprep.subr.mxu1 %v17030_v4 }
 0xb8f   :  { %16619 = vmatpush3.msra.mxu0 %v20084_v1  ;;  %16656 = vmatpush3.msra.mxu1 %v12638_v26  ;;  %v12686_v26 = vsub.f32 %v20219_v38, %v20889_v55  ;;  %v20245_v35 = vsub.f32 %v12477_v32, %v20233_v9 }
 0xb90   :  { %16620 = vmatprep.subr.mxu0 %v17030_v4  ;;  %16657 = vmatprep.subr.mxu1 %v17030_v4 }
 0xb91   :  { %16621 = vmatpush3.msra.mxu0 %v20100_v58  ;;  %16658 = vmatpush3.msra.mxu1 %v12645_v48  ;;  %v12687_v48 = vand.u32 4294901760, %v12686_v26  ;;  %v20887_v63 = vand.u32 4294901760, %v20245_v35 }
 0xb92   :  { %16622 = vmatprep.subr.mxu0 %v17030_v4  ;;  %16659 = vmatprep.subr.mxu1 %v17030_v4 }
 0xb93   :  { %16623 = vmatpush3.msra.mxu0 %v20113_v2  ;;  %16660 = vmatpush3.msra.mxu1 %v12652_v50  ;;  %v12700_v50 = vsub.f32 %v20245_v35, %v20887_v63 }
 0xb94   :  { %16624 = vmatprep.subr.mxu0 %v17030_v4  ;;  %16661 = vmatprep.subr.mxu1 %v17030_v4 }
 0xb95   :  { %16625 = vmatpush3.msra.mxu0 %v20131_v18  ;;  %16662 = vmatpush3.msra.mxu1 %v12659_v33  ;;  %v12701_v6 = vand.u32 4294901760, %v12700_v50 }
 0xb96   :  { %16626 = vmatprep.subr.mxu0 %v17030_v4  ;;  %16663 = vmatprep.subr.mxu1 %v17030_v4 }
 0xb97   :  { %16627 = vmatpush3.msra.mxu0 %v20147_v17  ;;  %16664 = vmatpush3.msra.mxu1 %v12666_v56 }
 0xb98   :  { %16628 = vmatprep.subr.mxu0 %v17030_v4  ;;  %16665 = vmatprep.subr.mxu1 %v17030_v4 }
 0xb99   :  { %16629 = vmatpush3.msra.mxu0 %v20158_v53  ;;  %16666 = vmatpush3.msra.mxu1 %v12673_v19 }
 0xb9a   :  { %16630 = vmatprep.subr.mxu0 %v17030_v4  ;;  %16667 = vmatprep.subr.mxu1 %v17030_v4 }
 0xb9b   :  { %16631 = vmatpush3.msra.mxu0 %v20175_v39  ;;  %16668 = vmatpush3.msra.mxu1 %v12680_v13 }
 0xb9c   :  { %16632 = vmatprep.subr.mxu0 %v17030_v4  ;;  %16669 = vmatprep.subr.mxu1 %v17030_v4 }
 0xb9d   :  { %16633 = vmatpush3.msra.mxu0 %v20188_v25  ;;  %16670 = vmatpush3.msra.mxu1 %v12687_v48 }
 0xb9e   :  { %16634 = vmatprep.subr.mxu0 %v17030_v4  ;;  %16671 = vmatprep.subr.mxu1 %v17030_v4 }
 0xb9f   :  { %16635 = vmatpush3.msra.mxu0 %v20206_v49  ;;  %16672 = vmatpush3.msra.mxu1 %v12694_v43 }
 0xba0   :  { %16636 = vmatprep.subr.mxu0 %v17030_v4  ;;  %16673 = vmatprep.subr.mxu1 %v17030_v4 }
 0xba1   :  { %16637 = vmatpush3.msra.mxu0 %v20222_v40  ;;  %16674 = vmatpush3.msra.mxu1 %v12701_v6 }
 0xba2   :  { %16638 = vmatprep.subr.mxu0 %v17030_v4  ;;  %16713 = vmatprep.subr.mxu1 %v17030_v4 }
 0xba3   :  { %16639 = vmatpush3.msra.mxu0 %v20233_v9 }
 0xba4   :  { %16678 = vmatprep.subr.mxu0 %v17030_v4 }
 0xc09   :  { %v11220_v44 = vpop.f32.mrf.mxu1 }
 0xc0b   :  { %v16483_v33 = vpop.f32.mrf.mxu1 }
 0xc0d   :  { %v11371_v0 = vpop.f32.mrf.mxu1 }
 0xc0f   :  { %v16497_v56 = vpop.f32.mrf.mxu1 }
 0xc11   :  { %v11139_v54 = vpop.f32.mrf.mxu0 }
 0xc12   :  { %v11521_v32 = vpop.f32.mrf.mxu1  ;;  %v11221_v55 = vadd.f32 %v11220_v44, %v11139_v54 }
 0xc13   :  { %v16476_v19 = vpop.f32.mrf.mxu0 }
 0xc14   :  { %v16511_v27 = vpop.f32.mrf.mxu1 }
 0xc17   :  { %v11296_v13 = vpop.f32.mrf.mxu0 }
 0xc18   :  { %v11297_v21 = vadd.f32 %v11296_v13, %v11221_v55 }
 0xc19   :  { %v16490_v26 = vpop.f32.mrf.mxu0 }
 0xc1a   :  { %v11372_v3 = vadd.f32 %v11371_v0, %v11297_v21 }
 0xc1c   :  { %v11694_v48 = vpop.f32.mrf.mxu1 }
 0xc1d   :  { %v11448_v7 = vpop.f32.mrf.mxu0 }
 0xc1e   :  { %v16533_v63 = vpop.f32.mrf.mxu1  ;;  %v11449_v56 = vadd.f32 %v11448_v7, %v11372_v3 }
 0xc1f   :  { %v16504_v50 = vpop.f32.mrf.mxu0 }
 0xc20   :  { %v11522_v19 = vadd.f32 %v11521_v32, %v11449_v56 }
 0xc25   :  { %v11603_v43 = vpop.f32.mrf.mxu0 }
 0xc26   :  { %v11851_v61 = vpop.f32.mrf.mxu1  ;;  %v11604_v14 = vadd.f32 %v11603_v43, %v11522_v19 }
 0xc27   :  { %v16522_v6 = vpop.f32.mrf.mxu0 }
 0xc28   :  { %v16555_v46 = vpop.f32.mrf.mxu1  ;;  %v11695_v63 = vadd.f32 %v11694_v48, %v11604_v14  ;;  %v13869_v14 = vld [vmem:[%s20863_s19] ss:$0 sm:$0xff] }
 0xc2f   :  { %v11774_v33 = vpop.f32.mrf.mxu0 }
 0xc30   :  { %v12009_v42 = vpop.f32.mrf.mxu1  ;;  %v11775_v62 = vadd.f32 %v11774_v33, %v11695_v63 }
 0xc31   :  { %v16544_v37 = vpop.f32.mrf.mxu0 }
 0xc32   :  { %v16577_v5 = vpop.f32.mrf.mxu1  ;;  %v11852_v0 = vadd.f32 %v11851_v61, %v11775_v62 }
 0xc35   :  { %v12169_v27 = vpop.f32.mrf.mxu1 }
 0xc37   :  { %v16587_v26 = vpop.f32.mrf.mxu1 }
 0xc38   :  { %v11934_v45 = vpop.f32.mrf.mxu0 }
 0xc39   :  { %v11935_v5 = vadd.f32 %v11934_v45, %v11852_v0 }
 0xc3a   :  { %v16566_v28 = vpop.f32.mrf.mxu0 }
 0xc3b   :  { %v12317_v50 = vpop.f32.mrf.mxu1  ;;  %v12010_v56 = vadd.f32 %v12009_v42, %v11935_v5 }
 0xc3c   :  { %v12093_v41 = vpop.f32.mrf.mxu0 }
 0xc3d   :  { %v16597_v44 = vpop.f32.mrf.mxu1  ;;  %v12170_v46 = vadd.f32 %v12169_v27, %v12093_v41 }
 0xc3e   :  { %v16582_v54 = vpop.f32.mrf.mxu0 }
 0xc3f   :  { %v12463_v55 = vpop.f32.mrf.mxu1 }
 0xc40   :  { %v12243_v21 = vpop.f32.mrf.mxu0 }
 0xc41   :  { %v12244_v13 = vadd.f32 %v12243_v21, %v12170_v46  ;;  %v16607_v3 = vpop.f32.mrf.mxu1 }
 0xc42   :  { %v16592_v37 = vpop.f32.mrf.mxu0 }
 0xc43   :  { %v12318_v32 = vadd.f32 %v12317_v50, %v12244_v13 }
 0xc44   :  { %v12391_v7 = vpop.f32.mrf.mxu0 }
 0xc45   :  { %v12392_v43 = vadd.f32 %v12391_v7, %v12318_v32 }
 0xc46   :  { %v16602_v6 = vpop.f32.mrf.mxu0 }
 0xc47   :  { %v12464_v28 = vadd.f32 %v12463_v55, %v12392_v43 }
 0xc49   :  { %v12467_v48 = vadd.f32 %v12464_v28, %v12010_v56 }
 0xc4b   :  { %v12475_v33 = vadd.f32 %v13869_v14, %v12467_v48 }
 0xc4d   :  { %v12476_v41 = vmax.f32 %v12475_v33, 0.0 }
 0xc4f   :  { %v20266_v19 = vand.u32 4294901760, %v12476_v41 }
 0xc51   :  { %v20269_v62 = vsub.f32 %v12476_v41, %v20266_v19  ;;  %16676 = vmatmul.mubr.f32.vlgmr.msra.gmra.mxu1 %v20266_v19 }
 0xc52   :  { %16714 = vmatpush3.msra.mxu1 %v20026_v31  ;;  %16745 = vmatprep.mubr.msk.f32.mxu1 %vm17031_vm2, %v17030_v4 }
 0xc53   :  { %v12583_v45 = vand.u32 4294901760, %v20269_v62  ;;  %16715 = vmatprep.subr.mxu1 %v17030_v4 }
 0xc54   :  { %16716 = vmatpush3.msra.mxu1 %v20034_v47 }
 0xc55   :  { %v12584_v42 = vsub.f32 %v20269_v62, %v12583_v45  ;;  %16717 = vmatprep.subr.mxu1 %v17030_v4 }
 0xc56   :  { %16718 = vmatpush3.msra.mxu1 %v20045_v52 }
 0xc57   :  { %16719 = vmatprep.subr.mxu1 %v17030_v4  ;;  %v12585_v61 = vand.u32 4294901760, %v12584_v42 }
 0xc58   :  { %16720 = vmatpush3.msra.mxu1 %v20059_v10 }
 0xc59   :  { %16721 = vmatprep.subr.mxu1 %v17030_v4  ;;  %16641 = vmatmul.mubr.f32.vlgmr.msra.gmra.mxu0 %v12585_v61  ;;  %v13148_v61 = vld [vmem:[%s20864_s22 + $0x30] sm:$0xff] }
 0xc5a   :  { %16679 = vmatpush3.msra.mxu0 %v20032_v23  ;;  %16722 = vmatpush3.msra.mxu1 %v20074_v15  ;;  %v20962_v23 = vand.u32 4294901760, %v20071_v51 }
 0xc5b   :  { %16680 = vmatprep.subr.mxu0 %v17030_v4  ;;  %16723 = vmatprep.subr.mxu1 %v17030_v4 }
 0xc5c   :  { %16681 = vmatpush3.msra.mxu0 %v20043_v29  ;;  %16724 = vmatpush3.msra.mxu1 %v20084_v1  ;;  %v20965_v29 = vand.u32 4294901760, %v20111_v60 }
 0xc5d   :  { %16682 = vmatprep.subr.mxu0 %v17030_v4  ;;  %16725 = vmatprep.subr.mxu1 %v17030_v4 }
 0xc5e   :  { %16683 = vmatpush3.msra.mxu0 %v20057_v20  ;;  %16726 = vmatpush3.msra.mxu1 %v20100_v58 }
 0xc5f   :  { %16684 = vmatprep.subr.mxu0 %v17030_v4  ;;  %16727 = vmatprep.subr.mxu1 %v17030_v4 }
 0xc60   :  { %16685 = vmatpush3.msra.mxu0 %v20071_v51  ;;  %16728 = vmatpush3.msra.mxu1 %v20113_v2  ;;  %v20970_v51 = vand.u32 4294901760, %v20186_v57 }
 0xc61   :  { %16686 = vmatprep.subr.mxu0 %v17030_v4  ;;  %16729 = vmatprep.subr.mxu1 %v17030_v4 }
 0xc62   :  { %16687 = vmatpush3.msra.mxu0 %v20088_v34  ;;  %16730 = vmatpush3.msra.mxu1 %v20131_v18 }
 0xc63   :  { %16688 = vmatprep.subr.mxu0 %v17030_v4  ;;  %16731 = vmatprep.subr.mxu1 %v17030_v4 }
 0xc64   :  { %16689 = vmatpush3.msra.mxu0 %v20098_v11  ;;  %16732 = vmatpush3.msra.mxu1 %v20147_v17 }
 0xc65   :  { %16690 = vmatprep.subr.mxu0 %v17030_v4  ;;  %16733 = vmatprep.subr.mxu1 %v17030_v4 }
 0xc66   :  { %16691 = vmatpush3.msra.mxu0 %v20111_v60  ;;  %16734 = vmatpush3.msra.mxu1 %v20158_v53 }
 0xc67   :  { %16692 = vmatprep.subr.mxu0 %v17030_v4  ;;  %16735 = vmatprep.subr.mxu1 %v17030_v4 }
 0xc68   :  { %16693 = vmatpush3.msra.mxu0 %v20129_v16  ;;  %16736 = vmatpush3.msra.mxu1 %v20175_v39 }
 0xc69   :  { %16694 = vmatprep.subr.mxu0 %v17030_v4  ;;  %16737 = vmatprep.subr.mxu1 %v17030_v4 }
 0xc6a   :  { %16695 = vmatpush3.msra.mxu0 %v20144_v30  ;;  %16738 = vmatpush3.msra.mxu1 %v20188_v25 }
 0xc6b   :  { %16696 = vmatprep.subr.mxu0 %v17030_v4  ;;  %16739 = vmatprep.subr.mxu1 %v17030_v4 }
 0xc6c   :  { %16697 = vmatpush3.msra.mxu0 %v20162_v22  ;;  %16740 = vmatpush3.msra.mxu1 %v20206_v49 }
 0xc6d   :  { %16698 = vmatprep.subr.mxu0 %v17030_v4  ;;  %16741 = vmatprep.subr.mxu1 %v17030_v4 }
 0xc6e   :  { %16699 = vmatpush3.msra.mxu0 %v20173_v59  ;;  %16742 = vmatpush3.msra.mxu1 %v20222_v40 }
 0xc6f   :  { %16700 = vmatprep.subr.mxu0 %v17030_v4  ;;  %16743 = vmatprep.subr.mxu1 %v17030_v4 }
 0xc70   :  { %16701 = vmatpush3.msra.mxu0 %v20186_v57  ;;  %16744 = vmatpush3.msra.mxu1 %v20233_v9  ;;  %v13152_v57 = vld [vmem:[%s20864_s22 + $0x50] sm:$0xff] }
 0xc71   :  { %16702 = vmatprep.subr.mxu0 %v17030_v4  ;;  %16746 = vmatmul.mubr.f32.vlgmr.msra.gmra.mxu1 %v12583_v45 }
 0xc72   :  { %16783 = vmatprep.subr.mxu1 %v17030_v4  ;;  %16703 = vmatpush3.msra.mxu0 %v20204_v12 }
 0xc73   :  { %16784 = vmatpush3.msra.mxu1 %v20026_v31  ;;  %16704 = vmatprep.subr.mxu0 %v17030_v4  ;;  %v20961_v31 = vand.u32 4294901760, %v20057_v20  ;;  %v20968_v20 = vand.u32 4294901760, %v20162_v22 }
 0xc74   :  { %16785 = vmatprep.subr.mxu1 %v17030_v4  ;;  %16705 = vmatpush3.msra.mxu0 %v20219_v38 }
 0xc75   :  { %16786 = vmatpush3.msra.mxu1 %v20034_v47  ;;  %16706 = vmatprep.subr.mxu0 %v17030_v4  ;;  %v20963_v47 = vand.u32 4294901760, %v20088_v34  ;;  %v20973_v34 = vand.u32 4294901760, %v20237_v8 }
 0xc76   :  { %16787 = vmatprep.subr.mxu1 %v17030_v4  ;;  %16707 = vmatpush3.msra.mxu0 %v20237_v8 }
 0xc77   :  { %16788 = vmatpush3.msra.mxu1 %v20045_v52  ;;  %16708 = vmatprep.subr.mxu0 %v17030_v4  ;;  %v20966_v52 = vand.u32 4294901760, %v20129_v16 }
 0xc78   :  { %16789 = vmatprep.subr.mxu1 %v17030_v4  ;;  %16709 = vmatpush3.msra.mxu0 %v20245_v35 }
 0xc79   :  { %16710 = vmatprep.mubr.msk.f32.mxu0 %vm17031_vm2, %v17030_v4  ;;  %16790 = vmatpush3.msra.mxu1 %v20059_v10  ;;  %v20969_v10 = vand.u32 4294901760, %v20173_v59 }
 0xc7a   :  { %16711 = vmatmul.mubr.f32.vlgmr.msra.gmra.mxu0 %v20269_v62  ;;  %16748 = vmatprep.subr.mxu0 %v17030_v4 }
 0xc7b   :  { %16791 = vmatprep.subr.mxu1 %v17030_v4  ;;  %16749 = vmatpush3.msra.mxu0 %v12594_v24  ;;  %v20964_v24 = vand.u32 4294901760, %v20098_v11  ;;  %v20974_v11 = vand.u32 4294901760, %v20245_v35 }
 0xc7c   :  { %16792 = vmatpush3.msra.mxu1 %v20074_v15  ;;  %16750 = vmatprep.subr.mxu0 %v17030_v4  ;;  %v20971_v15 = vand.u32 4294901760, %v20204_v12  ;;  %v13150_v12 = vld [vmem:[%s20864_s22 + $0x40] sm:$0xff] }
 0xc7d   :  { %16793 = vmatprep.subr.mxu1 %v17030_v4  ;;  %16751 = vmatpush3.msra.mxu0 %v12601_v36  ;;  %v20967_v36 = vand.u32 4294901760, %v20144_v30  ;;  %v13155_v30 = vld [vmem:[%s20864_s22 + $0x68] sm:$0xff]  ;;  %v20491_v26 = vand.u32 4294901760, %v13150_v12 }
 0xc7e   :  { %16794 = vmatpush3.msra.mxu1 %v20084_v1  ;;  %16752 = vmatprep.subr.mxu0 %v17030_v4  ;;  %v20972_v1 = vand.u32 4294901760, %v20219_v38  ;;  %v20456_v22 = vand.u32 4294901760, %v13155_v30 }
 0xc7f   :  { %16795 = vmatprep.subr.mxu1 %v17030_v4  ;;  %16753 = vmatpush3.msra.mxu0 %v20961_v31  ;;  %v20514_v37 = vsub.f32 %v13150_v12, %v20491_v26 }
 0xc80   :  { %16796 = vmatpush3.msra.mxu1 %v20100_v58  ;;  %16754 = vmatprep.subr.mxu0 %v17030_v4  ;;  %v13157_v58 = vld [vmem:[%s20864_s22 + $0x78] sm:$0xff]  ;;  %v20482_v8 = vsub.f32 %v13155_v30, %v20456_v22 }
 0xc81   :  { %16797 = vmatprep.subr.mxu1 %v17030_v4  ;;  %16755 = vmatpush3.msra.mxu0 %v20962_v23  ;;  %v20436_v60 = vand.u32 4294901760, %v13157_v58  ;;  %v13308_v48 = vand.u32 4294901760, %v20514_v37 }
 0xc82   :  { %16798 = vmatpush3.msra.mxu1 %v20113_v2  ;;  %16756 = vmatprep.subr.mxu0 %v17030_v4  ;;  %v13156_v2 = vld [vmem:[%s20864_s22 + $0x70] sm:$0xff]  ;;  %v13273_v46 = vand.u32 4294901760, %v20482_v8 }
 0xc83   :  { %16799 = vmatprep.subr.mxu1 %v17030_v4  ;;  %16757 = vmatpush3.msra.mxu0 %v20963_v47  ;;  %v20442_v16 = vsub.f32 %v13157_v58, %v20436_v60  ;;  %v13309_v45 = vsub.f32 %v20514_v37, %v13308_v48  ;;  %v20560_v47 = vand.u32 4294901760, %v13148_v61 }
 0xc84   :  { %16800 = vmatpush3.msra.mxu1 %v20131_v18  ;;  %16758 = vmatprep.subr.mxu0 %v17030_v4  ;;  %v20444_v18 = vand.u32 4294901760, %v13156_v2  ;;  %v13274_v5 = vsub.f32 %v20482_v8, %v13273_v46 }
 0xc85   :  { %16801 = vmatprep.subr.mxu1 %v17030_v4  ;;  %16759 = vmatpush3.msra.mxu0 %v20964_v24  ;;  %v13147_v24 = vld [vmem:[%s20864_s22 + $0x28] sm:$0xff] }
 0xc86   :  { %16802 = vmatpush3.msra.mxu1 %v20147_v17  ;;  %16760 = vmatprep.subr.mxu0 %v17030_v4  ;;  %v13154_v17 = vld [vmem:[%s20864_s22 + $0x60] sm:$0xff]  ;;  %v20474_v38 = vsub.f32 %v13156_v2, %v20444_v18  ;;  %v13275_v56 = vand.u32 4294901760, %v13274_v5  ;;  %v13143_v5 = vld [vmem:[%s20864_s22 + $0x8] sm:$0xff] }
 0xc87   :  { %16803 = vmatprep.subr.mxu1 %v17030_v4  ;;  %16761 = vmatpush3.msra.mxu0 %v20965_v29  ;;  %v20458_v59 = vand.u32 4294901760, %v13154_v17  ;;  %v13310_v29 = vand.u32 4294901760, %v13309_v45 }
 0xc88   :  { %16804 = vmatpush3.msra.mxu1 %v20158_v53  ;;  %16762 = vmatprep.subr.mxu0 %v17030_v4  ;;  %v13153_v53 = vld [vmem:[%s20864_s22 + $0x58] sm:$0xff]  ;;  %v13266_v50 = vand.u32 4294901760, %v20474_v38 }
 0xc89   :  { %16805 = vmatprep.subr.mxu1 %v17030_v4  ;;  %16763 = vmatpush3.msra.mxu0 %v20966_v52  ;;  %v20485_v35 = vsub.f32 %v13154_v17, %v20458_v59 }
 0xc8a   :  { %16806 = vmatpush3.msra.mxu1 %v20175_v39  ;;  %16764 = vmatprep.subr.mxu0 %v17030_v4  ;;  %v20460_v39 = vand.u32 4294901760, %v13153_v53  ;;  %v13267_v13 = vsub.f32 %v20474_v38, %v13266_v50 }
 0xc8b   :  { %16807 = vmatprep.subr.mxu1 %v17030_v4  ;;  %16765 = vmatpush3.msra.mxu0 %v20967_v36  ;;  %v13280_v55 = vand.u32 4294901760, %v20485_v35  ;;  %v20570_v36 = vsub.f32 %v13148_v61, %v20560_v47 }
 0xc8c   :  { %16808 = vmatpush3.msra.mxu1 %v20188_v25  ;;  %16766 = vmatprep.subr.mxu0 %v17030_v4  ;;  %v13151_v25 = vld [vmem:[%s20864_s22 + $0x48] sm:$0xff]  ;;  %v20488_v27 = vsub.f32 %v13153_v53, %v20460_v39  ;;  %v13268_v7 = vand.u32 4294901760, %v13267_v13 }
 0xc8d   :  { %16809 = vmatprep.subr.mxu1 %v17030_v4  ;;  %16767 = vmatpush3.msra.mxu0 %v20968_v20  ;;  %v13281_v32 = vsub.f32 %v20485_v35, %v13280_v55  ;;  %v20572_v20 = vand.u32 4294901760, %v13147_v24 }
 0xc8e   :  { %16810 = vmatpush3.msra.mxu1 %v20206_v49  ;;  %16768 = vmatprep.subr.mxu0 %v17030_v4  ;;  %v13259_v49 = vand.u32 4294901760, %v20442_v16  ;;  %v13287_v21 = vand.u32 4294901760, %v20488_v27 }
 0xc8f   :  { %16811 = vmatprep.subr.mxu1 %v17030_v4  ;;  %16769 = vmatpush3.msra.mxu0 %v20969_v10  ;;  %v13282_v28 = vand.u32 4294901760, %v13281_v32  ;;  %v13146_v10 = vld [vmem:[%s20864_s22 + $0x20] sm:$0xff] }
 0xc90   :  { %16812 = vmatpush3.msra.mxu1 %v20222_v40  ;;  %16770 = vmatprep.subr.mxu0 %v17030_v4  ;;  %v20477_v40 = vand.u32 4294901760, %v13152_v57  ;;  %v13260_v63 = vsub.f32 %v20442_v16, %v13259_v49  ;;  %v13288_v43 = vsub.f32 %v20488_v27, %v13287_v21 }
 0xc91   :  { %16813 = vmatprep.subr.mxu1 %v17030_v4  ;;  %16771 = vmatpush3.msra.mxu0 %v20970_v51 }
 0xc92   :  { %16814 = vmatpush3.msra.mxu1 %v20233_v9  ;;  %16815 = vmatprep.mubr.msk.f32.mxu1 %vm17031_vm2, %v17030_v4  ;;  %v20479_v9 = vand.u32 4294901760, %v13151_v25  ;;  %v20498_v44 = vsub.f32 %v13152_v57, %v20477_v40  ;;  %v13261_v0 = vand.u32 4294901760, %v13260_v63  ;;  %v13289_v33 = vand.u32 4294901760, %v13288_v43  ;;  %v13144_v57 = vld [vmem:[%s20864_s22 + $0x10] sm:$0xff] }
 0xc93   :  { %16772 = vmatprep.subr.mxu0 %v17030_v4  ;;  %16816 = vmatmul.mubr.f32.vlgmr.msra.gmra.mxu1 %v20266_v19 }
 0xc94   :  { %16773 = vmatpush3.msra.mxu0 %v20971_v15  ;;  %16780 = vmatprep.mubr.msk.f32.mxu0 %vm17031_vm2, %v17030_v4  ;;  %v20502_v54 = vsub.f32 %v13151_v25, %v20479_v9  ;;  %v13294_v3 = vand.u32 4294901760, %v20498_v44  ;;  %v13322_v15 = vand.u32 4294901760, %v20570_v36 }
 0xc95   :  { %16774 = vmatprep.subr.mxu0 %v17030_v4  ;;  %16853 = vmatprep.subr.mxu1 %v17030_v4 }
 0xc96   :  { %16775 = vmatpush3.msra.mxu0 %v20972_v1  ;;  %16885 = vmatprep.mubr.msk.f32.mxu1 %vm17031_vm2, %v17030_v4  ;;  %v13301_v6 = vand.u32 4294901760, %v20502_v54  ;;  %v13295_v14 = vsub.f32 %v20498_v44, %v13294_v3  ;;  %v20585_v1 = vsub.f32 %v13147_v24, %v20572_v20  ;;  %v13323_v2 = vsub.f32 %v20570_v36, %v13322_v15 }
 0xc97   :  { %16776 = vmatprep.subr.mxu0 %v17030_v4  ;;  %16854 = vmatpush3.msra.mxu1 %v13261_v0  ;;  %v20614_v0 = vand.u32 4294901760, %v13144_v57 }
 0xc98   :  { %16777 = vmatpush3.msra.mxu0 %v20973_v34  ;;  %16855 = vmatprep.subr.mxu1 %v17030_v4  ;;  %v13302_v41 = vsub.f32 %v20502_v54, %v13301_v6  ;;  %v13296_v62 = vand.u32 4294901760, %v13295_v14  ;;  %v20587_v34 = vand.u32 4294901760, %v13146_v10  ;;  %v13329_v30 = vand.u32 4294901760, %v20585_v1  ;;  %v13142_v14 = vld [vmem:[%s20864_s22] sm:$0xff] }
 0xc99   :  { %16778 = vmatprep.subr.mxu0 %v17030_v4  ;;  %16856 = vmatpush3.msra.mxu1 %v13268_v7  ;;  %v13324_v25 = vand.u32 4294901760, %v13323_v2  ;;  %v20628_v43 = vsub.f32 %v13144_v57, %v20614_v0 }
 0xc9a   :  { %16779 = vmatpush3.msra.mxu0 %v20974_v11  ;;  %16857 = vmatprep.subr.mxu1 %v17030_v4  ;;  %v13303_v31 = vand.u32 4294901760, %v13302_v41  ;;  %v13145_v11 = vld [vmem:[%s20864_s22 + $0x18] sm:$0xff]  ;;  %v20600_v17 = vsub.f32 %v13146_v10, %v20587_v34  ;;  %v13330_v12 = vsub.f32 %v20585_v1, %v13329_v30 }
 0xc9b   :  { %16781 = vmatmul.mubr.f32.vlgmr.msra.gmra.mxu0 %v20266_v19  ;;  %16818 = vmatprep.subr.mxu0 %v17030_v4  ;;  %v13149_v19 = vld [vmem:[%s20864_s22 + $0x38] sm:$0xff]  ;;  %v20604_v53 = vand.u32 4294901760, %v13145_v11  ;;  %v20903_v41 = vand.u32 4294901760, %v20628_v43 }
 0xc9c   :  { %16850 = vmatprep.mubr.msk.f32.mxu0 %vm17031_vm2, %v17030_v4  ;;  %16819 = vmatpush3.msra.mxu0 %v20436_v60  ;;  %v20549_v42 = vand.u32 4294901760, %v13149_v19  ;;  %v13336_v63 = vand.u32 4294901760, %v20600_v17  ;;  %v13331_v32 = vand.u32 4294901760, %v13330_v12 }
 0xc9d   :  { %16820 = vmatprep.subr.mxu0 %v17030_v4  ;;  %16858 = vmatpush3.msra.mxu1 %v13275_v56  ;;  %v20618_v13 = vsub.f32 %v13145_v11, %v20604_v53  ;;  %v20630_v56 = vand.u32 4294901760, %v13143_v5  ;;  %v13351_v61 = vsub.f32 %v20628_v43, %v20903_v41 }
 0xc9e   :  { %16821 = vmatpush3.msra.mxu0 %v20444_v18  ;;  %16859 = vmatprep.subr.mxu1 %v17030_v4  ;;  %v20558_v23 = vsub.f32 %v13149_v19, %v20549_v42  ;;  %v13337_v7 = vsub.f32 %v20600_v17, %v13336_v63 }
 0xc9f   :  { %16822 = vmatprep.subr.mxu0 %v17030_v4  ;;  %16860 = vmatpush3.msra.mxu1 %v13282_v28  ;;  %v20904_v28 = vand.u32 4294901760, %v20618_v13  ;;  %v20641_v19 = vsub.f32 %v13143_v5, %v20630_v56  ;;  %v13352_v10 = vand.u32 4294901760, %v13351_v61  ;;  %v13870_v61 = vld [vmem:[%s20865_s21] ss:$0 sm:$0xff] }
 0xca0   :  { %16823 = vmatpush3.msra.mxu0 %v20456_v22  ;;  %16861 = vmatprep.subr.mxu1 %v17030_v4  ;;  %v13315_v52 = vand.u32 4294901760, %v20558_v23 }
 0xca1   :  { %16824 = vmatprep.subr.mxu0 %v17030_v4  ;;  %16862 = vmatpush3.msra.mxu1 %v13289_v33  ;;  %v13338_v33 = vand.u32 4294901760, %v13337_v7  ;;  %v13344_v45 = vsub.f32 %v20618_v13, %v20904_v28 }
 0xca2   :  { %16825 = vmatpush3.msra.mxu0 %v20458_v59  ;;  %16863 = vmatprep.subr.mxu1 %v17030_v4  ;;  %v13316_v51 = vsub.f32 %v20558_v23, %v13315_v52 }
 0xca3   :  { %16826 = vmatprep.subr.mxu0 %v17030_v4  ;;  %16864 = vmatpush3.msra.mxu1 %v13296_v62  ;;  %v20643_v62 = vand.u32 4294901760, %v13142_v14 }
 0xca4   :  { %16827 = vmatpush3.msra.mxu0 %v20460_v39  ;;  %16865 = vmatprep.subr.mxu1 %v17030_v4  ;;  %v13317_v58 = vand.u32 4294901760, %v13316_v51 }
 0xca5   :  { %16828 = vmatprep.subr.mxu0 %v17030_v4  ;;  %16866 = vmatpush3.msra.mxu1 %v13303_v31  ;;  %v20902_v31 = vand.u32 4294901760, %v20641_v19  ;;  %v20656_v24 = vsub.f32 %v13142_v14, %v20643_v62 }
 0xca6   :  { %16829 = vmatpush3.msra.mxu0 %v20477_v40  ;;  %16867 = vmatprep.subr.mxu1 %v17030_v4 }
 0xca7   :  { %16830 = vmatprep.subr.mxu0 %v17030_v4  ;;  %16868 = vmatpush3.msra.mxu1 %v13310_v29  ;;  %v13345_v29 = vand.u32 4294901760, %v13344_v45  ;;  %v13358_v51 = vsub.f32 %v20641_v19, %v20902_v31  ;;  %v20901_v11 = vand.u32 4294901760, %v20656_v24 }
 0xca8   :  { %16831 = vmatpush3.msra.mxu0 %v20479_v9  ;;  %16869 = vmatprep.subr.mxu1 %v17030_v4 }
 0xca9   :  { %16832 = vmatprep.subr.mxu0 %v17030_v4  ;;  %16870 = vmatpush3.msra.mxu1 %v13317_v58  ;;  %v13359_v58 = vand.u32 4294901760, %v13358_v51  ;;  %v13365_v2 = vsub.f32 %v20656_v24, %v20901_v11 }
 0xcaa   :  { %16833 = vmatpush3.msra.mxu0 %v20491_v26  ;;  %16871 = vmatprep.subr.mxu1 %v17030_v4 }
 0xcab   :  { %16834 = vmatprep.subr.mxu0 %v17030_v4  ;;  %16872 = vmatpush3.msra.mxu1 %v13324_v25  ;;  %v13366_v57 = vand.u32 4294901760, %v13365_v2 }
 0xcac   :  { %16835 = vmatpush3.msra.mxu0 %v20549_v42  ;;  %16873 = vmatprep.subr.mxu1 %v17030_v4 }
 0xcad   :  { %16836 = vmatprep.subr.mxu0 %v17030_v4  ;;  %16874 = vmatpush3.msra.mxu1 %v13331_v32 }
 0xcae   :  { %16837 = vmatpush3.msra.mxu0 %v20560_v47  ;;  %16875 = vmatprep.subr.mxu1 %v17030_v4 }
 0xcaf   :  { %16838 = vmatprep.subr.mxu0 %v17030_v4  ;;  %16876 = vmatpush3.msra.mxu1 %v13338_v33 }
 0xcb0   :  { %16839 = vmatpush3.msra.mxu0 %v20572_v20  ;;  %16877 = vmatprep.subr.mxu1 %v17030_v4 }
 0xcb1   :  { %16840 = vmatprep.subr.mxu0 %v17030_v4  ;;  %16878 = vmatpush3.msra.mxu1 %v13345_v29 }
 0xcb2   :  { %16841 = vmatpush3.msra.mxu0 %v20587_v34  ;;  %16879 = vmatprep.subr.mxu1 %v17030_v4 }
 0xcb3   :  { %16842 = vmatprep.subr.mxu0 %v17030_v4  ;;  %16880 = vmatpush3.msra.mxu1 %v13352_v10 }
 0xcb4   :  { %16843 = vmatpush3.msra.mxu0 %v20604_v53  ;;  %16881 = vmatprep.subr.mxu1 %v17030_v4 }
 0xcb5   :  { %16844 = vmatprep.subr.mxu0 %v17030_v4  ;;  %16882 = vmatpush3.msra.mxu1 %v13359_v58 }
 0xcb6   :  { %16845 = vmatpush3.msra.mxu0 %v20614_v0  ;;  %16883 = vmatprep.subr.mxu1 %v17030_v4 }
 0xcb7   :  { %16846 = vmatprep.subr.mxu0 %v17030_v4  ;;  %16884 = vmatpush3.msra.mxu1 %v13366_v57 }
 0xcb8   :  { %16847 = vmatpush3.msra.mxu0 %v20630_v56  ;;  %16923 = vmatprep.subr.mxu1 %v17030_v4 }
 0xcb9   :  { %16848 = vmatprep.subr.mxu0 %v17030_v4 }
 0xcba   :  { %16849 = vmatpush3.msra.mxu0 %v20643_v62 }
 0xcbb   :  { %16888 = vmatprep.subr.mxu0 %v17030_v4 }
 0xd11   :  { %v12738_v25 = vpop.f32.mrf.mxu1 }
 0xd13   :  { %v16677_v12 = vpop.f32.mrf.mxu1 }
 0xd19   :  { %v12587_v5 = vpop.f32.mrf.mxu0 }
 0xd1a   :  { %v12588_v29 = vadd.f32 %v13870_v61, %v12587_v5 }
 0xd1b   :  { %v16642_v32 = vpop.f32.mrf.mxu0 }
 0xd1c   :  { %v12739_v51 = vadd.f32 %v12738_v25, %v12588_v29 }
 0xd31   :  { %v12931_v7 = vpop.f32.mrf.mxu1 }
 0xd33   :  { %v16747_v14 = vpop.f32.mrf.mxu1 }
 0xd3a   :  { %v12842_v33 = vpop.f32.mrf.mxu0 }
 0xd3b   :  { %v12843_v2 = vadd.f32 %v12842_v33, %v12739_v51 }
 0xd3c   :  { %v16712_v45 = vpop.f32.mrf.mxu0 }
 0xd3d   :  { %v12932_v57 = vadd.f32 %v12931_v7, %v12843_v2 }
 0xd53   :  { %v13137_v10 = vpop.f32.mrf.mxu1 }
 0xd55   :  { %v16817_v58 = vpop.f32.mrf.mxu1 }
 0xd5b   :  { %v13050_v11 = vpop.f32.mrf.mxu0 }
 0xd5c   :  { %v13051_v31 = vadd.f32 %v13050_v11, %v12932_v57 }
 0xd5d   :  { %v16782_v41 = vpop.f32.mrf.mxu0 }
 0xd5e   :  { %v13138_v12 = vadd.f32 %v13137_v10, %v13051_v31 }
 0xd60   :  { %v13141_v28 = vmax.f32 %v13138_v12, 0.0 }
 0xd62   :  { %v20676_v32 = vand.u32 4294901760, %v13141_v28 }
 0xd64   :  { %v20679_v14 = vsub.f32 %v13141_v28, %v20676_v32  ;;  %16886 = vmatmul.mubr.f32.vlgmr.msra.gmra.mxu1 %v20676_v32 }
 0xd65   :  { %16924 = vmatpush3.msra.mxu1 %v20436_v60  ;;  %16955 = vmatprep.mubr.msk.f32.mxu1 %vm17031_vm2, %v17030_v4 }
 0xd66   :  { %v13248_v25 = vand.u32 4294901760, %v20679_v14  ;;  %16925 = vmatprep.subr.mxu1 %v17030_v4 }
 0xd67   :  { %16926 = vmatpush3.msra.mxu1 %v20444_v18 }
 0xd68   :  { %v13249_v41 = vsub.f32 %v20679_v14, %v13248_v25  ;;  %16927 = vmatprep.subr.mxu1 %v17030_v4 }
 0xd69   :  { %16928 = vmatpush3.msra.mxu1 %v20456_v22 }
 0xd6a   :  { %v13250_v28 = vand.u32 4294901760, %v13249_v41  ;;  %16929 = vmatprep.subr.mxu1 %v17030_v4 }
 0xd6b   :  { %16930 = vmatpush3.msra.mxu1 %v20458_v59 }
 0xd6c   :  { %16931 = vmatprep.subr.mxu1 %v17030_v4  ;;  %16851 = vmatmul.mubr.f32.vlgmr.msra.gmra.mxu0 %v13250_v28 }
 0xd6d   :  { %16889 = vmatpush3.msra.mxu0 %v20442_v16  ;;  %16932 = vmatpush3.msra.mxu1 %v20460_v39  ;;  %v20976_v16 = vand.u32 4294901760, %v20628_v43 }
 0xd6e   :  { %16890 = vmatprep.subr.mxu0 %v17030_v4  ;;  %16933 = vmatprep.subr.mxu1 %v17030_v4 }
 0xd6f   :  { %16891 = vmatpush3.msra.mxu0 %v20474_v38  ;;  %16934 = vmatpush3.msra.mxu1 %v20477_v40 }
 0xd70   :  { %16892 = vmatprep.subr.mxu0 %v17030_v4  ;;  %16935 = vmatprep.subr.mxu1 %v17030_v4 }
 0xd71   :  { %16893 = vmatpush3.msra.mxu0 %v20482_v8  ;;  %16936 = vmatpush3.msra.mxu1 %v20479_v9 }
 0xd72   :  { %16894 = vmatprep.subr.mxu0 %v17030_v4  ;;  %16937 = vmatprep.subr.mxu1 %v17030_v4 }
 0xd73   :  { %16895 = vmatpush3.msra.mxu0 %v20485_v35  ;;  %16938 = vmatpush3.msra.mxu1 %v20491_v26 }
 0xd74   :  { %16896 = vmatprep.subr.mxu0 %v17030_v4  ;;  %16939 = vmatprep.subr.mxu1 %v17030_v4 }
 0xd75   :  { %16897 = vmatpush3.msra.mxu0 %v20488_v27  ;;  %16940 = vmatpush3.msra.mxu1 %v20549_v42  ;;  %v13871_v27 = vld [vmem:[%s20866_s23] ss:$0 sm:$0xff] }
 0xd76   :  { %16898 = vmatprep.subr.mxu0 %v17030_v4  ;;  %16941 = vmatprep.subr.mxu1 %v17030_v4 }
 0xd77   :  { %16899 = vmatpush3.msra.mxu0 %v20498_v44  ;;  %16942 = vmatpush3.msra.mxu1 %v20560_v47 }
 0xd78   :  { %16900 = vmatprep.subr.mxu0 %v17030_v4  ;;  %16943 = vmatprep.subr.mxu1 %v17030_v4 }
 0xd79   :  { %16901 = vmatpush3.msra.mxu0 %v20502_v54  ;;  %16944 = vmatpush3.msra.mxu1 %v20572_v20 }
 0xd7a   :  { %16902 = vmatprep.subr.mxu0 %v17030_v4  ;;  %16945 = vmatprep.subr.mxu1 %v17030_v4 }
 0xd7b   :  { %16903 = vmatpush3.msra.mxu0 %v20514_v37  ;;  %16946 = vmatpush3.msra.mxu1 %v20587_v34 }
 0xd7c   :  { %16904 = vmatprep.subr.mxu0 %v17030_v4  ;;  %16947 = vmatprep.subr.mxu1 %v17030_v4 }
 0xd7d   :  { %16905 = vmatpush3.msra.mxu0 %v20558_v23  ;;  %16948 = vmatpush3.msra.mxu1 %v20604_v53 }
 0xd7e   :  { %16906 = vmatprep.subr.mxu0 %v17030_v4  ;;  %16949 = vmatprep.subr.mxu1 %v17030_v4 }
 0xd7f   :  { %16907 = vmatpush3.msra.mxu0 %v20570_v36  ;;  %16950 = vmatpush3.msra.mxu1 %v20614_v0 }
 0xd80   :  { %16908 = vmatprep.subr.mxu0 %v17030_v4  ;;  %16951 = vmatprep.subr.mxu1 %v17030_v4 }
 0xd81   :  { %16909 = vmatpush3.msra.mxu0 %v20585_v1  ;;  %16952 = vmatpush3.msra.mxu1 %v20630_v56 }
 0xd82   :  { %16910 = vmatprep.subr.mxu0 %v17030_v4  ;;  %16953 = vmatprep.subr.mxu1 %v17030_v4 }
 0xd83   :  { %16911 = vmatpush3.msra.mxu0 %v20600_v17  ;;  %16954 = vmatpush3.msra.mxu1 %v20643_v62 }
 0xd84   :  { %16912 = vmatprep.subr.mxu0 %v17030_v4  ;;  %16956 = vmatmul.mubr.f32.vlgmr.msra.gmra.mxu1 %v13248_v25 }
 0xd85   :  { %16993 = vmatprep.subr.mxu1 %v17030_v4  ;;  %16913 = vmatpush3.msra.mxu0 %v20618_v13 }
 0xd86   :  { %16994 = vmatpush3.msra.mxu1 %v20436_v60  ;;  %16914 = vmatprep.subr.mxu0 %v17030_v4  ;;  %v20975_v60 = vand.u32 4294901760, %v20618_v13 }
 0xd87   :  { %16995 = vmatprep.subr.mxu1 %v17030_v4  ;;  %16915 = vmatpush3.msra.mxu0 %v20628_v43 }
 0xd88   :  { %16996 = vmatpush3.msra.mxu1 %v20444_v18  ;;  %16916 = vmatprep.subr.mxu0 %v17030_v4  ;;  %v20977_v18 = vand.u32 4294901760, %v20641_v19 }
 0xd89   :  { %16997 = vmatprep.subr.mxu1 %v17030_v4  ;;  %16917 = vmatpush3.msra.mxu0 %v20641_v19 }
 0xd8a   :  { %16998 = vmatpush3.msra.mxu1 %v20456_v22  ;;  %16918 = vmatprep.subr.mxu0 %v17030_v4  ;;  %v20978_v22 = vand.u32 4294901760, %v20656_v24 }
 0xd8b   :  { %16999 = vmatprep.subr.mxu1 %v17030_v4  ;;  %16919 = vmatpush3.msra.mxu0 %v20656_v24 }
 0xd8c   :  { %16920 = vmatprep.mubr.msk.f32.mxu0 %vm17031_vm2, %v17030_v4  ;;  %17000 = vmatpush3.msra.mxu1 %v20458_v59 }
 0xd8d   :  { %16921 = vmatmul.mubr.f32.vlgmr.msra.gmra.mxu0 %v20679_v14  ;;  %16958 = vmatprep.subr.mxu0 %v17030_v4 }
 0xd8e   :  { %17001 = vmatprep.subr.mxu1 %v17030_v4  ;;  %16959 = vmatpush3.msra.mxu0 %v13259_v49 }
 0xd8f   :  { %17002 = vmatpush3.msra.mxu1 %v20460_v39  ;;  %16960 = vmatprep.subr.mxu0 %v17030_v4 }
 0xd90   :  { %17003 = vmatprep.subr.mxu1 %v17030_v4  ;;  %16961 = vmatpush3.msra.mxu0 %v13266_v50 }
 0xd91   :  { %17004 = vmatpush3.msra.mxu1 %v20477_v40  ;;  %16962 = vmatprep.subr.mxu0 %v17030_v4 }
 0xd92   :  { %17005 = vmatprep.subr.mxu1 %v17030_v4  ;;  %16963 = vmatpush3.msra.mxu0 %v13273_v46 }
 0xd93   :  { %17006 = vmatpush3.msra.mxu1 %v20479_v9  ;;  %16964 = vmatprep.subr.mxu0 %v17030_v4 }
 0xd94   :  { %17007 = vmatprep.subr.mxu1 %v17030_v4  ;;  %16965 = vmatpush3.msra.mxu0 %v13280_v55 }
 0xd95   :  { %17008 = vmatpush3.msra.mxu1 %v20491_v26  ;;  %16966 = vmatprep.subr.mxu0 %v17030_v4 }
 0xd96   :  { %17009 = vmatprep.subr.mxu1 %v17030_v4  ;;  %16967 = vmatpush3.msra.mxu0 %v13287_v21 }
 0xd97   :  { %17010 = vmatpush3.msra.mxu1 %v20549_v42  ;;  %16968 = vmatprep.subr.mxu0 %v17030_v4 }
 0xd98   :  { %17011 = vmatprep.subr.mxu1 %v17030_v4  ;;  %16969 = vmatpush3.msra.mxu0 %v13294_v3 }
 0xd99   :  { %17012 = vmatpush3.msra.mxu1 %v20560_v47  ;;  %16970 = vmatprep.subr.mxu0 %v17030_v4 }
 0xd9a   :  { %17013 = vmatprep.subr.mxu1 %v17030_v4  ;;  %16971 = vmatpush3.msra.mxu0 %v13301_v6 }
 0xd9b   :  { %17014 = vmatpush3.msra.mxu1 %v20572_v20  ;;  %16972 = vmatprep.subr.mxu0 %v17030_v4 }
 0xd9c   :  { %17015 = vmatprep.subr.mxu1 %v17030_v4  ;;  %16973 = vmatpush3.msra.mxu0 %v13308_v48 }
 0xd9d   :  { %17016 = vmatpush3.msra.mxu1 %v20587_v34  ;;  %16974 = vmatprep.subr.mxu0 %v17030_v4 }
 0xd9e   :  { %17017 = vmatprep.subr.mxu1 %v17030_v4  ;;  %16975 = vmatpush3.msra.mxu0 %v13315_v52 }
 0xd9f   :  { %17018 = vmatpush3.msra.mxu1 %v20604_v53  ;;  %16976 = vmatprep.subr.mxu0 %v17030_v4 }
 0xda0   :  { %17019 = vmatprep.subr.mxu1 %v17030_v4  ;;  %16977 = vmatpush3.msra.mxu0 %v13322_v15 }
 0xda1   :  { %17020 = vmatpush3.msra.mxu1 %v20614_v0  ;;  %16978 = vmatprep.subr.mxu0 %v17030_v4 }
 0xda2   :  { %17021 = vmatprep.subr.mxu1 %v17030_v4  ;;  %16979 = vmatpush3.msra.mxu0 %v13329_v30 }
 0xda3   :  { %17022 = vmatpush3.msra.mxu1 %v20630_v56  ;;  %16980 = vmatprep.subr.mxu0 %v17030_v4 }
 0xda4   :  { %17023 = vmatprep.subr.mxu1 %v17030_v4  ;;  %16981 = vmatpush3.msra.mxu0 %v13336_v63 }
 0xda5   :  { %17024 = vmatpush3.msra.mxu1 %v20643_v62  ;;  %17025 = vmatprep.mubr.msk.f32.mxu1 %vm17031_vm2, %v17030_v4 }
 0xda6   :  { %16982 = vmatprep.subr.mxu0 %v17030_v4  ;;  %17026 = vmatmul.mubr.f32.vlgmr.msra.gmra.mxu1 %v20676_v32 }
 0xda7   :  { %16983 = vmatpush3.msra.mxu0 %v20975_v60  ;;  %16990 = vmatprep.mubr.msk.f32.mxu0 %vm17031_vm2, %v17030_v4 }
 0xda8   :  { %16984 = vmatprep.subr.mxu0 %v17030_v4 }
 0xda9   :  { %16985 = vmatpush3.msra.mxu0 %v20976_v16 }
 0xdaa   :  { %16986 = vmatprep.subr.mxu0 %v17030_v4 }
 0xdab   :  { %16987 = vmatpush3.msra.mxu0 %v20977_v18 }
 0xdac   :  { %16988 = vmatprep.subr.mxu0 %v17030_v4 }
 0xdad   :  { %16989 = vmatpush3.msra.mxu0 %v20978_v22 }
 0xdae   :  { %16991 = vmatmul.mubr.f32.vlgmr.msra.gmra.mxu0 %v20676_v32 }
 0xe24   :  { %v13403_v59 = vpop.f32.mrf.mxu1 }
 0xe26   :  { %v16887_v39 = vpop.f32.mrf.mxu1 }
 0xe2c   :  { %v13252_v49 = vpop.f32.mrf.mxu0 }
 0xe2d   :  { %v13253_v26 = vadd.f32 %v13871_v27, %v13252_v49 }
 0xe2e   :  { %v16852_v38 = vpop.f32.mrf.mxu0 }
 0xe2f   :  { %v13404_v4 = vadd.f32 %v13403_v59, %v13253_v26 }
 0xe44   :  { %v13596_v40 = vpop.f32.mrf.mxu1 }
 0xe46   :  { %v16957_v9 = vpop.f32.mrf.mxu1 }
 0xe4d   :  { %v13507_v8 = vpop.f32.mrf.mxu0 }
 0xe4e   :  { %v13508_v54 = vadd.f32 %v13507_v8, %v13404_v4 }
 0xe4f   :  { %v16922_v35 = vpop.f32.mrf.mxu0 }
 0xe50   :  { %v13597_v46 = vadd.f32 %v13596_v40, %v13508_v54 }
 0xe66   :  { %v13802_v50 = vpop.f32.mrf.mxu1 }
 0xe68   :  { %v17027_v44 = vpop.f32.mrf.mxu1 }
 0xe6e   :  { %v13715_v55 = vpop.f32.mrf.mxu0 }
 0xe6f   :  { %v13716_v21 = vadd.f32 %v13715_v55, %v13597_v46 }
 0xe70   :  { %v16992_v3 = vpop.f32.mrf.mxu0 }
 0xe71   :  { %v13803_v37 = vadd.f32 %v13802_v50, %v13716_v21 }
 0xe73   :  { %13807 = vst.msk [vmem:[%s20867_s24] sm:$0x3] %vm13806_vm11, %v13803_v37 }

</bundles_post_ra>
